<compile_context>
chip_gen: v7x
topology: tpu7x:2x2x1
jax: 0.10.0
libtpu: 0.0.40
codegen_flags: <defaults>
</compile_context>

<pallas_src>
import functools

import jax
import jax.numpy as jnp
from jax import lax
from jax.experimental import pallas as pl
from jax.experimental.pallas import tpu as pltpu


def _self_attention_kernel(gamma_ref,           # SMEM (1, 1) scalar gamma
                           x_ref,               # VMEM (C, N)   f32 (batch squeezed)
                           wqk_ref,             # VMEM (C, C)   Wq^T @ Wk   (compute dtype)
                           cvec_ref,            # VMEM (1, C)   bq^T @ Wk   (compute dtype)
                           wv_ref,              # VMEM (C, C)   Wv          (compute dtype)
                           bv_ref,              # VMEM (C, 1)   bv          (f32)
                           o_ref,               # VMEM (C, TQ)  (batch squeezed)
                           v_sc,                # scratch (C, N) compute dtype
                           a_sc,                # scratch (C, N) compute dtype
                           c_sc,                # scratch (1, N) f32
                           *, tq, compute_dtype):
    qi = pl.program_id(1)
    n = a_sc.shape[-1]

    # --- per-batch prologue: projections shared by every query tile ---------
    @pl.when(qi == 0)
    def _():
        xc = x_ref[...].astype(compute_dtype)                       # (C, N)
        # V = Wv @ X + bv                                    -> (C, N)
        v_sc[...] = (lax.dot_general(
            wv_ref[...], xc, (((1,), (0,)), ((), ())),
            preferred_element_type=jnp.float32) + bv_ref[...]).astype(v_sc.dtype)
        # A = (Wq^T Wk) @ X                                  -> (C, N)
        a_sc[...] = lax.dot_general(
            wqk_ref[...], xc, (((1,), (0,)), ((), ())),
            preferred_element_type=jnp.float32).astype(a_sc.dtype)
        # c_j = (bq^T Wk) x_j                                -> (1, N)
        c_sc[...] = lax.dot_general(
            cvec_ref[...], xc, (((1,), (0,)), ((), ())),
            preferred_element_type=jnp.float32)

    # --- query tile ----------------------------------------------------------
    q0 = pl.multiple_of(qi * tq, tq)
    x_q = x_ref[:, pl.ds(q0, tq)]                                   # (C, TQ) f32

    # s[i, j] = x_i^T (Wq^T Wk) x_j + c_j   (contract the C axis, no .T)
    s = lax.dot_general(x_q.astype(compute_dtype), a_sc[...],
                        (((0,), (0,)), ((), ())),
                        preferred_element_type=jnp.float32)         # (TQ, N)
    s = s + c_sc[...]

    # Numerically-stable, f32 softmax math (v5e has no bf16 VPU/EUP).
    s = s - jnp.max(s, axis=-1, keepdims=True)
    p = jnp.exp(s).astype(compute_dtype)                            # unnormalized

    # Unnormalized PV:  out_un[c, i] = sum_j V[c, j] * p[i, j]
    out_un = lax.dot_general(v_sc[...], p, (((1,), (1,)), ((), ())),
                             preferred_element_type=jnp.float32)    # (C, TQ)
    # Denominator as a lane-aligned row via the (mostly idle) MXU:
    #   l[0, i] = sum_j p[i, j]
    l_row = lax.dot_general(jnp.ones((1, n), compute_dtype), p,
                            (((1,), (1,)), ((), ())),
                            preferred_element_type=jnp.float32)     # (1, TQ)

    # Fuse 1/l with gamma: one (1, TQ) EUP reciprocal + one (C, TQ) multiply.
    scale = gamma_ref[0, 0] * pl.reciprocal(l_row, approx=True)     # (1, TQ)
    o_ref[...] = (out_un * scale + x_q).astype(o_ref.dtype)


def _pick_tq(n):
    # Cap at 256 so the (TQ, N) f32 score/exp temporaries stay inside v7x's
    # 64 MiB VMEM; 128-multiple keeps the output store lane-dense.
    for t in (256, 128):
        if n % t == 0:
            return t
    return n


def self_attention(x_nchw, params, *, tq=None, compute_dtype=jnp.bfloat16):
    """x_nchw: (B, C, W, H) float32.  Returns (B, C, W, H)."""
    B, C, W, H = x_nchw.shape
    N = W * H
    wq, bq, wk, bk, wv, bv, gamma = params
    del bk  # drops out of softmax (constant / i-only terms) -- exact fold.

    # One-time f32 fold of the query/key projections; pre-cast the MXU weight
    # operands once here (no per-batch cast in-kernel, half the weight DMA).
    wqk = (wq.T @ wk).astype(compute_dtype)            # (C, C)
    cvec = (bq.reshape(1, -1) @ wk).astype(compute_dtype)   # (1, C)
    wv_c = wv.astype(compute_dtype)                    # (C, C)
    bv_col = bv.reshape(C, 1).astype(jnp.float32)      # added to f32 accumulator
    gamma_smem = jnp.reshape(gamma, (1, 1)).astype(jnp.float32)

    x_bcn = x_nchw.reshape(B, C, N)                    # pure reshape, no transpose

    if tq is None:
        tq = _pick_tq(N)
    assert N % tq == 0, f"tq={tq} must divide N={N}"
    nq = N // tq

    kernel = functools.partial(_self_attention_kernel,
                               tq=tq, compute_dtype=compute_dtype)

    # Scoped-VMEM limit sized from the actual live buffers (defaults of
    # 16 MiB on v5e / 32 MiB on v6e+v7x are too small at realistic N).
    cb = jnp.dtype(compute_dtype).itemsize
    vmem_need = (2 * C * N * 4                              # x block (x2 buffers)
                 + 2 * C * tq * 4                           # out block (x2 buffers)
                 + 2 * ((2 * C * C + C) * cb + C * 4)       # weight operands
                 + 2 * C * N * cb + N * 4                   # V / A / c scratch
                 + 4 * tq * N * 4)                          # (TQ, N) temporaries
    vmem_limit = max(32 << 20, min(int(vmem_need * 1.5) + (4 << 20), 64 << 20))

    cost = pl.CostEstimate(
        flops=int(4 * B * C * N * N + 4 * B * C * C * N),
        transcendentals=int(B * N * N),
        bytes_accessed=int(2 * B * C * N * 4 + (2 * C * C + 2 * C) * cb))

    args = (gamma_smem, x_bcn, wqk, cvec, wv_c, bv_col)

    def build(single_buffer_consts):
        # Constant-index weight operands never change block -> their second
        # pipeline buffer is pure VMEM waste; drop them to single-buffered.
        const_kw = ({"pipeline_mode": pl.Buffered(1)}
                    if single_buffer_consts else {})
        return pl.pallas_call(
            kernel,
            out_shape=jax.ShapeDtypeStruct((B, C, N), x_nchw.dtype),
            grid_spec=pltpu.PrefetchScalarGridSpec(
                num_scalar_prefetch=0,
                grid=(B, nq),
                in_specs=[
                    pl.BlockSpec(memory_space=pltpu.MemorySpace.SMEM),        # gamma
                    pl.BlockSpec((None, C, N), lambda b, qi: (b, 0, 0)),      # x (full seq)
                    pl.BlockSpec((C, C), lambda b, qi: (0, 0), **const_kw),   # Wq^T Wk
                    pl.BlockSpec((1, C), lambda b, qi: (0, 0), **const_kw),   # bq^T Wk
                    pl.BlockSpec((C, C), lambda b, qi: (0, 0), **const_kw),   # Wv
                    pl.BlockSpec((C, 1), lambda b, qi: (0, 0), **const_kw),   # bv
                ],
                out_specs=pl.BlockSpec((None, C, tq), lambda b, qi: (b, 0, qi)),
                scratch_shapes=[
                    pltpu.VMEM((C, N), compute_dtype),    # V
                    pltpu.VMEM((C, N), compute_dtype),    # A = Wqk @ X
                    pltpu.VMEM((1, N), jnp.float32),      # c (key-side bias row)
                ],
            ),
            compiler_params=pltpu.CompilerParams(
                dimension_semantics=("parallel", "arbitrary"),
                vmem_limit_bytes=vmem_limit),
            cost_estimate=cost,
        )

    try:
        out_bcn = build(True)(*args)
    except Exception:
        # pl.Buffered(1) not supported by this jax build: fall back to default
        # double-buffering (identical math, slightly more VMEM).
        out_bcn = build(False)(*args)

    return out_bcn.reshape(B, C, W, H)


def init_params(key, in_dim):
    """Synthetic init matching nn.Conv2d(in, out, 1) parameter shapes.

    Conv2d weight (out, in, 1, 1) stored squeezed as (out, in); bias (out,).
    gamma is a scalar parameter (torch inits it to 0; tests override it).
    """
    C = in_dim
    C8 = C // 8
    ks = jax.random.split(key, 6)
    scale = 1.0 / jnp.sqrt(C)
    wq = jax.random.uniform(ks[0], (C8, C), jnp.float32, -scale, scale)
    bq = jax.random.uniform(ks[1], (C8,), jnp.float32, -scale, scale)
    wk = jax.random.uniform(ks[2], (C8, C), jnp.float32, -scale, scale)
    bk = jax.random.uniform(ks[3], (C8,), jnp.float32, -scale, scale)
    wv = jax.random.uniform(ks[4], (C, C), jnp.float32, -scale, scale)
    bv = jax.random.uniform(ks[5], (C,), jnp.float32, -scale, scale)
    gamma = jnp.zeros((1,), jnp.float32)
    return (wq, bq, wk, bk, wv, bv, gamma)


def _reference(x_nchw, params):
    """Pure-JAX reference reproducing the torch forward (un-folded form)."""
    wq, bq, wk, bk, wv, bv, gamma = params
    B, C, W, H = x_nchw.shape
    N = W * H
    xf = x_nchw.reshape(B, C, N)                                      # (B, C, N)
    q = jnp.einsum('oc,bcn->bon', wq, xf) + bq.reshape(1, -1, 1)      # (B, C8, N)
    k = jnp.einsum('oc,bcn->bon', wk, xf) + bk.reshape(1, -1, 1)      # (B, C8, N)
    v = jnp.einsum('oc,bcn->bon', wv, xf) + bv.reshape(1, -1, 1)      # (B, C,  N)
    qk = jnp.einsum('bci,bcj->bij', q, k)                             # (B, N, N)
    attn = jax.nn.softmax(qk, axis=-1)
    out = jnp.einsum('bcj,bij->bci', v, attn)                         # (B, C, N)
    return (gamma.reshape(()) * out + xf).reshape(B, C, W, H)


if __name__ == "__main__":
    key = jax.random.PRNGKey(0)
    k_x, k_p = jax.random.split(key)

    B, C, W, H = 2, 32, 16, 16       # in_dim=32 -> query/key project to 32//8 = 4
    x = jax.random.normal(k_x, (B, C, W, H), jnp.float32)
    params = init_params(k_p, C)
    # Use a NONZERO gamma so the attention path (not just the residual) is tested.
    params = params[:-1] + (jnp.array([0.7], jnp.float32),)

    ref = _reference(x, params)

    # Default path: bf16 MXU operands, f32 accumulation / f32 softmax, tq auto.
    out = jax.block_until_ready(self_attention(x, params))
    assert out.shape == (B, C, W, H)
    assert jnp.allclose(out, ref, atol=1e-1, rtol=1e-1), "bf16 kernel mismatch"

    # f32 operand path with explicit query tiling exercised (tq=128, N=256).
    out_f32 = jax.block_until_ready(
        self_attention(x, params, tq=128, compute_dtype=jnp.float32))
    assert jnp.allclose(out_f32, ref, atol=1e-2, rtol=1e-2), "f32 kernel mismatch"

    print("KERNEL_OK")
</pallas_src>

<mosaic_0001>
module attributes {stable_mosaic.version = 11 : i64} {
  func.func @_self_attention_kernel(%arg0: i32, %arg1: i32, %arg2: memref<1x1xf32, #tpu.memory_space<smem>>, %arg3: memref<1x32x256xf32, #tpu.memory_space<vmem>>, %arg4: memref<32x32xbf16, #tpu.memory_space<vmem>>, %arg5: memref<1x32xbf16, #tpu.memory_space<vmem>>, %arg6: memref<32x32xbf16, #tpu.memory_space<vmem>>, %arg7: memref<32x1xf32, #tpu.memory_space<vmem>>, %arg8: memref<1x32x256xf32, #tpu.memory_space<vmem>>, %arg9: memref<32x256xbf16, #tpu.memory_space<vmem>>, %arg10: memref<32x256xbf16, #tpu.memory_space<vmem>>, %arg11: memref<1x256xf32, #tpu.memory_space<vmem>>) attributes {dimension_semantics = [#tpu.dimension_semantics<parallel>, #tpu.dimension_semantics<arbitrary>], iteration_bounds = array<i64: 2, 1>, scalar_prefetch = 0 : i64, scratch_operands = 3 : i64, tpu.core_type = #tpu.core_type<tc>, window_params = [{transform_indices = @transform_0, window_bounds = array<i64: 1, 1>}, {transform_indices = @transform_1, window_bounds = array<i64: 1, 32, 256>}, {pipeline_mode = #tpu.pipeline_mode<synchronous>, transform_indices = @transform_2, window_bounds = array<i64: 32, 32>}, {pipeline_mode = #tpu.pipeline_mode<synchronous>, transform_indices = @transform_3, window_bounds = array<i64: 1, 32>}, {pipeline_mode = #tpu.pipeline_mode<synchronous>, transform_indices = @transform_4, window_bounds = array<i64: 32, 32>}, {pipeline_mode = #tpu.pipeline_mode<synchronous>, transform_indices = @transform_5, window_bounds = array<i64: 32, 1>}, {transform_indices = @transform_6, window_bounds = array<i64: 1, 32, 256>}]} {
    %c0_i32 = arith.constant 0 : i32
    %0 = arith.cmpi eq, %arg1, %c0_i32 : i32
    %1 = arith.extui %0 : i1 to i32
    %c0_i32_0 = arith.constant 0 : i32
    %2 = arith.cmpi ne, %1, %c0_i32_0 : i32
    scf.if %2 {
      %c0_17 = arith.constant 0 : index
      %c0_18 = arith.constant 0 : index
      %c0_19 = arith.constant 0 : index
      %34 = vector.load %arg3[%c0_17, %c0_18, %c0_19] : memref<1x32x256xf32, #tpu.memory_space<vmem>>, vector<1x32x256xf32>
      %35 = vector.shape_cast %34 : vector<1x32x256xf32> to vector<32x256xf32>
      %36 = arith.truncf %35 : vector<32x256xf32> to vector<32x256xbf16>
      %c0_20 = arith.constant 0 : index
      %c0_21 = arith.constant 0 : index
      %37 = vector.load %arg6[%c0_20, %c0_21] : memref<32x32xbf16, #tpu.memory_space<vmem>>, vector<32x32xbf16>
      %cst_22 = arith.constant dense<0.000000e+00> : vector<32x256xf32>
      %38 = tpu.matmul %37, %36, %cst_22 {dimension_numbers = #tpu.dot_dimension_numbers<[1], [0], [0], [1], [0, 0, 1, 1], [], []>} : vector<32x32xbf16>, vector<32x256xbf16>, vector<32x256xf32> -> vector<32x256xf32>
      %c0_23 = arith.constant 0 : index
      %c0_24 = arith.constant 0 : index
      %39 = vector.load %arg7[%c0_23, %c0_24] : memref<32x1xf32, #tpu.memory_space<vmem>>, vector<32x1xf32>
      %40 = vector.broadcast %39 : vector<32x1xf32> to vector<32x256xf32>
      %41 = arith.addf %38, %40 : vector<32x256xf32>
      %42 = arith.truncf %41 : vector<32x256xf32> to vector<32x256xbf16>
      %c0_25 = arith.constant 0 : index
      %c0_26 = arith.constant 0 : index
      %43 = vector.load %arg9[%c0_25, %c0_26] : memref<32x256xbf16, #tpu.memory_space<vmem>>, vector<32x256xbf16>
      tpu.vector_store %arg9[%c0_25, %c0_26], %42 {strides = array<i32>} : memref<32x256xbf16, #tpu.memory_space<vmem>>, vector<32x256xbf16>,
      %c0_27 = arith.constant 0 : index
      %c0_28 = arith.constant 0 : index
      %44 = vector.load %arg4[%c0_27, %c0_28] : memref<32x32xbf16, #tpu.memory_space<vmem>>, vector<32x32xbf16>
      %cst_29 = arith.constant dense<0.000000e+00> : vector<32x256xf32>
      %45 = tpu.matmul %44, %36, %cst_29 {dimension_numbers = #tpu.dot_dimension_numbers<[1], [0], [0], [1], [0, 0, 1, 1], [], []>} : vector<32x32xbf16>, vector<32x256xbf16>, vector<32x256xf32> -> vector<32x256xf32>
      %46 = arith.truncf %45 : vector<32x256xf32> to vector<32x256xbf16>
      %c0_30 = arith.constant 0 : index
      %c0_31 = arith.constant 0 : index
      %47 = vector.load %arg10[%c0_30, %c0_31] : memref<32x256xbf16, #tpu.memory_space<vmem>>, vector<32x256xbf16>
      tpu.vector_store %arg10[%c0_30, %c0_31], %46 {strides = array<i32>} : memref<32x256xbf16, #tpu.memory_space<vmem>>, vector<32x256xbf16>,
      %c0_32 = arith.constant 0 : index
      %c0_33 = arith.constant 0 : index
      %48 = vector.load %arg5[%c0_32, %c0_33] : memref<1x32xbf16, #tpu.memory_space<vmem>>, vector<1x32xbf16>
      %cst_34 = arith.constant dense<0.000000e+00> : vector<1x256xf32>
      %49 = tpu.matmul %48, %36, %cst_34 {dimension_numbers = #tpu.dot_dimension_numbers<[1], [0], [0], [1], [0, 0, 1, 1], [], []>} : vector<1x32xbf16>, vector<32x256xbf16>, vector<1x256xf32> -> vector<1x256xf32>
      %c0_35 = arith.constant 0 : index
      %c0_36 = arith.constant 0 : index
      %50 = vector.load %arg11[%c0_35, %c0_36] : memref<1x256xf32, #tpu.memory_space<vmem>>, vector<1x256xf32>
      tpu.vector_store %arg11[%c0_35, %c0_36], %49 {strides = array<i32>} : memref<1x256xf32, #tpu.memory_space<vmem>>, vector<1x256xf32>,
    } else {
    }
    %c256_i32 = arith.constant 256 : i32
    %3 = arith.muli %arg1, %c256_i32 : i32
    %4 = tpu.assume_multiple %3, 256 : i32
    %c0 = arith.constant 0 : index
    %c0_1 = arith.constant 0 : index
    %5 = arith.index_cast %4 : i32 to index
    %6 = vector.load %arg3[%c0, %c0_1, %5] : memref<1x32x256xf32, #tpu.memory_space<vmem>>, vector<1x32x256xf32>
    %7 = vector.shape_cast %6 : vector<1x32x256xf32> to vector<32x256xf32>
    %8 = arith.truncf %7 : vector<32x256xf32> to vector<32x256xbf16>
    %c0_2 = arith.constant 0 : index
    %c0_3 = arith.constant 0 : index
    %9 = vector.load %arg10[%c0_2, %c0_3] : memref<32x256xbf16, #tpu.memory_space<vmem>>, vector<32x256xbf16>
    %cst = arith.constant dense<0.000000e+00> : vector<256x256xf32>
    %10 = tpu.matmul %8, %9, %cst {dimension_numbers = #tpu.dot_dimension_numbers<[0], [0], [1], [1], [0, 1, 1, 1], [], []>} : vector<32x256xbf16>, vector<32x256xbf16>, vector<256x256xf32> -> vector<256x256xf32>
    %c0_4 = arith.constant 0 : index
    %c0_5 = arith.constant 0 : index
    %11 = vector.load %arg11[%c0_4, %c0_5] : memref<1x256xf32, #tpu.memory_space<vmem>>, vector<1x256xf32>
    %12 = vector.broadcast %11 : vector<1x256xf32> to vector<256x256xf32>
    %13 = arith.addf %10, %12 : vector<256x256xf32>
    %cst_6 = arith.constant dense<0xFF800000> : vector<256xf32>
    %14 = vector.multi_reduction <maximumf>, %13, %cst_6 [1] : vector<256x256xf32> to vector<256xf32>
    %15 = vector.shape_cast %14 : vector<256xf32> to vector<256x1xf32>
    %16 = vector.broadcast %15 : vector<256x1xf32> to vector<256x256xf32>
    %17 = arith.subf %13, %16 : vector<256x256xf32>
    %18 = math.exp %17 : vector<256x256xf32>
    %19 = arith.truncf %18 : vector<256x256xf32> to vector<256x256xbf16>
    %c0_7 = arith.constant 0 : index
    %c0_8 = arith.constant 0 : index
    %20 = vector.load %arg9[%c0_7, %c0_8] : memref<32x256xbf16, #tpu.memory_space<vmem>>, vector<32x256xbf16>
    %cst_9 = arith.constant dense<0.000000e+00> : vector<32x256xf32>
    %21 = tpu.matmul %20, %19, %cst_9 {dimension_numbers = #tpu.dot_dimension_numbers<[1], [1], [0], [0], [0, 0, 1, 0], [], []>} : vector<32x256xbf16>, vector<256x256xbf16>, vector<32x256xf32> -> vector<32x256xf32>
    %cst_10 = arith.constant 1.000000e+00 : bf16
    %22 = vector.broadcast %cst_10 : bf16 to vector<1x256xbf16>
    %cst_11 = arith.constant dense<0.000000e+00> : vector<1x256xf32>
    %23 = tpu.matmul %22, %19, %cst_11 {dimension_numbers = #tpu.dot_dimension_numbers<[1], [1], [0], [0], [0, 0, 1, 0], [], []>} : vector<1x256xbf16>, vector<256x256xbf16>, vector<1x256xf32> -> vector<1x256xf32>
    %c0_12 = arith.constant 0 : index
    %c0_13 = arith.constant 0 : index
    %24 = memref.load %arg2[%c0_12, %c0_13] : memref<1x1xf32, #tpu.memory_space<smem>>
    %25 = tpu.reciprocal %23 {approx = true} : vector<1x256xf32> -> vector<1x256xf32>
    %26 = vector.broadcast %24 : f32 to vector<1x256xf32>
    %27 = arith.mulf %26, %25 : vector<1x256xf32>
    %28 = vector.broadcast %27 : vector<1x256xf32> to vector<32x256xf32>
    %29 = arith.mulf %21, %28 : vector<32x256xf32>
    %30 = arith.addf %29, %7 : vector<32x256xf32>
    %c0_14 = arith.constant 0 : index
    %c0_15 = arith.constant 0 : index
    %c0_16 = arith.constant 0 : index
    %31 = vector.load %arg8[%c0_14, %c0_15, %c0_16] : memref<1x32x256xf32, #tpu.memory_space<vmem>>, vector<1x32x256xf32>
    %32 = vector.shape_cast %31 : vector<1x32x256xf32> to vector<32x256xf32>
    %33 = vector.shape_cast %30 : vector<32x256xf32> to vector<1x32x256xf32>
    tpu.vector_store %arg8[%c0_14, %c0_15, %c0_16], %33 {strides = array<i32>} : memref<1x32x256xf32, #tpu.memory_space<vmem>>, vector<1x32x256xf32>,
    return
  }
  func.func @transform_0(%arg0: i32, %arg1: i32) -> (i32, i32) {
    %c0_i32 = arith.constant 0 : i32
    %c0_i32_0 = arith.constant 0 : i32
    %c0_i32_1 = arith.constant 0 : i32
    return %c0_i32, %c0_i32_0 : i32, i32
  }
  func.func @transform_1(%arg0: i32, %arg1: i32) -> (i32, i32, i32) {
    %c0_i32 = arith.constant 0 : i32
    %c0_i32_0 = arith.constant 0 : i32
    %c0_i32_1 = arith.constant 0 : i32
    return %arg0, %c0_i32, %c0_i32_0 : i32, i32, i32
  }
  func.func @transform_2(%arg0: i32, %arg1: i32) -> (i32, i32) {
    %c0_i32 = arith.constant 0 : i32
    %c0_i32_0 = arith.constant 0 : i32
    %c0_i32_1 = arith.constant 0 : i32
    return %c0_i32, %c0_i32_0 : i32, i32
  }
  func.func @transform_3(%arg0: i32, %arg1: i32) -> (i32, i32) {
    %c0_i32 = arith.constant 0 : i32
    %c0_i32_0 = arith.constant 0 : i32
    %c0_i32_1 = arith.constant 0 : i32
    return %c0_i32, %c0_i32_0 : i32, i32
  }
  func.func @transform_4(%arg0: i32, %arg1: i32) -> (i32, i32) {
    %c0_i32 = arith.constant 0 : i32
    %c0_i32_0 = arith.constant 0 : i32
    %c0_i32_1 = arith.constant 0 : i32
    return %c0_i32, %c0_i32_0 : i32, i32
  }
  func.func @transform_5(%arg0: i32, %arg1: i32) -> (i32, i32) {
    %c0_i32 = arith.constant 0 : i32
    %c0_i32_0 = arith.constant 0 : i32
    %c0_i32_1 = arith.constant 0 : i32
    return %c0_i32, %c0_i32_0 : i32, i32
  }
  func.func @transform_6(%arg0: i32, %arg1: i32) -> (i32, i32, i32) {
    %c0_i32 = arith.constant 0 : i32
    %c0_i32_0 = arith.constant 0 : i32
    return %arg0, %c0_i32, %arg1 : i32, i32, i32
  }
}

module attributes {stable_mosaic.version = 11 : i64} {
  func.func @_self_attention_kernel(%arg0: i32, %arg1: i32, %arg2: memref<1x1xf32, #tpu.memory_space<smem>>, %arg3: memref<1x32x256xf32, #tpu.memory_space<vmem>>, %arg4: memref<32x32xbf16, #tpu.memory_space<vmem>>, %arg5: memref<1x32xbf16, #tpu.memory_space<vmem>>, %arg6: memref<32x32xbf16, #tpu.memory_space<vmem>>, %arg7: memref<32x1xf32, #tpu.memory_space<vmem>>, %arg8: memref<1x32x256xf32, #tpu.memory_space<vmem>>, %arg9: memref<32x256xbf16, #tpu.memory_space<vmem>>, %arg10: memref<32x256xbf16, #tpu.memory_space<vmem>>, %arg11: memref<1x256xf32, #tpu.memory_space<vmem>>) attributes {dimension_semantics = [#tpu.dimension_semantics<parallel>, #tpu.dimension_semantics<arbitrary>], iteration_bounds = array<i64: 2, 1>, scalar_prefetch = 0 : i64, scratch_operands = 3 : i64, tpu.core_type = #tpu.core_type<tc>, window_params = [{transform_indices = @transform_0, window_bounds = array<i64: 1, 1>}, {transform_indices = @transform_1, window_bounds = array<i64: 1, 32, 256>}, {pipeline_mode = #tpu.pipeline_mode<synchronous>, transform_indices = @transform_2, window_bounds = array<i64: 32, 32>}, {pipeline_mode = #tpu.pipeline_mode<synchronous>, transform_indices = @transform_3, window_bounds = array<i64: 1, 32>}, {pipeline_mode = #tpu.pipeline_mode<synchronous>, transform_indices = @transform_4, window_bounds = array<i64: 32, 32>}, {pipeline_mode = #tpu.pipeline_mode<synchronous>, transform_indices = @transform_5, window_bounds = array<i64: 32, 1>}, {transform_indices = @transform_6, window_bounds = array<i64: 1, 32, 256>}]} {
    %c0_i32 = arith.constant 0 : i32
    %0 = arith.cmpi eq, %arg1, %c0_i32 : i32
    %1 = arith.extui %0 : i1 to i32
    %c0_i32_0 = arith.constant 0 : i32
    %2 = arith.cmpi ne, %1, %c0_i32_0 : i32
    scf.if %2 {
      %c0_17 = arith.constant 0 : index
      %c0_18 = arith.constant 0 : index
      %c0_19 = arith.constant 0 : index
      %34 = vector.load %arg3[%c0_17, %c0_18, %c0_19] : memref<1x32x256xf32, #tpu.memory_space<vmem>>, vector<1x32x256xf32>
      %35 = vector.shape_cast %34 : vector<1x32x256xf32> to vector<32x256xf32>
      %36 = arith.truncf %35 : vector<32x256xf32> to vector<32x256xbf16>
      %c0_20 = arith.constant 0 : index
      %c0_21 = arith.constant 0 : index
      %37 = vector.load %arg6[%c0_20, %c0_21] : memref<32x32xbf16, #tpu.memory_space<vmem>>, vector<32x32xbf16>
      %cst_22 = arith.constant dense<0.000000e+00> : vector<32x256xf32>
      %38 = tpu.matmul %37, %36, %cst_22 {dimension_numbers = #tpu.dot_dimension_numbers<[1], [0], [0], [1], [0, 0, 1, 1], [], []>} : vector<32x32xbf16>, vector<32x256xbf16>, vector<32x256xf32> -> vector<32x256xf32>
      %c0_23 = arith.constant 0 : index
      %c0_24 = arith.constant 0 : index
      %39 = vector.load %arg7[%c0_23, %c0_24] : memref<32x1xf32, #tpu.memory_space<vmem>>, vector<32x1xf32>
      %40 = vector.broadcast %39 : vector<32x1xf32> to vector<32x256xf32>
      %41 = arith.addf %38, %40 : vector<32x256xf32>
      %42 = arith.truncf %41 : vector<32x256xf32> to vector<32x256xbf16>
      %c0_25 = arith.constant 0 : index
      %c0_26 = arith.constant 0 : index
      %43 = vector.load %arg9[%c0_25, %c0_26] : memref<32x256xbf16, #tpu.memory_space<vmem>>, vector<32x256xbf16>
      tpu.vector_store %arg9[%c0_25, %c0_26], %42 {strides = array<i32>} : memref<32x256xbf16, #tpu.memory_space<vmem>>, vector<32x256xbf16>,
      %c0_27 = arith.constant 0 : index
      %c0_28 = arith.constant 0 : index
      %44 = vector.load %arg4[%c0_27, %c0_28] : memref<32x32xbf16, #tpu.memory_space<vmem>>, vector<32x32xbf16>
      %cst_29 = arith.constant dense<0.000000e+00> : vector<32x256xf32>
      %45 = tpu.matmul %44, %36, %cst_29 {dimension_numbers = #tpu.dot_dimension_numbers<[1], [0], [0], [1], [0, 0, 1, 1], [], []>} : vector<32x32xbf16>, vector<32x256xbf16>, vector<32x256xf32> -> vector<32x256xf32>
      %46 = arith.truncf %45 : vector<32x256xf32> to vector<32x256xbf16>
      %c0_30 = arith.constant 0 : index
      %c0_31 = arith.constant 0 : index
      %47 = vector.load %arg10[%c0_30, %c0_31] : memref<32x256xbf16, #tpu.memory_space<vmem>>, vector<32x256xbf16>
      tpu.vector_store %arg10[%c0_30, %c0_31], %46 {strides = array<i32>} : memref<32x256xbf16, #tpu.memory_space<vmem>>, vector<32x256xbf16>,
      %c0_32 = arith.constant 0 : index
      %c0_33 = arith.constant 0 : index
      %48 = vector.load %arg5[%c0_32, %c0_33] : memref<1x32xbf16, #tpu.memory_space<vmem>>, vector<1x32xbf16>
      %cst_34 = arith.constant dense<0.000000e+00> : vector<1x256xf32>
      %49 = tpu.matmul %48, %36, %cst_34 {dimension_numbers = #tpu.dot_dimension_numbers<[1], [0], [0], [1], [0, 0, 1, 1], [], []>} : vector<1x32xbf16>, vector<32x256xbf16>, vector<1x256xf32> -> vector<1x256xf32>
      %c0_35 = arith.constant 0 : index
      %c0_36 = arith.constant 0 : index
      %50 = vector.load %arg11[%c0_35, %c0_36] : memref<1x256xf32, #tpu.memory_space<vmem>>, vector<1x256xf32>
      tpu.vector_store %arg11[%c0_35, %c0_36], %49 {strides = array<i32>} : memref<1x256xf32, #tpu.memory_space<vmem>>, vector<1x256xf32>,
    } else {
    }
    %c256_i32 = arith.constant 256 : i32
    %3 = arith.muli %arg1, %c256_i32 : i32
    %4 = tpu.assume_multiple %3, 256 : i32
    %c0 = arith.constant 0 : index
    %c0_1 = arith.constant 0 : index
    %5 = arith.index_cast %4 : i32 to index
    %6 = vector.load %arg3[%c0, %c0_1, %5] : memref<1x32x256xf32, #tpu.memory_space<vmem>>, vector<1x32x256xf32>
    %7 = vector.shape_cast %6 : vector<1x32x256xf32> to vector<32x256xf32>
    %8 = arith.truncf %7 : vector<32x256xf32> to vector<32x256xbf16>
    %c0_2 = arith.constant 0 : index
    %c0_3 = arith.constant 0 : index
    %9 = vector.load %arg10[%c0_2, %c0_3] : memref<32x256xbf16, #tpu.memory_space<vmem>>, vector<32x256xbf16>
    %cst = arith.constant dense<0.000000e+00> : vector<256x256xf32>
    %10 = tpu.matmul %8, %9, %cst {dimension_numbers = #tpu.dot_dimension_numbers<[0], [0], [1], [1], [0, 1, 1, 1], [], []>} : vector<32x256xbf16>, vector<32x256xbf16>, vector<256x256xf32> -> vector<256x256xf32>
    %c0_4 = arith.constant 0 : index
    %c0_5 = arith.constant 0 : index
    %11 = vector.load %arg11[%c0_4, %c0_5] : memref<1x256xf32, #tpu.memory_space<vmem>>, vector<1x256xf32>
    %12 = vector.broadcast %11 : vector<1x256xf32> to vector<256x256xf32>
    %13 = arith.addf %10, %12 : vector<256x256xf32>
    %cst_6 = arith.constant dense<0xFF800000> : vector<256xf32>
    %14 = vector.multi_reduction <maximumf>, %13, %cst_6 [1] : vector<256x256xf32> to vector<256xf32>
    %15 = vector.shape_cast %14 : vector<256xf32> to vector<256x1xf32>
    %16 = vector.broadcast %15 : vector<256x1xf32> to vector<256x256xf32>
    %17 = arith.subf %13, %16 : vector<256x256xf32>
    %18 = math.exp %17 : vector<256x256xf32>
    %19 = arith.truncf %18 : vector<256x256xf32> to vector<256x256xbf16>
    %c0_7 = arith.constant 0 : index
    %c0_8 = arith.constant 0 : index
    %20 = vector.load %arg9[%c0_7, %c0_8] : memref<32x256xbf16, #tpu.memory_space<vmem>>, vector<32x256xbf16>
    %cst_9 = arith.constant dense<0.000000e+00> : vector<32x256xf32>
    %21 = tpu.matmul %20, %19, %cst_9 {dimension_numbers = #tpu.dot_dimension_numbers<[1], [1], [0], [0], [0, 0, 1, 0], [], []>} : vector<32x256xbf16>, vector<256x256xbf16>, vector<32x256xf32> -> vector<32x256xf32>
    %cst_10 = arith.constant 1.000000e+00 : bf16
    %22 = vector.broadcast %cst_10 : bf16 to vector<1x256xbf16>
    %cst_11 = arith.constant dense<0.000000e+00> : vector<1x256xf32>
    %23 = tpu.matmul %22, %19, %cst_11 {dimension_numbers = #tpu.dot_dimension_numbers<[1], [1], [0], [0], [0, 0, 1, 0], [], []>} : vector<1x256xbf16>, vector<256x256xbf16>, vector<1x256xf32> -> vector<1x256xf32>
    %c0_12 = arith.constant 0 : index
    %c0_13 = arith.constant 0 : index
    %24 = memref.load %arg2[%c0_12, %c0_13] : memref<1x1xf32, #tpu.memory_space<smem>>
    %25 = tpu.reciprocal %23 {approx = true} : vector<1x256xf32> -> vector<1x256xf32>
    %26 = vector.broadcast %24 : f32 to vector<1x256xf32>
    %27 = arith.mulf %26, %25 : vector<1x256xf32>
    %28 = vector.broadcast %27 : vector<1x256xf32> to vector<32x256xf32>
    %29 = arith.mulf %21, %28 : vector<32x256xf32>
    %30 = arith.addf %29, %7 : vector<32x256xf32>
    %c0_14 = arith.constant 0 : index
    %c0_15 = arith.constant 0 : index
    %c0_16 = arith.constant 0 : index
    %31 = vector.load %arg8[%c0_14, %c0_15, %c0_16] : memref<1x32x256xf32, #tpu.memory_space<vmem>>, vector<1x32x256xf32>
    %32 = vector.shape_cast %31 : vector<1x32x256xf32> to vector<32x256xf32>
    %33 = vector.shape_cast %30 : vector<32x256xf32> to vector<1x32x256xf32>
    tpu.vector_store %arg8[%c0_14, %c0_15, %c0_16], %33 {strides = array<i32>} : memref<1x32x256xf32, #tpu.memory_space<vmem>>, vector<1x32x256xf32>,
    return
  }
  func.func @transform_0(%arg0: i32, %arg1: i32) -> (i32, i32) {
    %c0_i32 = arith.constant 0 : i32
    %c0_i32_0 = arith.constant 0 : i32
    %c0_i32_1 = arith.constant 0 : i32
    return %c0_i32, %c0_i32_0 : i32, i32
  }
  func.func @transform_1(%arg0: i32, %arg1: i32) -> (i32, i32, i32) {
    %c0_i32 = arith.constant 0 : i32
    %c0_i32_0 = arith.constant 0 : i32
    %c0_i32_1 = arith.constant 0 : i32
    return %arg0, %c0_i32, %c0_i32_0 : i32, i32, i32
  }
  func.func @transform_2(%arg0: i32, %arg1: i32) -> (i32, i32) {
    %c0_i32 = arith.constant 0 : i32
    %c0_i32_0 = arith.constant 0 : i32
    %c0_i32_1 = arith.constant 0 : i32
    return %c0_i32, %c0_i32_0 : i32, i32
  }
  func.func @transform_3(%arg0: i32, %arg1: i32) -> (i32, i32) {
    %c0_i32 = arith.constant 0 : i32
    %c0_i32_0 = arith.constant 0 : i32
    %c0_i32_1 = arith.constant 0 : i32
    return %c0_i32, %c0_i32_0 : i32, i32
  }
  func.func @transform_4(%arg0: i32, %arg1: i32) -> (i32, i32) {
    %c0_i32 = arith.constant 0 : i32
    %c0_i32_0 = arith.constant 0 : i32
    %c0_i32_1 = arith.constant 0 : i32
    return %c0_i32, %c0_i32_0 : i32, i32
  }
  func.func @transform_5(%arg0: i32, %arg1: i32) -> (i32, i32) {
    %c0_i32 = arith.constant 0 : i32
    %c0_i32_0 = arith.constant 0 : i32
    %c0_i32_1 = arith.constant 0 : i32
    return %c0_i32, %c0_i32_0 : i32, i32
  }
  func.func @transform_6(%arg0: i32, %arg1: i32) -> (i32, i32, i32) {
    %c0_i32 = arith.constant 0 : i32
    %c0_i32_0 = arith.constant 0 : i32
    return %arg0, %c0_i32, %arg1 : i32, i32, i32
  }
}

</mosaic_0001>

<bundles_post_ra>
// kernel: tpu_custom_call.1
= control target key start
LH: loop header
LB: loop body
LE: loop exit
PB: predicated region body
PF: predicated region fallthrough
CT: control target
= control target key end

     0   :  { %s2476_s0 = inlined_call_operand.<no memory space> [shape: f32[1,1], index: 0, kind: input, shape index: {}]   ;;  %s2477_s1 = inlined_call_operand.hbm [shape: f32[2,32,256], index: 1, kind: input, shape index: {}]   ;;  %s2478_s2 = inlined_call_operand.vmem [shape: bf16[32,32], index: 2, kind: input, shape index: {}]   ;;  %s2479_s3 = inlined_call_operand.vmem [shape: bf16[1,32], index: 3, kind: input, shape index: {}]   ;;  %s2480_s4 = inlined_call_operand.vmem [shape: bf16[32,32], index: 4, kind: input, shape index: {}]   ;;  %s2481_s5 = inlined_call_operand.vmem [shape: f32[32,1], index: 5, kind: input, shape index: {}]   ;;  %s2482_s6 = inlined_call_operand.hbm [shape: f32[2,32,256], index: 6, kind: output, shape index: {}]  }
   0x1   :  { %11 = sst [smem:[#allocation5]] %s2476_s0 }
   0x2   :  { %12 = vsyncpa [#allocation7], 0 }
   0x3   :  { %14 = vsyncpa [#allocation7 + $0x1], 0 }
   0x4   :  { %15 = vsyncpa [#allocation8], 0 }
   0x5   :  { %17 = vsyncpa [#allocation8 + $0x1], 0  ;;  %s1842_s23 = smov 0   ;;  %s1844_s24 = smov 0  }
   0x6   :  { %s1846_s25 = smov 0   ;;  %s1848_s26 = smov 0  }
   0x7   :  { %s1850_s27 = smov 0   ;;  %s1852_s28 = smov 0  }
   0x8 LB: > { %s1424_s0 = sadd.s32 4294967295, %s1793_s28   ;;  %s1425_s29 = sadd.s32 4294967294, %s1793_s28   ;;  %s1793_s28 = sphi %s1852_s28, %s23_s28   ;;  %s1789_s27 = sphi %s1850_s27, %s2562_s27   ;;  %s1785_s26 = sphi %s1848_s26, %s2561_s26   ;;  %s1781_s25 = sphi %s1846_s25, %s2560_s25   ;;  %s1777_s24 = sphi %s1844_s24, %s2559_s24   ;;  %s1773_s23 = sphi %s1842_s23, %s2558_s23  }
   0x9   : > { %s35_s30 = sadd.s32 1, %s1789_s27  ;;  %s63_s7 = sadd.s32 1, %s1781_s25 }
   0xa   : > { %p37_p0 = scmp.ge.s32.totalorder %s35_s30, 2  ;;  %p70_p1 = scmp.ne.s32.totalorder %s1781_s25, %s1777_s24 }
   0xb   : > { %p71_p2 = scmp.eq.s32.totalorder %s1793_s28, 0  ;;  %p76_p3 = scmp.ne.s32.totalorder %s1777_s24, %s1773_s23 }
   0xc   : > { %s2564_s30 = smov (%p37_p0, %s35_s30), 0  ;;  %p77_p5 = scmp.eq.s32.totalorder %s1424_s0, 0 }
   0xd   : > { %p1883_p4 = por %p71_p2, %p70_p1  ;;  %s60_s9 = ssub.s32 %s1789_s27, %s2564_s30 }
   0xe   : > { %p186_p6 = scmp.eq.s32.totalorder %s1424_s0, 1  ;;  %p61_p7 = scmp.eq.s32.totalorder %s60_s9, 0 }
   0xf   : > { %p1889_p8 = por %p77_p5, %p76_p3  ;;  %p192_p10 = scmp.eq.s32.totalorder %s1425_s29, 1 }
  0x10   : > { %p1893_p9 = por %p186_p6, %p70_p1  ;;  %p1478_p13 = scmp.lt.s32.totalorder %s1793_s28, 2 }
  0x11   : > { %s1898_s12 = scalar_select %p61_p7, %s1781_s25, %s63_s7  }
  0x12   : > { %s2503_s11 = scalar_select %p1893_p9, 1, 0 }
  0x13   : > { %p1900_p11 = por %p192_p10, %p76_p3  ;;  %s227_s14 = sand.u32 1, %s1781_s25  }
  0x14   : > { %s1428_s15 = sshll.u32 %s227_s14, 6  ;;  %s1464_s16 = sshll.u32 %s1789_s27, 10 }
  0x15   : > { %s2504_s13 = scalar_select %p1900_p11, 1, 0 }
  0x16   : > { %s1911_s19 = scalar_lea.hbm %s2477_s1, %s1464_s16  ;;  %s231_s20 = scalar_lea.vmem [#allocation6], %s1428_s15 }
  0x17   : > { %s238_s21 = sshll.u32 %s231_s20, 4  ;;  %p1917_p0 = pnand %p1478_p13, %p1883_p4  ;;  %s1913_s21 = int_to_ptr.vmem [resolvable:$true] %s238_s21 }
  0x18   : > { %s1922_s0 = scalar_lea.sflag [#allocation7], %s227_s14  ;;  %s1681_s29 = scalar_lea.hbm %s1911_s19, 1024 }
  0x19   : > { %p1682_p2 = scmp.ne.s32.totalorder %s1911_s19, %s1681_s29  ;;  %p1683_p3 = pneg %p1917_p0 }
  0x1a   : > { %s1686_s8 = scalar_lea.hbm %s2477_s1, 2048  ;;  %p1687_p4 = scmp.lt.u32.totalorder %s1911_s19, %s2477_s1 }
  0x1b   : > { %p1684_p5 = pnand %p1683_p3, %p1682_p2  ;;  %p1688_p7 = scmp.lt.u32.totalorder %s1686_s8, %s1681_s29 }
  0x1c   : > { %p1690_p13 = scmp.lt.u32.totalorder %s1681_s29, %s1911_s19 }
  0x1d   : > { %p1685_p6 = pneg %p1684_p5  ;;  %p1689_p10 = por %p1688_p7, %p1687_p4 }
  0x1f   : > { %p1691_p12 = por %p1690_p13, %p1689_p10 }
  0x21   : > { %p1692_p1 = pnand %p1691_p12, %p1685_p6 }
  0x23   : > { %1695 = shalt.err (!%p1692_p1)
}
  0x24   : > { %s1696_s14 = scalar_lea.vmem %s1913_s21, 1024  ;;  %s1795_s17 = smov [#allocation6]  }
  0x25   : > { %p1697_p2 = scmp.ne.s32.totalorder %s1913_s21, %s1696_s14  ;;  %s1701_s18 = sshll.u32 %s1795_s17, 4  ;;  %s1702_s18 = int_to_ptr.vmem [resolvable:$false] %s1701_s18 }
  0x26   : > { %s1703_s20 = scalar_lea.vmem %s1702_s18, 2048  ;;  %p1704_p9 = scmp.lt.s32.totalorder %s1913_s21, %s1702_s18 }
  0x27   : > { %p1699_p5 = pnand %p1697_p2, %p1683_p3  ;;  %p1705_p4 = scmp.lt.s32.totalorder %s1703_s20, %s1696_s14 }
  0x29   : > { %p1700_p11 = pneg %p1699_p5  ;;  %p1706_p7 = por %p1705_p4, %p1704_p9 }
  0x2b   : > { %p1707_p10 = pnand %p1706_p7, %p1700_p11 }
  0x2d   : > { %1710 = shalt.err (!%p1707_p10)
}
  0x2e   : > { %s1796_s29 = smov 256   ;;  %s1797_s7 = smov 16  }
  0x2f   : > { %1473 = dma.hbm_to_vmem [thread:$0]  (!%p1917_p0), %s1911_s19, 1024, %s1913_s21, %s1922_s0, %s1796_s29, %s1796_s29, %s1797_s7  }
  0x30   : > { %p246_p12 = scmp.lt.s32.totalorder %s1793_s28, 3  ;;  %p2506_p1 = scmp.ge.s32.totalorder %s1793_s28, 1 }
  0x32   : > { %p247_p3 = pnand %p2506_p1, %p246_p12 }
  0x34   : > { %250 = sbr.rel (%p247_p3) target bundleno = 1104 (0x450), region = 44 }
  0x3b   : > { %s1954_s9 = sand.u32 1, %s1777_s24  }
  0x3c   : > { %s1432_s8 = sshll.u32 %s1954_s9, 6  ;;  %s253_s15 = scalar_lea.sflag [#allocation7], %s1954_s9 }
  0x3d   : > { %s1960_s16 = scalar_lea.vmem [#allocation6], %s1432_s8 }
  0x3e   : > { %1764 = dma.done.wait (%p1889_p8), %s253_s15, 1024  }
  0x3f   : > { %1766 = vsyncadd (%p1889_p8), %s253_s15, 4294966272  ;;  %v1798_v0 = vmov 0   ;;  %v293_v1 = vld [vmem:[%s1960_s16 + $0x8] sm:$0xff]  ;;  %v295_v2 = vld [vmem:[%s1960_s16 + $0x18] sm:$0xff]  ;;  %vm342_vm0 = vcmask 261120   ;;  %v542_v48 = vlaneseq  ;;  %s1284_s17 = sld [smem:[#allocation5]] }
  0x40   : > { %462 = vmatprep.mubr.bf16.mxu1 %v1798_v0  ;;  %381 = vmatprep.mubr.bf16.mxu0 %v1798_v0  ;;  %v292_v3 = vld [vmem:[%s1960_s16] sm:$0xff]  ;;  %v301_v4 = vpack.c.bf16 %v295_v2, %v293_v1  ;;  %v294_v5 = vld [vmem:[%s1960_s16 + $0x10] sm:$0xff]  ;;  %v297_v6 = vld [vmem:[%s1960_s16 + $0x28] sm:$0xff]  ;;  %v1799_v46 = vmov 1966171168   ;;  %s2401_s18 = scalar_lea.vmem [#allocation9], %s1432_s8 }
  0x41   : > { %v299_v7 = vld [vmem:[%s1960_s16 + $0x38] sm:$0xff]  ;;  %v300_v8 = vpack.c.bf16 %v294_v5, %v292_v3  ;;  %v296_v10 = vld [vmem:[%s1960_s16 + $0x20] sm:$0xff]  ;;  %v298_v11 = vld [vmem:[%s1960_s16 + $0x30] sm:$0xff]  ;;  %v540_v47 = vunpack.c.l.s4 %v1799_v46  ;;  %v543_v51 = vshrl.u32 %v542_v48, 7  ;;  %vm556_vm1 = vcmp.lt.s32.totalorder %v542_v48, 256  ;;  %s1338_s20 = sshll.u32 %s2401_s18, 4  ;;  %s2406_s20 = int_to_ptr.vmem [resolvable:$true] %s1338_s20 }
  0x42   : > { %v303_v9 = vpack.c.bf16 %v299_v7, %v297_v6  ;;  %430 = vmatprep.subr.bf16.mxu1 %v301_v4  ;;  %349 = vmatprep.subr.bf16.mxu0 %v301_v4  ;;  %v302_v12 = vpack.c.bf16 %v298_v11, %v296_v10  ;;  %v1537_v13 = vld [vmem:[%s2478_s2] sm:$0xff]   ;;  %v1538_v15 = vld [vmem:[%s2478_s2 + $0x8] sm:$0xff]   ;;  %s1465_s29 = sshll.u32 %s1785_s26, 10  ;;  %s1323_s15 = scalar_lea.sflag [#allocation8], %s1954_s9 }
  0x43   : > { %431 = vmatpush1.bf16.msra.mxu1 %v300_v8  ;;  %592 = vxpose.xlu0.c.b16.start [1/2] (short) %v300_v8, 128  ;;  %v1539_v14 = vld [vmem:[%s2480_s4] sm:$0xff]   ;;  %v1540_v16 = vld [vmem:[%s2480_s4 + $0x8] sm:$0xff]   ;;  %v541_v50 = vunpack.c.0.s8 %v540_v47  ;;  %v588_v6 = vsub.s32 1, %v543_v51  ;;  %s2419_s7 = scalar_lea.hbm %s2482_s6, %s1465_s29  ;;  %s1711_s10 = scalar_lea.vmem %s2406_s20, 1024 }
  0x44   : > { %432 = vmatprep.subr.bf16.mxu1 %v303_v9  ;;  %608 = vxpose.xlu1.c.b16.start [1/2] (short) %v301_v4, 128  ;;  %v491_v17 = vld [vmem:[%s2479_s3] sm:$0x1]  ;;  %p1712_p8 = scmp.ne.s32.totalorder %s2406_s20, %s1711_s10  ;;  %p2555_p9 = scmp.ne.s32.totalorder %s2503_s11, 0 }
  0x45   : > { %350 = vmatpush1.bf16.msra.mxu0 %v300_v8  ;;  %v544_v53 = vsub.s32 %v541_v50, %v543_v51 }
  0x46   : > { %351 = vmatprep.subr.bf16.mxu0 %v303_v9  ;;  %p1713_p11 = pnand %p1712_p8, %p2555_p9 }
  0x47   : > { %433 = vmatpush1.bf16.msra.mxu1 %v302_v12  ;;  %593 = vxpose.xlu0.c.b16.end [2/2] (short) %v302_v12, 128 }
  0x48   : > { %609 = vxpose.xlu1.c.b16.end [2/2] (short) %v303_v9, 128  ;;  %p1714_p0 = pneg %p1713_p11 }
  0x49   : > { %352 = vmatpush1.bf16.msra.mxu0 %v302_v12 }
  0x4a   : > { %1440 = vmatmul.mubr.msk.bf16.vlgmr.msra.gmra.mrb[0].mxu1 %vm342_vm0, %v1537_v13  ;;  %495 = vmatprep.subr.bf16.mxu0 %v301_v4  ;;  %v2049_v4 = vsub.s32 0, %v543_v51 }
  0x4b   : > { %472 = vmatprep.mubr.bf16.mxu1 %v1798_v0 }
  0x4c   : > { %1436 = vmatmul.mubr.msk.bf16.vlgmr.msra.gmra.mrb[0].mxu0 %vm342_vm0, %v1539_v14  ;;  %1536 = vset.pattern.permute.xlu1 %v1798_v0  ;;  %2515 = vst [vmem:[#allocation20_spill] sm:$0xff] %v2049_v4 }
  0x4d   : > { %391 = vmatprep.mubr.bf16.mxu0 %v1798_v0  ;;  %496 = vmatpush1.bf16.msra.mxu0 %v300_v8 }
  0x4e   : > { %497 = vmatprep.subr.bf16.mxu0 %v303_v9 }
  0x50   : > { %1535 = vset.pattern.permute.xlu0 %v1798_v0 }
  0x51   : > { %498 = vmatpush1.bf16.msra.mxu0 %v302_v12 }
  0x52   : > { %1441 = vmatmul.mubr.msk.bf16.gmra.mrb[4].mxu1 %vm342_vm0, %v1538_v15 }
  0x53   : > { %705 = vmatprep.mubr.bf16.mxu1 %v1798_v0 }
  0x54   : > { %1437 = vmatmul.mubr.msk.bf16.gmra.mrb[4].mxu0 %vm342_vm0, %v1540_v16 }
  0x55   : > { %527 = vmatprep.mubr.bf16.mxu0 %v1798_v0 }
  0x5c   : > { %1442 = vmatmul.mubr.msk.bf16.vlgmr.msra.gmra.mrb[8].mxu0 %vm342_vm0, %v491_v17 }
  0xa9   : > { %v600_v35 = vpop.trf.xlu0 }
  0xaa   : > { %v616_v49 = vpop.trf.xlu1 }
  0xad   : > { %v601_v39 = vpop.trf.xlu0 }
  0xae   : > { %v617_v57 = vpop.trf.xlu1 }
  0xb1   : > { %v602_v40 = vpop.trf.xlu0 }
  0xb2   : > { %v618_v61 = vpop.trf.xlu1 }
  0xb5   : > { %v603_v41 = vpop.trf.xlu0 }
  0xb6   : > { %v619_v62 = vpop.trf.xlu1 }
  0xb9   : > { %v604_v42 = vpop.trf.xlu0 }
  0xba   : > { %v620_v63 = vpop.trf.xlu1 }
  0xbd   : > { %v605_v43 = vpop.trf.xlu0 }
  0xbe   : > { %v621_v1 = vpop.trf.xlu1 }
  0xc1   : > { %v606_v44 = vpop.trf.xlu0 }
  0xc2   : > { %v622_v2 = vpop.trf.xlu1 }
  0xc5   : > { %v607_v45 = vpop.trf.xlu0 }
  0xc6   : > { %v623_v3 = vpop.trf.xlu1 }
 0x11d   : > { %v464_v18 = vpop.f32.mrb[0].mxu1 }
 0x11e   : > { %v466_v19 = vpop.f32.mrb[1].mxu1 }
 0x11f   : > { %v468_v20 = vpop.f32.mrb[2].mxu1  ;;  %v2002_v27 = vpop.f32.mrb[0].mxu0 }
 0x120   : > { %v483_v21 = vpack.c.bf16 %v468_v20, %v464_v18  ;;  %v470_v22 = vpop.f32.mrb[3].mxu1  ;;  %2507 = vst [vmem:[#allocation12_spill] sm:$0xff] %v2002_v27  ;;  %v2004_v30 = vpop.f32.mrb[1].mxu0 }
 0x121   : > { %v484_v23 = vpack.c.bf16 %v470_v22, %v466_v19  ;;  %2508 = vst [vmem:[#allocation13_spill] sm:$0xff] %v2004_v30  ;;  %v2006_v32 = vpop.f32.mrb[2].mxu0 }
 0x122   : > { %2509 = vst [vmem:[#allocation14_spill] sm:$0xff] %v2006_v32  ;;  %v2008_v33 = vpop.f32.mrb[3].mxu0 }
 0x123   : > { %673 = vmatprep.subr.bf16.mxu1 %v484_v23  ;;  %2510 = vst [vmem:[#allocation15_spill] sm:$0xff] %v2008_v33 }
 0x124   : > { %674 = vmatpush1.bf16.msra.mxu1 %v483_v21 }
 0x125   : > { %v474_v24 = vpop.f32.mrb[4].mxu1 }
 0x126   : > { %v476_v25 = vpop.f32.mrb[5].mxu1 }
 0x127   : > { %v478_v26 = vpop.f32.mrb[6].mxu1  ;;  %v2010_v34 = vpop.f32.mrb[4].mxu0 }
 0x128   : > { %v485_v28 = vpack.c.bf16 %v478_v26, %v474_v24  ;;  %v480_v29 = vpop.f32.mrb[7].mxu1  ;;  %2511 = vst [vmem:[#allocation16_spill] sm:$0xff] %v2010_v34  ;;  %v2012_v36 = vpop.f32.mrb[5].mxu0 }
 0x129   : > { %v486_v31 = vpack.c.bf16 %v480_v29, %v476_v25  ;;  %2512 = vst [vmem:[#allocation17_spill] sm:$0xff] %v2012_v36  ;;  %v2014_v37 = vpop.f32.mrb[6].mxu0 }
 0x12a   : > { %2513 = vst [vmem:[#allocation18_spill] sm:$0xff] %v2014_v37  ;;  %v2016_v38 = vpop.f32.mrb[7].mxu0 }
 0x12b   : > { %675 = vmatprep.subr.bf16.mxu1 %v486_v31  ;;  %2514 = vst [vmem:[#allocation19_spill] sm:$0xff] %v2016_v38 }
 0x12c   : > { %676 = vmatpush1.bf16.msra.mxu1 %v485_v28 }
 0x12f   : > { %1443 = vmatmul.mubr.msk.bf16.vlgmr.msra.gmra.mrb[8].mxu1 %vm342_vm0, %v600_v35  ;;  %v529_v52 = vpop.f32.mrb[8].mxu0 }
 0x130   : > { %715 = vmatprep.mubr.bf16.mxu1 %v1798_v0  ;;  %v531_v54 = vpop.f32.mrb[9].mxu0 }
 0x131   : > { %v538_v55 = vcombine.low %v529_v52, %v531_v54  ;;  %v533_v56 = vpop.f32.mrb[10].mxu0 }
 0x132   : > { %v534_v58 = vpop.f32.mrb[11].mxu0 }
 0x133   : > { %v545_v59 = vrot.slane %v538_v55, %v544_v53 }
 0x135   : > { %v552_v60 = vrot.slane %v545_v59, %v544_v53 }
 0x137   : > { %1444 = vmatmul.mubr.msk.bf16.gmra.mrb[12].mxu1 %vm342_vm0, %v601_v39  ;;  %558 = vst.msk [vmem:[#allocation4] sm:$0x3] %vm556_vm1, %v552_v60 }
 0x138   : > { %725 = vmatprep.mubr.bf16.mxu1 %v1798_v0 }
 0x13e   : > { %v580_v5 = vld [vmem:[#allocation4] sm:$0x3] }
 0x13f   : > { %1445 = vmatmul.mubr.msk.bf16.gmra.mrb[16].mxu1 %vm342_vm0, %v602_v40  ;;  %v2052_v7 = vrot.slane %v580_v5, %v2049_v4  ;;  %v2054_v8 = vrot.slane %v580_v5, %v588_v6 }
 0x140   : > { %735 = vmatprep.mubr.bf16.mxu1 %v1798_v0 }
 0x147   : > { %1446 = vmatmul.mubr.msk.bf16.gmra.mrb[20].mxu1 %vm342_vm0, %v603_v41 }
 0x148   : > { %745 = vmatprep.mubr.bf16.mxu1 %v1798_v0 }
 0x14f   : > { %1447 = vmatmul.mubr.msk.bf16.gmra.mrb[24].mxu1 %vm342_vm0, %v604_v42 }
 0x150   : > { %755 = vmatprep.mubr.bf16.mxu1 %v1798_v0 }
 0x157   : > { %1448 = vmatmul.mubr.msk.bf16.gmra.mrb[28].mxu1 %vm342_vm0, %v605_v43 }
 0x158   : > { %765 = vmatprep.mubr.bf16.mxu1 %v1798_v0 }
 0x15f   : > { %1449 = vmatmul.mubr.msk.bf16.gmra.mrb[32].mxu1 %vm342_vm0, %v606_v44 }
 0x160   : > { %775 = vmatprep.mubr.bf16.mxu1 %v1798_v0 }
 0x167   : > { %1450 = vmatmul.mubr.msk.bf16.gmra.mrb[36].mxu1 %vm342_vm0, %v607_v45 }
 0x168   : > { %785 = vmatprep.mubr.bf16.mxu1 %v1798_v0 }
 0x16f   : > { %1451 = vmatmul.mubr.msk.bf16.gmra.mrb[40].mxu1 %vm342_vm0, %v616_v49 }
 0x170   : > { %795 = vmatprep.mubr.bf16.mxu1 %v1798_v0 }
 0x177   : > { %1452 = vmatmul.mubr.msk.bf16.gmra.mrb[44].mxu1 %vm342_vm0, %v617_v57 }
 0x178   : > { %805 = vmatprep.mubr.bf16.mxu1 %v1798_v0 }
 0x17f   : > { %1453 = vmatmul.mubr.msk.bf16.gmra.mrb[48].mxu1 %vm342_vm0, %v618_v61 }
 0x180   : > { %815 = vmatprep.mubr.bf16.mxu1 %v1798_v0 }
 0x187   : > { %1454 = vmatmul.mubr.msk.bf16.gmra.mrb[52].mxu1 %vm342_vm0, %v619_v62 }
 0x188   : > { %825 = vmatprep.mubr.bf16.mxu1 %v1798_v0 }
 0x18f   : > { %1455 = vmatmul.mubr.msk.bf16.gmra.mrb[56].mxu1 %vm342_vm0, %v620_v63 }
 0x190   : > { %835 = vmatprep.mubr.bf16.mxu1 %v1798_v0 }
 0x197   : > { %1456 = vmatmul.mubr.msk.bf16.gmra.mrb[60].mxu1 %vm342_vm0, %v621_v1 }
 0x198   : > { %845 = vmatprep.mubr.bf16.mxu1 %v1798_v0 }
 0x19f   : > { %1457 = vmatmul.mubr.msk.bf16.gmra.mrb[64].mxu1 %vm342_vm0, %v622_v2 }
 0x1a0   : > { %855 = vmatprep.mubr.bf16.mxu1 %v1798_v0 }
 0x1a7   : > { %1458 = vmatmul.mubr.msk.bf16.gmra.mrb[68].mxu1 %vm342_vm0, %v623_v3 }
 0x202   : > { %v707_v9 = vpop.f32.mrb[8].mxu1 }
 0x203   : > { %v2057_v10 = vadd.f32 %v707_v9, %v2052_v7  ;;  %v709_v11 = vpop.f32.mrb[9].mxu1 }
 0x204   : > { %v2060_v12 = vadd.f32 %v709_v11, %v2054_v8  ;;  %v711_v0 = vpop.f32.mrb[10].mxu1 }
 0x205   : > { %v2063_v13 = vadd.f32 %v711_v0, %v2052_v7  ;;  %v713_v14 = vpop.f32.mrb[11].mxu1 }
 0x206   : > { %v2066_v15 = vadd.f32 %v713_v14, %v2054_v8  ;;  %v866_v16 = vmax.f32 %v2057_v10, %v2060_v12 }
 0x208   : > { %867 = vmax.xlane.f32.xlu0 %v866_v16  ;;  %v869_v17 = vmax.f32 %v2063_v13, %v2066_v15 }
 0x20a   : > { %v717_v18 = vpop.f32.mrb[12].mxu1  ;;  %870 = vmax.xlane.f32.xlu1 %v869_v17 }
 0x20b   : > { %v2073_v19 = vadd.f32 %v717_v18, %v2052_v7  ;;  %v719_v20 = vpop.f32.mrb[13].mxu1 }
 0x20c   : > { %v2076_v21 = vadd.f32 %v719_v20, %v2054_v8  ;;  %v721_v22 = vpop.f32.mrb[14].mxu1 }
 0x20d   : > { %v2079_v23 = vadd.f32 %v721_v22, %v2052_v7  ;;  %v723_v24 = vpop.f32.mrb[15].mxu1 }
 0x20e   : > { %v2082_v25 = vadd.f32 %v723_v24, %v2054_v8  ;;  %v872_v26 = vmax.f32 %v2073_v19, %v2076_v21 }
 0x210   : > { %873 = vmax.xlane.f32.xlu0 %v872_v26  ;;  %v875_v28 = vmax.f32 %v2079_v23, %v2082_v25 }
 0x212   : > { %v727_v29 = vpop.f32.mrb[16].mxu1  ;;  %876 = vmax.xlane.f32.xlu1 %v875_v28 }
 0x213   : > { %v2089_v31 = vadd.f32 %v727_v29, %v2052_v7  ;;  %v729_v35 = vpop.f32.mrb[17].mxu1 }
 0x214   : > { %v2092_v39 = vadd.f32 %v729_v35, %v2054_v8  ;;  %v731_v40 = vpop.f32.mrb[18].mxu1 }
 0x215   : > { %v2095_v41 = vadd.f32 %v731_v40, %v2052_v7  ;;  %v733_v42 = vpop.f32.mrb[19].mxu1 }
 0x216   : > { %v2098_v43 = vadd.f32 %v733_v42, %v2054_v8  ;;  %v878_v44 = vmax.f32 %v2089_v31, %v2092_v39 }
 0x218   : > { %879 = vmax.xlane.f32.xlu0 %v878_v44  ;;  %v881_v45 = vmax.f32 %v2095_v41, %v2098_v43 }
 0x21a   : > { %v737_v46 = vpop.f32.mrb[20].mxu1  ;;  %882 = vmax.xlane.f32.xlu1 %v881_v45 }
 0x21b   : > { %v2105_v47 = vadd.f32 %v737_v46, %v2052_v7  ;;  %v739_v48 = vpop.f32.mrb[21].mxu1 }
 0x21c   : > { %v2108_v49 = vadd.f32 %v739_v48, %v2054_v8  ;;  %v741_v50 = vpop.f32.mrb[22].mxu1 }
 0x21d   : > { %v2111_v51 = vadd.f32 %v741_v50, %v2052_v7  ;;  %v743_v52 = vpop.f32.mrb[23].mxu1 }
 0x21e   : > { %v2114_v53 = vadd.f32 %v743_v52, %v2054_v8  ;;  %v884_v54 = vmax.f32 %v2105_v47, %v2108_v49 }
 0x220   : > { %885 = vmax.xlane.f32.xlu0 %v884_v54  ;;  %v887_v55 = vmax.f32 %v2111_v51, %v2114_v53 }
 0x222   : > { %v747_v56 = vpop.f32.mrb[24].mxu1  ;;  %888 = vmax.xlane.f32.xlu1 %v887_v55 }
 0x223   : > { %v2121_v57 = vadd.f32 %v747_v56, %v2052_v7  ;;  %v749_v58 = vpop.f32.mrb[25].mxu1 }
 0x224   : > { %v2124_v59 = vadd.f32 %v749_v58, %v2054_v8  ;;  %v751_v60 = vpop.f32.mrb[26].mxu1 }
 0x225   : > { %v2127_v61 = vadd.f32 %v751_v60, %v2052_v7  ;;  %v753_v62 = vpop.f32.mrb[27].mxu1 }
 0x226   : > { %v2130_v63 = vadd.f32 %v753_v62, %v2054_v8  ;;  %v890_v1 = vmax.f32 %v2121_v57, %v2124_v59 }
 0x228   : > { %891 = vmax.xlane.f32.xlu0 %v890_v1  ;;  %v893_v2 = vmax.f32 %v2127_v61, %v2130_v63 }
 0x22a   : > { %v757_v3 = vpop.f32.mrb[28].mxu1  ;;  %894 = vmax.xlane.f32.xlu1 %v893_v2 }
 0x22b   : > { %v2137_v5 = vadd.f32 %v757_v3, %v2052_v7  ;;  %v759_v6 = vpop.f32.mrb[29].mxu1 }
 0x22c   : > { %v2140_v9 = vadd.f32 %v759_v6, %v2054_v8  ;;  %v761_v11 = vpop.f32.mrb[30].mxu1 }
 0x22d   : > { %v2143_v0 = vadd.f32 %v761_v11, %v2052_v7  ;;  %v763_v14 = vpop.f32.mrb[31].mxu1 }
 0x22e   : > { %v2146_v16 = vadd.f32 %v763_v14, %v2054_v8  ;;  %v896_v17 = vmax.f32 %v2137_v5, %v2140_v9 }
 0x230   : > { %897 = vmax.xlane.f32.xlu0 %v896_v17  ;;  %v899_v18 = vmax.f32 %v2143_v0, %v2146_v16 }
 0x232   : > { %v767_v20 = vpop.f32.mrb[32].mxu1  ;;  %900 = vmax.xlane.f32.xlu1 %v899_v18 }
 0x233   : > { %v2153_v22 = vadd.f32 %v767_v20, %v2052_v7  ;;  %v769_v24 = vpop.f32.mrb[33].mxu1 }
 0x234   : > { %v2156_v26 = vadd.f32 %v769_v24, %v2054_v8  ;;  %v771_v28 = vpop.f32.mrb[34].mxu1 }
 0x235   : > { %v2159_v29 = vadd.f32 %v771_v28, %v2052_v7  ;;  %v773_v35 = vpop.f32.mrb[35].mxu1 }
 0x236   : > { %v2162_v40 = vadd.f32 %v773_v35, %v2054_v8  ;;  %v902_v42 = vmax.f32 %v2153_v22, %v2156_v26 }
 0x238   : > { %903 = vmax.xlane.f32.xlu0 %v902_v42  ;;  %v905_v44 = vmax.f32 %v2159_v29, %v2162_v40 }
 0x23a   : > { %v777_v45 = vpop.f32.mrb[36].mxu1  ;;  %906 = vmax.xlane.f32.xlu1 %v905_v44 }
 0x23b   : > { %v2169_v46 = vadd.f32 %v777_v45, %v2052_v7  ;;  %v779_v48 = vpop.f32.mrb[37].mxu1 }
 0x23c   : > { %v2172_v50 = vadd.f32 %v779_v48, %v2054_v8  ;;  %v781_v52 = vpop.f32.mrb[38].mxu1 }
 0x23d   : > { %v2175_v54 = vadd.f32 %v781_v52, %v2052_v7  ;;  %v783_v55 = vpop.f32.mrb[39].mxu1 }
 0x23e   : > { %v2178_v56 = vadd.f32 %v783_v55, %v2054_v8  ;;  %v908_v58 = vmax.f32 %v2169_v46, %v2172_v50 }
 0x240   : > { %909 = vmax.xlane.f32.xlu0 %v908_v58  ;;  %v911_v60 = vmax.f32 %v2175_v54, %v2178_v56 }
 0x242   : > { %v787_v62 = vpop.f32.mrb[40].mxu1  ;;  %912 = vmax.xlane.f32.xlu1 %v911_v60 }
 0x243   : > { %v2185_v1 = vadd.f32 %v787_v62, %v2052_v7  ;;  %v789_v2 = vpop.f32.mrb[41].mxu1 }
 0x244   : > { %v2188_v3 = vadd.f32 %v789_v2, %v2054_v8  ;;  %v791_v6 = vpop.f32.mrb[42].mxu1 }
 0x245   : > { %v2191_v11 = vadd.f32 %v791_v6, %v2052_v7  ;;  %v793_v14 = vpop.f32.mrb[43].mxu1 }
 0x246   : > { %v2194_v17 = vadd.f32 %v793_v14, %v2054_v8  ;;  %v914_v18 = vmax.f32 %v2185_v1, %v2188_v3 }
 0x248   : > { %915 = vmax.xlane.f32.xlu0 %v914_v18  ;;  %v917_v20 = vmax.f32 %v2191_v11, %v2194_v17 }
 0x24a   : > { %v797_v24 = vpop.f32.mrb[44].mxu1  ;;  %918 = vmax.xlane.f32.xlu1 %v917_v20 }
 0x24b   : > { %v2201_v28 = vadd.f32 %v797_v24, %v2052_v7  ;;  %v799_v35 = vpop.f32.mrb[45].mxu1 }
 0x24c   : > { %v2204_v42 = vadd.f32 %v799_v35, %v2054_v8  ;;  %v801_v44 = vpop.f32.mrb[46].mxu1 }
 0x24d   : > { %v2207_v45 = vadd.f32 %v801_v44, %v2052_v7  ;;  %v803_v48 = vpop.f32.mrb[47].mxu1 }
 0x24e   : > { %v2210_v52 = vadd.f32 %v803_v48, %v2054_v8  ;;  %v920_v55 = vmax.f32 %v2201_v28, %v2204_v42 }
 0x250   : > { %921 = vmax.xlane.f32.xlu0 %v920_v55  ;;  %v923_v58 = vmax.f32 %v2207_v45, %v2210_v52 }
 0x252   : > { %v807_v60 = vpop.f32.mrb[48].mxu1  ;;  %924 = vmax.xlane.f32.xlu1 %v923_v58 }
 0x253   : > { %v2217_v62 = vadd.f32 %v807_v60, %v2052_v7  ;;  %v809_v2 = vpop.f32.mrb[49].mxu1 }
 0x254   : > { %v2220_v6 = vadd.f32 %v809_v2, %v2054_v8  ;;  %v811_v14 = vpop.f32.mrb[50].mxu1 }
 0x255   : > { %v2223_v18 = vadd.f32 %v811_v14, %v2052_v7  ;;  %v813_v20 = vpop.f32.mrb[51].mxu1 }
 0x256   : > { %v2226_v24 = vadd.f32 %v813_v20, %v2054_v8  ;;  %v926_v35 = vmax.f32 %v2217_v62, %v2220_v6 }
 0x258   : > { %927 = vmax.xlane.f32.xlu0 %v926_v35  ;;  %v929_v44 = vmax.f32 %v2223_v18, %v2226_v24 }
 0x25a   : > { %v817_v48 = vpop.f32.mrb[52].mxu1  ;;  %930 = vmax.xlane.f32.xlu1 %v929_v44 }
 0x25b   : > { %v2233_v55 = vadd.f32 %v817_v48, %v2052_v7  ;;  %v819_v58 = vpop.f32.mrb[53].mxu1 }
 0x25c   : > { %v2236_v60 = vadd.f32 %v819_v58, %v2054_v8  ;;  %v821_v2 = vpop.f32.mrb[54].mxu1 }
 0x25d   : > { %v2239_v14 = vadd.f32 %v821_v2, %v2052_v7  ;;  %v823_v20 = vpop.f32.mrb[55].mxu1 }
 0x25e   : > { %v2242_v4 = vadd.f32 %v823_v20, %v2054_v8  ;;  %v932_v35 = vmax.f32 %v2233_v55, %v2236_v60 }
 0x260   : > { %2516 = vst [vmem:[#allocation21_spill] sm:$0xff] %v2242_v4  ;;  %933 = vmax.xlane.f32.xlu0 %v932_v35  ;;  %v935_v44 = vmax.f32 %v2239_v14, %v2242_v4 }
 0x262   : > { %v827_v48 = vpop.f32.mrb[56].mxu1  ;;  %936 = vmax.xlane.f32.xlu1 %v935_v44 }
 0x263   : > { %v2249_v58 = vadd.f32 %v827_v48, %v2052_v7  ;;  %v829_v38 = vpop.f32.mrb[57].mxu1 }
 0x264   : > { %v2252_v2 = vadd.f32 %v829_v38, %v2054_v8  ;;  %v831_v37 = vpop.f32.mrb[58].mxu1 }
 0x265   : > { %2517 = vst [vmem:[#allocation22_spill] sm:$0xff] %v2249_v58  ;;  %v2255_v20 = vadd.f32 %v831_v37, %v2052_v7  ;;  %v833_v36 = vpop.f32.mrb[59].mxu1 }
 0x266   : > { %2518 = vst [vmem:[#allocation23_spill] sm:$0xff] %v2252_v2  ;;  %v2258_v34 = vadd.f32 %v833_v36, %v2054_v8  ;;  %v938_v35 = vmax.f32 %v2249_v58, %v2252_v2 }
 0x267   : > { %2519 = vst [vmem:[#allocation24_spill] sm:$0xff] %v2255_v20 }
 0x268   : > { %2520 = vst [vmem:[#allocation25_spill] sm:$0xff] %v2258_v34  ;;  %939 = vmax.xlane.f32.xlu0 %v938_v35  ;;  %v941_v44 = vmax.f32 %v2255_v20, %v2258_v34 }
 0x26a   : > { %v837_v48 = vpop.f32.mrb[60].mxu1  ;;  %942 = vmax.xlane.f32.xlu1 %v941_v44 }
 0x26b   : > { %v2265_v38 = vadd.f32 %v837_v48, %v2052_v7  ;;  %v839_v30 = vpop.f32.mrb[61].mxu1 }
 0x26c   : > { %v2268_v37 = vadd.f32 %v839_v30, %v2054_v8  ;;  %v841_v27 = vpop.f32.mrb[62].mxu1 }
 0x26d   : > { %2521 = vst [vmem:[#allocation26_spill] sm:$0xff] %v2265_v38  ;;  %v2271_v36 = vadd.f32 %v841_v27, %v2052_v7  ;;  %v843_v33 = vpop.f32.mrb[63].mxu1 }
 0x26e   : > { %2522 = vst [vmem:[#allocation27_spill] sm:$0xff] %v2268_v37  ;;  %v2274_v32 = vadd.f32 %v843_v33, %v2054_v8  ;;  %v944_v35 = vmax.f32 %v2265_v38, %v2268_v37 }
 0x26f   : > { %2523 = vst [vmem:[#allocation28_spill] sm:$0xff] %v2271_v36 }
 0x270   : > { %2524 = vst [vmem:[#allocation29_spill] sm:$0xff] %v2274_v32  ;;  %945 = vmax.xlane.f32.xlu0 %v944_v35  ;;  %v947_v44 = vmax.f32 %v2271_v36, %v2274_v32 }
 0x272   : > { %v847_v48 = vpop.f32.mrb[64].mxu1  ;;  %948 = vmax.xlane.f32.xlu1 %v947_v44 }
 0x273   : > { %v2281_v30 = vadd.f32 %v847_v48, %v2052_v7  ;;  %v849_v34 = vpop.f32.mrb[65].mxu1 }
 0x274   : > { %v2284_v27 = vadd.f32 %v849_v34, %v2054_v8  ;;  %v851_v20 = vpop.f32.mrb[66].mxu1 }
 0x275   : > { %2525 = vst [vmem:[#allocation30_spill] sm:$0xff] %v2281_v30  ;;  %v2287_v33 = vadd.f32 %v851_v20, %v2052_v7  ;;  %v853_v2 = vpop.f32.mrb[67].mxu1 }
 0x276   : > { %2526 = vst [vmem:[#allocation31_spill] sm:$0xff] %v2284_v27  ;;  %v2290_v37 = vadd.f32 %v853_v2, %v2054_v8  ;;  %v950_v35 = vmax.f32 %v2281_v30, %v2284_v27 }
 0x277   : > { %2527 = vst [vmem:[#allocation32_spill] sm:$0xff] %v2287_v33 }
 0x278   : > { %2528 = vst [vmem:[#allocation33_spill] sm:$0xff] %v2290_v37  ;;  %951 = vmax.xlane.f32.xlu0 %v950_v35  ;;  %v953_v44 = vmax.f32 %v2287_v33, %v2290_v37  ;;  %v309_v35 = vld [vmem:[%s2481_s5 + $0x8] sm:$0xff] }
 0x27a   : > { %v857_v48 = vpop.f32.mrb[68].mxu1  ;;  %954 = vmax.xlane.f32.xlu1 %v953_v44  ;;  %v308_v44 = vld [vmem:[%s2481_s5] sm:$0xff] }
 0x27b   : > { %v2297_v34 = vadd.f32 %v857_v48, %v2052_v7  ;;  %v859_v32 = vpop.f32.mrb[69].mxu1 }
 0x27c   : > { %v2300_v20 = vadd.f32 %v859_v32, %v2054_v8  ;;  %v861_v36 = vpop.f32.mrb[70].mxu1 }
 0x27d   : > { %2529 = vst [vmem:[#allocation34_spill] sm:$0xff] %v2297_v34  ;;  %v863_v38 = vpop.f32.mrb[71].mxu1 }
 0x27e   : > { %2530 = vst [vmem:[#allocation35_spill] sm:$0xff] %v2300_v20  ;;  %v956_v2 = vmax.f32 %v2297_v34, %v2300_v20 }
 0x280   : > { %957 = vmax.xlane.f32.xlu0 %v956_v2 }
 0x28b   : > { %319 = vperm.xlu1 %1536, %v309_v35  }
 0x295   : > { %v868_v48 = vpop.xlane.xlu0 %867 }
 0x296   : > { %v962_v37 = vsub.f32 %v2057_v10, %v868_v48  ;;  %v963_v32 = vsub.f32 %v2060_v12, %v868_v48  ;;  %314 = vperm.xlu0 %1535, %v308_v44  }
 0x297   : > { %v871_v33 = vpop.xlane.xlu1 %870 }
 0x298   : > { %v1026_v27 = vmul.f32 1.442695, %v962_v37  ;;  %v964_v20 = vsub.f32 %v2063_v13, %v871_v33  ;;  %v965_v2 = vsub.f32 %v2066_v15, %v871_v33  ;;  %v1028_v34 = vmul.f32 1.442695, %v963_v32 }
 0x29a   : > { %v1030_v30 = vmul.f32 1.442695, %v964_v20  ;;  %v1032_v58 = vmul.f32 1.442695, %v965_v2  ;;  %1541 = vpow2.f32 %v1026_v27 }
 0x29c   : > { %1543 = vpow2.f32 %v1030_v30 }
 0x29d   : > { %1545 = vpow2.f32 %v1032_v58  ;;  %v874_v35 = vpop.xlane.xlu0 %873 }
 0x29e   : > { %1547 = vpow2.f32 %v1028_v34  ;;  %v966_v4 = vsub.f32 %v2073_v19, %v874_v35  ;;  %v967_v10 = vsub.f32 %v2076_v21, %v874_v35  ;;  %v2323_v35 = vadd.f32 %v861_v36, %v2052_v7 }
 0x29f   : > { %v877_v12 = vpop.xlane.xlu1 %876 }
 0x2a0   : > { %v1034_v44 = vmul.f32 1.442695, %v966_v4  ;;  %v968_v37 = vsub.f32 %v2079_v23, %v877_v12  ;;  %v969_v13 = vsub.f32 %v2082_v25, %v877_v12  ;;  %v1036_v48 = vmul.f32 1.442695, %v967_v10 }
 0x2a1   : > { %v2326_v10 = vadd.f32 %v863_v38, %v2054_v8 }
 0x2a2   : > { %v1038_v15 = vmul.f32 1.442695, %v968_v37  ;;  %v1040_v33 = vmul.f32 1.442695, %v969_v13  ;;  %1549 = vpow2.f32 %v1034_v44 }
 0x2a3   : > { %v959_v7 = vmax.f32 %v2323_v35, %v2326_v10 }
 0x2a4   : > { %1551 = vpow2.f32 %v1038_v15  ;;  %v1542_v27 = vpop.eup %1541 }
 0x2a5   : > { %1553 = vpow2.f32 %v1040_v33  ;;  %v880_v58 = vpop.xlane.xlu0 %879 }
 0x2a6   : > { %v1544_v30 = vpop.eup %1543  ;;  %1555 = vpow2.f32 %v1036_v48  ;;  %v970_v19 = vsub.f32 %v2089_v31, %v880_v58  ;;  %v971_v21 = vsub.f32 %v2092_v39, %v880_v58 }
 0x2a7   : > { %v1546_v34 = vpop.eup %1545  ;;  %v883_v4 = vpop.xlane.xlu1 %882  ;;  %v1154_v2 = vpack.c.bf16 %v1544_v30, %v1542_v27 }
 0x2a8   : > { %v1548_v20 = vpop.eup %1547  ;;  %v1042_v23 = vmul.f32 1.442695, %v970_v19  ;;  %v972_v25 = vsub.f32 %v2095_v41, %v883_v4  ;;  %v973_v32 = vsub.f32 %v2098_v43, %v883_v4  ;;  %v1044_v44 = vmul.f32 1.442695, %v971_v21 }
 0x2a9   : > { %v1155_v12 = vpack.c.bf16 %v1546_v34, %v1548_v20 }
 0x2aa   : > { %v1046_v31 = vmul.f32 1.442695, %v972_v25  ;;  %v1048_v37 = vmul.f32 1.442695, %v973_v32  ;;  %1557 = vpow2.f32 %v1042_v23 }
 0x2ab   : > { %1190 = vmatprep.subr.bf16.mxu0 %v1155_v12  ;;  %1243 = vmatprep.subr.bf16.mxu1 %v1155_v12 }
 0x2ac   : > { %1559 = vpow2.f32 %v1046_v31  ;;  %1191 = vmatpush1.bf16.xpose.msra.mxu0 %v1154_v2  ;;  %1244 = vmatpush1.bf16.xpose.msra.mxu1 %v1154_v2  ;;  %v1550_v39 = vpop.eup %1549 }
 0x2ad   : > { %1561 = vpow2.f32 %v1048_v37  ;;  %v886_v41 = vpop.xlane.xlu0 %885 }
 0x2ae   : > { %v1552_v43 = vpop.eup %1551  ;;  %1563 = vpow2.f32 %v1044_v44  ;;  %v974_v8 = vsub.f32 %v2105_v47, %v886_v41  ;;  %v975_v38 = vsub.f32 %v2108_v49, %v886_v41 }
 0x2af   : > { %v1554_v36 = vpop.eup %1553  ;;  %960 = vmax.xlane.f32.xlu1 %v959_v7  ;;  %v889_v13 = vpop.xlane.xlu1 %888  ;;  %v1156_v58 = vpack.c.bf16 %v1552_v43, %v1550_v39 }
 0x2b0   : > { %v1556_v48 = vpop.eup %1555  ;;  %v1050_v15 = vmul.f32 1.442695, %v974_v8  ;;  %v976_v33 = vsub.f32 %v2111_v51, %v889_v13  ;;  %v977_v27 = vsub.f32 %v2114_v53, %v889_v13  ;;  %v1052_v19 = vmul.f32 1.442695, %v975_v38 }
 0x2b1   : > { %v1157_v30 = vpack.c.bf16 %v1554_v36, %v1556_v48 }
 0x2b2   : > { %v1054_v21 = vmul.f32 1.442695, %v976_v33  ;;  %v1056_v34 = vmul.f32 1.442695, %v977_v27  ;;  %1565 = vpow2.f32 %v1050_v15 }
 0x2b3   : > { %1192 = vmatprep.subr.bf16.mxu0 %v1157_v30  ;;  %1245 = vmatprep.subr.bf16.mxu1 %v1157_v30 }
 0x2b4   : > { %1567 = vpow2.f32 %v1054_v21  ;;  %1193 = vmatpush1.bf16.xpose.msra.mxu0 %v1156_v58  ;;  %1246 = vmatpush1.bf16.xpose.msra.mxu1 %v1156_v58  ;;  %v1558_v47 = vpop.eup %1557  ;;  %v311_v58 = vld [vmem:[%s2481_s5 + $0x18] sm:$0xff] }
 0x2b5   : > { %1569 = vpow2.f32 %v1056_v34  ;;  %v892_v49 = vpop.xlane.xlu0 %891 }
 0x2b6   : > { %v1560_v4 = vpop.eup %1559  ;;  %1571 = vpow2.f32 %v1052_v19  ;;  %v978_v51 = vsub.f32 %v2121_v57, %v892_v49  ;;  %v979_v53 = vsub.f32 %v2124_v59, %v892_v49 }
 0x2b7   : > { %v1562_v20 = vpop.eup %1561  ;;  %v895_v23 = vpop.xlane.xlu1 %894  ;;  %v1158_v44 = vpack.c.bf16 %v1560_v4, %v1558_v47 }
 0x2b8   : > { %v1564_v25 = vpop.eup %1563  ;;  %v1058_v32 = vmul.f32 1.442695, %v978_v51  ;;  %v980_v2 = vsub.f32 %v2127_v61, %v895_v23  ;;  %v981_v12 = vsub.f32 %v2130_v63, %v895_v23  ;;  %v1060_v37 = vmul.f32 1.442695, %v979_v53  ;;  %v310_v61 = vld [vmem:[%s2481_s5 + $0x10] sm:$0xff] }
 0x2b9   : > { %v1159_v31 = vpack.c.bf16 %v1562_v20, %v1564_v25 }
 0x2ba   : > { %v1062_v39 = vmul.f32 1.442695, %v980_v2  ;;  %v1064_v41 = vmul.f32 1.442695, %v981_v12  ;;  %1573 = vpow2.f32 %v1058_v32 }
 0x2bb   : > { %1194 = vmatprep.subr.bf16.mxu0 %v1159_v31  ;;  %1247 = vmatprep.subr.bf16.mxu1 %v1159_v31 }
 0x2bc   : > { %1575 = vpow2.f32 %v1062_v39  ;;  %1195 = vmatpush1.bf16.xpose.msra.mxu0 %v1158_v44  ;;  %1248 = vmatpush1.bf16.xpose.msra.mxu1 %v1158_v44  ;;  %v1566_v57 = vpop.eup %1565 }
 0x2bd   : > { %1577 = vpow2.f32 %v1064_v41  ;;  %v898_v59 = vpop.xlane.xlu0 %897 }
 0x2be   : > { %v1568_v7 = vpop.eup %1567  ;;  %1579 = vpow2.f32 %v1060_v37  ;;  %v982_v63 = vsub.f32 %v2137_v5, %v898_v59  ;;  %v983_v43 = vsub.f32 %v2140_v9, %v898_v59 }
 0x2bf   : > { %v1570_v8 = vpop.eup %1569  ;;  %v901_v38 = vpop.xlane.xlu1 %900  ;;  %v1160_v33 = vpack.c.bf16 %v1568_v7, %v1566_v57 }
 0x2c0   : > { %v1572_v36 = vpop.eup %1571  ;;  %v1066_v13 = vmul.f32 1.442695, %v982_v63  ;;  %v984_v48 = vsub.f32 %v2143_v0, %v901_v38  ;;  %v985_v15 = vsub.f32 %v2146_v16, %v901_v38  ;;  %324 = vperm.xlu1 %1536, %v310_v61   ;;  %v1068_v30 = vmul.f32 1.442695, %v983_v43 }
 0x2c1   : > { %v1161_v27 = vpack.c.bf16 %v1570_v8, %v1572_v36  ;;  %v1800_v38 = vmov 1065369472  }
 0x2c2   : > { %v1070_v19 = vmul.f32 1.442695, %v984_v48  ;;  %v1072_v5 = vmul.f32 1.442695, %v985_v15  ;;  %1581 = vpow2.f32 %v1066_v13  ;;  %1275 = vmatprep.mubr.bf16.mxu1 %v1800_v38 }
 0x2c3   : > { %1196 = vmatprep.subr.bf16.mxu0 %v1161_v27  ;;  %1249 = vmatprep.subr.bf16.mxu1 %v1161_v27 }
 0x2c4   : > { %1583 = vpow2.f32 %v1070_v19  ;;  %1197 = vmatpush1.bf16.xpose.msra.mxu0 %v1160_v33  ;;  %1250 = vmatpush1.bf16.xpose.msra.mxu1 %v1160_v33  ;;  %v1574_v9 = vpop.eup %1573 }
 0x2c5   : > { %1585 = vpow2.f32 %v1072_v5  ;;  %329 = vperm.xlu1 %1536, %v311_v58   ;;  %v904_v0 = vpop.xlane.xlu0 %903 }
 0x2c6   : > { %v1576_v16 = vpop.eup %1575  ;;  %1587 = vpow2.f32 %v1068_v30  ;;  %v986_v21 = vsub.f32 %v2153_v22, %v904_v0  ;;  %v987_v34 = vsub.f32 %v2156_v26, %v904_v0 }
 0x2c7   : > { %v1578_v47 = vpop.eup %1577  ;;  %v907_v49 = vpop.xlane.xlu1 %906  ;;  %v1162_v23 = vpack.c.bf16 %v1576_v16, %v1574_v9 }
 0x2c8   : > { %v1580_v4 = vpop.eup %1579  ;;  %v1074_v51 = vmul.f32 1.442695, %v986_v21  ;;  %v988_v53 = vsub.f32 %v2159_v29, %v907_v49  ;;  %v989_v20 = vsub.f32 %v2162_v40, %v907_v49  ;;  %v1076_v32 = vmul.f32 1.442695, %v987_v34 }
 0x2c9   : > { %v1163_v25 = vpack.c.bf16 %v1578_v47, %v1580_v4 }
 0x2ca   : > { %v1078_v2 = vmul.f32 1.442695, %v988_v53  ;;  %v1080_v12 = vmul.f32 1.442695, %v989_v20  ;;  %1589 = vpow2.f32 %v1074_v51 }
 0x2cb   : > { %1198 = vmatprep.subr.bf16.mxu0 %v1163_v25  ;;  %1251 = vmatprep.subr.bf16.mxu1 %v1163_v25 }
 0x2cc   : > { %1591 = vpow2.f32 %v1078_v2  ;;  %1199 = vmatpush1.bf16.xpose.msra.mxu0 %v1162_v23  ;;  %1252 = vmatpush1.bf16.xpose.msra.mxu1 %v1162_v23  ;;  %v1582_v22 = vpop.eup %1581 }
 0x2cd   : > { %1593 = vpow2.f32 %v1080_v12  ;;  %v910_v26 = vpop.xlane.xlu0 %909 }
 0x2ce   : > { %v1584_v44 = vpop.eup %1583  ;;  %1595 = vpow2.f32 %v1076_v32  ;;  %v990_v29 = vsub.f32 %v2169_v46, %v910_v26  ;;  %v991_v40 = vsub.f32 %v2172_v50, %v910_v26 }
 0x2cf   : > { %v1586_v31 = vpop.eup %1585  ;;  %v913_v37 = vpop.xlane.xlu1 %912  ;;  %v1164_v61 = vpack.c.bf16 %v1584_v44, %v1582_v22 }
 0x2d0   : > { %v1588_v39 = vpop.eup %1587  ;;  %v1082_v41 = vmul.f32 1.442695, %v990_v29  ;;  %v992_v57 = vsub.f32 %v2175_v54, %v913_v37  ;;  %v993_v59 = vsub.f32 %v2178_v56, %v913_v37  ;;  %v1084_v63 = vmul.f32 1.442695, %v991_v40 }
 0x2d1   : > { %v1165_v7 = vpack.c.bf16 %v1586_v31, %v1588_v39 }
 0x2d2   : > { %v1086_v43 = vmul.f32 1.442695, %v992_v57  ;;  %v1088_v8 = vmul.f32 1.442695, %v993_v59  ;;  %1597 = vpow2.f32 %v1082_v41 }
 0x2d3   : > { %1200 = vmatprep.subr.bf16.mxu0 %v1165_v7  ;;  %1253 = vmatprep.subr.bf16.mxu1 %v1165_v7 }
 0x2d4   : > { %1599 = vpow2.f32 %v1086_v43  ;;  %1201 = vmatpush1.bf16.xpose.msra.mxu0 %v1164_v61  ;;  %1254 = vmatpush1.bf16.xpose.msra.mxu1 %v1164_v61  ;;  %v1590_v46 = vpop.eup %1589 }
 0x2d5   : > { %1601 = vpow2.f32 %v1088_v8  ;;  %v916_v50 = vpop.xlane.xlu0 %915 }
 0x2d6   : > { %v1592_v54 = vpop.eup %1591  ;;  %1603 = vpow2.f32 %v1084_v63  ;;  %v994_v56 = vsub.f32 %v2185_v1, %v916_v50  ;;  %v995_v36 = vsub.f32 %v2188_v3, %v916_v50 }
 0x2d7   : > { %v1594_v13 = vpop.eup %1593  ;;  %v919_v48 = vpop.xlane.xlu1 %918  ;;  %v1166_v30 = vpack.c.bf16 %v1592_v54, %v1590_v46  ;;  %v2531_v46 = vld [vmem:[#allocation21_spill] sm:$0xff] }
 0x2d8   : > { %v1596_v15 = vpop.eup %1595  ;;  %v1090_v33 = vmul.f32 1.442695, %v994_v56  ;;  %v996_v27 = vsub.f32 %v2191_v11, %v919_v48  ;;  %v997_v58 = vsub.f32 %v2194_v17, %v919_v48  ;;  %v1092_v5 = vmul.f32 1.442695, %v995_v36 }
 0x2d9   : > { %v1167_v19 = vpack.c.bf16 %v1594_v13, %v1596_v15 }
 0x2da   : > { %v1094_v9 = vmul.f32 1.442695, %v996_v27  ;;  %v1096_v0 = vmul.f32 1.442695, %v997_v58  ;;  %1605 = vpow2.f32 %v1090_v33  ;;  %v2532_v33 = vld [vmem:[#allocation22_spill] sm:$0xff]  ;;  %v2533_v27 = vld [vmem:[#allocation23_spill] sm:$0xff] }
 0x2db   : > { %1202 = vmatprep.subr.bf16.mxu0 %v1167_v19  ;;  %1255 = vmatprep.subr.bf16.mxu1 %v1167_v19 }
 0x2dc   : > { %1607 = vpow2.f32 %v1094_v9  ;;  %1203 = vmatpush1.bf16.xpose.msra.mxu0 %v1166_v30  ;;  %1256 = vmatpush1.bf16.xpose.msra.mxu1 %v1166_v30  ;;  %v1598_v1 = vpop.eup %1597 }
 0x2dd   : > { %1609 = vpow2.f32 %v1096_v0  ;;  %v922_v3 = vpop.xlane.xlu0 %921  ;;  %v2534_v0 = vld [vmem:[#allocation24_spill] sm:$0xff] }
 0x2de   : > { %v1600_v16 = vpop.eup %1599  ;;  %1611 = vpow2.f32 %v1092_v5  ;;  %v998_v11 = vsub.f32 %v2201_v28, %v922_v3  ;;  %v999_v17 = vsub.f32 %v2204_v42, %v922_v3  ;;  %v2535_v3 = vld [vmem:[#allocation25_spill] sm:$0xff] }
 0x2df   : > { %v1602_v21 = vpop.eup %1601  ;;  %v925_v34 = vpop.xlane.xlu1 %924  ;;  %v1168_v53 = vpack.c.bf16 %v1600_v16, %v1598_v1 }
 0x2e0   : > { %v1604_v47 = vpop.eup %1603  ;;  %v1098_v49 = vmul.f32 1.442695, %v998_v11  ;;  %v1000_v4 = vsub.f32 %v2207_v45, %v925_v34  ;;  %v1001_v51 = vsub.f32 %v2210_v52, %v925_v34  ;;  %v1100_v23 = vmul.f32 1.442695, %v999_v17 }
 0x2e1   : > { %v1169_v20 = vpack.c.bf16 %v1602_v21, %v1604_v47 }
 0x2e2   : > { %v1102_v25 = vmul.f32 1.442695, %v1000_v4  ;;  %v1104_v32 = vmul.f32 1.442695, %v1001_v51  ;;  %1613 = vpow2.f32 %v1098_v49 }
 0x2e3   : > { %1204 = vmatprep.subr.bf16.mxu0 %v1169_v20  ;;  %1257 = vmatprep.subr.bf16.mxu1 %v1169_v20 }
 0x2e4   : > { %1615 = vpow2.f32 %v1102_v25  ;;  %1205 = vmatpush1.bf16.xpose.msra.mxu0 %v1168_v53  ;;  %1258 = vmatpush1.bf16.xpose.msra.mxu1 %v1168_v53  ;;  %v1606_v28 = vpop.eup %1605  ;;  %v2536_v53 = vld [vmem:[#allocation26_spill] sm:$0xff] }
 0x2e5   : > { %1617 = vpow2.f32 %v1104_v32  ;;  %v928_v42 = vpop.xlane.xlu0 %927 }
 0x2e6   : > { %v1608_v2 = vpop.eup %1607  ;;  %1619 = vpow2.f32 %v1100_v23  ;;  %v1002_v45 = vsub.f32 %v2217_v62, %v928_v42  ;;  %v1003_v52 = vsub.f32 %v2220_v6, %v928_v42  ;;  %v2537_v23 = vld [vmem:[#allocation27_spill] sm:$0xff] }
 0x2e7   : > { %v1610_v12 = vpop.eup %1609  ;;  %v931_v22 = vpop.xlane.xlu1 %930  ;;  %v1170_v31 = vpack.c.bf16 %v1608_v2, %v1606_v28 }
 0x2e8   : > { %v1612_v26 = vpop.eup %1611  ;;  %v1106_v44 = vmul.f32 1.442695, %v1002_v45  ;;  %v1004_v29 = vsub.f32 %v2223_v18, %v931_v22  ;;  %v1005_v40 = vsub.f32 %v2226_v24, %v931_v22  ;;  %v1108_v39 = vmul.f32 1.442695, %v1003_v52 }
 0x2e9   : > { %v1171_v37 = vpack.c.bf16 %v1610_v12, %v1612_v26  ;;  %v2538_v12 = vld [vmem:[#allocation28_spill] sm:$0xff]  ;;  %v2539_v26 = vld [vmem:[#allocation29_spill] sm:$0xff] }
 0x2ea   : > { %v1110_v41 = vmul.f32 1.442695, %v1004_v29  ;;  %v1112_v57 = vmul.f32 1.442695, %v1005_v40  ;;  %1621 = vpow2.f32 %v1106_v44 }
 0x2eb   : > { %1206 = vmatprep.subr.bf16.mxu0 %v1171_v37  ;;  %1259 = vmatprep.subr.bf16.mxu1 %v1171_v37 }
 0x2ec   : > { %1623 = vpow2.f32 %v1110_v41  ;;  %1207 = vmatpush1.bf16.xpose.msra.mxu0 %v1170_v31  ;;  %1260 = vmatpush1.bf16.xpose.msra.mxu1 %v1170_v31  ;;  %v1614_v62 = vpop.eup %1613 }
 0x2ed   : > { %1625 = vpow2.f32 %v1112_v57  ;;  %v934_v6 = vpop.xlane.xlu0 %933  ;;  %v2540_v57 = vld [vmem:[#allocation30_spill] sm:$0xff] }
 0x2ee   : > { %v1616_v59 = vpop.eup %1615  ;;  %1627 = vpow2.f32 %v1108_v39  ;;  %v1006_v18 = vsub.f32 %v2233_v55, %v934_v6  ;;  %v1007_v24 = vsub.f32 %v2236_v60, %v934_v6  ;;  %v2541_v6 = vld [vmem:[#allocation31_spill] sm:$0xff] }
 0x2ef   : > { %v1618_v61 = vpop.eup %1617  ;;  %v937_v7 = vpop.xlane.xlu1 %936  ;;  %v1172_v54 = vpack.c.bf16 %v1616_v59, %v1614_v62 }
 0x2f0   : > { %v1620_v63 = vpop.eup %1619  ;;  %v1114_v43 = vmul.f32 1.442695, %v1006_v18  ;;  %v1008_v8 = vsub.f32 %v2239_v14, %v937_v7  ;;  %v1009_v50 = vsub.f32 %v2531_v46, %v937_v7  ;;  %v1116_v36 = vmul.f32 1.442695, %v1007_v24 }
 0x2f1   : > { %v1173_v56 = vpack.c.bf16 %v1618_v61, %v1620_v63 }
 0x2f2   : > { %v1118_v13 = vmul.f32 1.442695, %v1008_v8  ;;  %v1120_v48 = vmul.f32 1.442695, %v1009_v50  ;;  %1629 = vpow2.f32 %v1114_v43  ;;  %v2542_v8 = vld [vmem:[#allocation32_spill] sm:$0xff]  ;;  %v2543_v50 = vld [vmem:[#allocation33_spill] sm:$0xff] }
 0x2f3   : > { %1208 = vmatprep.subr.bf16.mxu0 %v1173_v56  ;;  %1261 = vmatprep.subr.bf16.mxu1 %v1173_v56 }
 0x2f4   : > { %1631 = vpow2.f32 %v1118_v13  ;;  %1209 = vmatpush1.bf16.xpose.msra.mxu0 %v1172_v54  ;;  %1262 = vmatpush1.bf16.xpose.msra.mxu1 %v1172_v54  ;;  %v1622_v55 = vpop.eup %1621 }
 0x2f5   : > { %1633 = vpow2.f32 %v1120_v48  ;;  %v940_v60 = vpop.xlane.xlu0 %939 }
 0x2f6   : > { %v1624_v15 = vpop.eup %1623  ;;  %1635 = vpow2.f32 %v1116_v36  ;;  %v1010_v14 = vsub.f32 %v2532_v33, %v940_v60  ;;  %v1011_v58 = vsub.f32 %v2533_v27, %v940_v60 }
 0x2f7   : > { %v1626_v30 = vpop.eup %1625  ;;  %v943_v19 = vpop.xlane.xlu1 %942  ;;  %v1174_v11 = vpack.c.bf16 %v1624_v15, %v1622_v55 }
 0x2f8   : > { %v1628_v5 = vpop.eup %1627  ;;  %v1122_v9 = vmul.f32 1.442695, %v1010_v14  ;;  %v1012_v1 = vsub.f32 %v2534_v0, %v943_v19  ;;  %v1013_v16 = vsub.f32 %v2535_v3, %v943_v19  ;;  %v1124_v21 = vmul.f32 1.442695, %v1011_v58  ;;  %v2544_v0 = vld [vmem:[#allocation14_spill] sm:$0xff]  ;;  %v2545_v3 = vld [vmem:[#allocation15_spill] sm:$0xff] }
 0x2f9   : > { %v1175_v17 = vpack.c.bf16 %v1626_v30, %v1628_v5 }
 0x2fa   : > { %v1126_v34 = vmul.f32 1.442695, %v1012_v1  ;;  %v1128_v47 = vmul.f32 1.442695, %v1013_v16  ;;  %1637 = vpow2.f32 %v1122_v9 }
 0x2fb   : > { %1210 = vmatprep.subr.bf16.mxu0 %v1175_v17  ;;  %1263 = vmatprep.subr.bf16.mxu1 %v1175_v17 }
 0x2fc   : > { %1639 = vpow2.f32 %v1126_v34  ;;  %1211 = vmatpush1.bf16.xpose.msra.mxu0 %v1174_v11  ;;  %1264 = vmatpush1.bf16.xpose.msra.mxu1 %v1174_v11  ;;  %v1630_v49 = vpop.eup %1629  ;;  %v2546_v11 = vld [vmem:[#allocation12_spill] sm:$0xff] }
 0x2fd   : > { %1641 = vpow2.f32 %v1128_v47  ;;  %v946_v4 = vpop.xlane.xlu0 %945 }
 0x2fe   : > { %v1632_v51 = vpop.eup %1631  ;;  %1643 = vpow2.f32 %v1124_v21  ;;  %v1014_v20 = vsub.f32 %v2536_v53, %v946_v4  ;;  %v1015_v25 = vsub.f32 %v2537_v23, %v946_v4  ;;  %v2547_v21 = vld [vmem:[#allocation13_spill] sm:$0xff] }
 0x2ff   : > { %v1634_v32 = vpop.eup %1633  ;;  %v949_v28 = vpop.xlane.xlu1 %948  ;;  %v1176_v42 = vpack.c.bf16 %v1632_v51, %v1630_v49 }
 0x300   : > { %v1636_v2 = vpop.eup %1635  ;;  %v1130_v45 = vmul.f32 1.442695, %v1014_v20  ;;  %v1132_v52 = vmul.f32 1.442695, %v1015_v25  ;;  %v1016_v22 = vsub.f32 %v2538_v12, %v949_v28  ;;  %v1017_v44 = vsub.f32 %v2539_v26, %v949_v28  ;;  %v2548_v20 = vld [vmem:[#allocation34_spill] sm:$0xff]  ;;  %v2549_v25 = vld [vmem:[#allocation35_spill] sm:$0xff] }
 0x301   : > { %v1177_v29 = vpack.c.bf16 %v1634_v32, %v1636_v2 }
 0x302   : > { %1645 = vpow2.f32 %v1130_v45  ;;  %v1134_v40 = vmul.f32 1.442695, %v1016_v22  ;;  %v1136_v31 = vmul.f32 1.442695, %v1017_v44 }
 0x303   : > { %1647 = vpow2.f32 %v1132_v52  ;;  %1212 = vmatprep.subr.bf16.mxu0 %v1177_v29  ;;  %1265 = vmatprep.subr.bf16.mxu1 %v1177_v29  ;;  %v2550_v29 = vld [vmem:[#allocation16_spill] sm:$0xff] }
 0x304   : > { %1649 = vpow2.f32 %v1134_v40  ;;  %1213 = vmatpush1.bf16.xpose.msra.mxu0 %v1176_v42  ;;  %1266 = vmatpush1.bf16.xpose.msra.mxu1 %v1176_v42  ;;  %v1638_v37 = vpop.eup %1637 }
 0x305   : > { %1651 = vpow2.f32 %v1136_v31  ;;  %v952_v39 = vpop.xlane.xlu0 %951  ;;  %v2551_v31 = vld [vmem:[#allocation17_spill] sm:$0xff] }
 0x306   : > { %v1640_v41 = vpop.eup %1639  ;;  %v1018_v62 = vsub.f32 %v2540_v57, %v952_v39  ;;  %v1019_v59 = vsub.f32 %v2541_v6, %v952_v39  ;;  %v2552_v39 = vld [vmem:[#allocation18_spill] sm:$0xff]  ;;  %v2553_v57 = vld [vmem:[#allocation19_spill] sm:$0xff] }
 0x307   : > { %v1642_v18 = vpop.eup %1641  ;;  %v955_v24 = vpop.xlane.xlu1 %954  ;;  %v1178_v61 = vpack.c.bf16 %v1640_v41, %v1638_v37 }
 0x308   : > { %v1644_v7 = vpop.eup %1643  ;;  %v1138_v63 = vmul.f32 1.442695, %v1018_v62  ;;  %v1140_v43 = vmul.f32 1.442695, %v1019_v59  ;;  %v1020_v46 = vsub.f32 %v2542_v8, %v955_v24  ;;  %v1021_v54 = vsub.f32 %v2543_v50, %v955_v24 }
 0x309   : > { %v1179_v56 = vpack.c.bf16 %v1642_v18, %v1644_v7 }
 0x30a   : > { %1653 = vpow2.f32 %v1138_v63  ;;  %v1142_v36 = vmul.f32 1.442695, %v1020_v46  ;;  %v1144_v13 = vmul.f32 1.442695, %v1021_v54 }
 0x30b   : > { %1655 = vpow2.f32 %v1140_v43  ;;  %1214 = vmatprep.subr.bf16.mxu0 %v1179_v56  ;;  %1267 = vmatprep.subr.bf16.mxu1 %v1179_v56  ;;  %v320_v58 = vpop.permute.xlu1 %319 }
 0x30c   : > { %v1646_v48 = vpop.eup %1645  ;;  %1657 = vpow2.f32 %v1142_v36  ;;  %1215 = vmatpush1.bf16.xpose.msra.mxu0 %v1178_v61  ;;  %1268 = vmatpush1.bf16.xpose.msra.mxu1 %v1178_v61  ;;  %v388_v1 = vadd.f32 %v2544_v0, %v320_v58  ;;  %v390_v16 = vadd.f32 %v2545_v3, %v320_v58  ;;  %v2554_v58 = vld [vmem:[#allocation20_spill] sm:$0xff] }
 0x30d   : > { %v1648_v55 = vpop.eup %1647  ;;  %1659 = vpow2.f32 %v1144_v13  ;;  %v958_v27 = vpop.xlane.xlu0 %957 }
 0x30e   : > { %v1650_v60 = vpop.eup %1649  ;;  %v1022_v23 = vsub.f32 %v2548_v20, %v958_v27  ;;  %v1023_v32 = vsub.f32 %v2549_v25, %v958_v27 }
 0x30f   : > { %v1652_v15 = vpop.eup %1651  ;;  %v1180_v14 = vpack.c.bf16 %v1650_v60, %v1646_v48  ;;  %v1287_v48 = vstv %s1284_s17 }
 0x310   : > { %v1181_v33 = vpack.c.bf16 %v1652_v15, %v1648_v55  ;;  %v1146_v28 = vmul.f32 1.442695, %v1022_v23  ;;  %v1148_v42 = vmul.f32 1.442695, %v1023_v32  ;;  %v1677_v23 = vld [vmem:[%s1960_s16 + $0x8] sm:$0xff]  ;;  %v1678_v32 = vld [vmem:[%s1960_s16 + $0x18] sm:$0xff] }
 0x312   : > { %1216 = vmatprep.subr.bf16.mxu0 %v1181_v33  ;;  %1269 = vmatprep.subr.bf16.mxu1 %v1181_v33  ;;  %1661 = vpow2.f32 %v1146_v28 }
 0x313   : > { %1663 = vpow2.f32 %v1148_v42  ;;  %v1679_v42 = vld [vmem:[%s1960_s16 + $0x28] sm:$0xff] }
 0x314   : > { %v1654_v30 = vpop.eup %1653  ;;  %1217 = vmatpush1.bf16.xpose.msra.mxu0 %v1180_v14  ;;  %1270 = vmatpush1.bf16.xpose.msra.mxu1 %v1180_v14 }
 0x315   : > { %v1656_v19 = vpop.eup %1655  ;;  %v315_v5 = vpop.permute.xlu0 %314 }
 0x316   : > { %v1658_v9 = vpop.eup %1657  ;;  %v384_v17 = vadd.f32 %v2546_v11, %v315_v5  ;;  %v386_v34 = vadd.f32 %v2547_v21, %v315_v5  ;;  %v1673_v21 = vld [vmem:[%s1960_s16] sm:$0xff] }
 0x317   : > { %v1660_v47 = vpop.eup %1659  ;;  %v1182_v53 = vpack.c.bf16 %v1658_v9, %v1654_v30 }
 0x318   : > { %v402_v49 = vpack.c.bf16 %v388_v1, %v384_v17  ;;  %v403_v4 = vpack.c.bf16 %v390_v16, %v386_v34  ;;  %v1183_v51 = vpack.c.bf16 %v1660_v47, %v1656_v19  ;;  %v1674_v47 = vld [vmem:[%s1960_s16 + $0x10] sm:$0xff] }
 0x31a   : > { %1218 = vmatprep.subr.bf16.mxu0 %v1183_v51  ;;  %1271 = vmatprep.subr.bf16.mxu1 %v1183_v51 }
 0x31b   : > { %1222 = vmatprep.mubr.bf16.mxu0 %v403_v4  ;;  %v1675_v4 = vld [vmem:[%s1960_s16 + $0x20] sm:$0xff] }
 0x31c   : > { %1219 = vmatpush1.bf16.xpose.msra.mxu0 %v1182_v53  ;;  %1272 = vmatpush1.bf16.xpose.msra.mxu1 %v1182_v53  ;;  %v1662_v59 = vpop.eup %1661  ;;  %v1676_v53 = vld [vmem:[%s1960_s16 + $0x30] sm:$0xff] }
 0x33c   : > { %v961_v2 = vpop.xlane.xlu1 %960 }
 0x33d   : > { %v1024_v45 = vsub.f32 %v2323_v35, %v961_v2  ;;  %v1025_v52 = vsub.f32 %v2326_v10, %v961_v2  ;;  %v1664_v10 = vpop.eup %1663 }
 0x33f   : > { %v1150_v12 = vmul.f32 1.442695, %v1024_v45  ;;  %v1152_v22 = vmul.f32 1.442695, %v1025_v52  ;;  %v1680_v45 = vld [vmem:[%s1960_s16 + $0x38] sm:$0xff]  ;;  %s1801_s16 = smov [#allocation9]  }
 0x340   : > { %v325_v26 = vpop.permute.xlu1 %324  ;;  %s1715_s19 = sshll.u32 %s1801_s16, 4  ;;  %s1716_s19 = int_to_ptr.vmem [resolvable:$false] %s1715_s19 }
 0x341   : > { %1665 = vpow2.f32 %v1150_v12  ;;  %v394_v40 = vadd.f32 %v2550_v29, %v325_v26  ;;  %v396_v37 = vadd.f32 %v2551_v31, %v325_v26  ;;  %s1717_s21 = scalar_lea.vmem %s1716_s19, 2048  ;;  %p1718_p6 = scmp.lt.s32.totalorder %s2406_s20, %s1716_s19 }
 0x342   : > { %1667 = vpow2.f32 %v1152_v22  ;;  %p1719_p13 = scmp.lt.s32.totalorder %s1717_s21, %s1711_s10 }
 0x344   : > { %v330_v44 = vpop.permute.xlu1 %329  ;;  %p1720_p2 = por %p1719_p13, %p1718_p6 }
 0x345   : > { %v398_v41 = vadd.f32 %v2552_v39, %v330_v44  ;;  %v400_v62 = vadd.f32 %v2553_v57, %v330_v44 }
 0x346   : > { %p1721_p5 = pnand %p1720_p2, %p1714_p0 }
 0x347   : > { %v404_v6 = vpack.c.bf16 %v398_v41, %v394_v40  ;;  %v405_v35 = vpack.c.bf16 %v400_v62, %v396_v37 }
 0x34b   : > { %v1666_v18 = vpop.eup %1665 }
 0x34c   : > { %v1668_v24 = vpop.eup %1667  ;;  %v1184_v61 = vpack.c.bf16 %v1666_v18, %v1662_v59 }
 0x34d   : > { %v1185_v7 = vpack.c.bf16 %v1668_v24, %v1664_v10 }
 0x34f   : > { %1220 = vmatprep.subr.bf16.mxu0 %v1185_v7  ;;  %1273 = vmatprep.subr.bf16.mxu1 %v1185_v7 }
 0x350   : > { %1221 = vmatpush1.bf16.xpose.msra.mxu0 %v1184_v61  ;;  %1274 = vmatpush1.bf16.xpose.msra.mxu1 %v1184_v61 }
 0x357   : > { %1223 = vmatmul.mubr.bf16.vlgmr.msra.gmra.mrb[12].mxu0 %v402_v49  ;;  %1276 = vmatmul.mubr.bf16.vlgmr.msra.gmra.mrb[72].mxu1 %v1800_v38 }
 0x358   : > { %1232 = vmatprep.mubr.bf16.mxu0 %v405_v35 }
 0x35f   : > { %1233 = vmatmul.mubr.bf16.gmra.mrb[16].mxu0 %v404_v6 }
 0x42a   : > { %v1224_v63 = vpop.f32.mrb[12].mxu0  ;;  %v1277_v43 = vpop.f32.mrb[72].mxu1 }
 0x42b   : > { %1669 = vrcp.f32 %v1277_v43  ;;  %v1226_v8 = vpop.f32.mrb[13].mxu0  ;;  %v1279_v46 = vpop.f32.mrb[73].mxu1 }
 0x42c   : > { %1671 = vrcp.f32 %v1279_v46  ;;  %v1228_v50 = vpop.f32.mrb[14].mxu0  ;;  %v1281_v54 = vpop.f32.mrb[74].mxu1 }
 0x42d   : > { %v1230_v56 = vpop.f32.mrb[15].mxu0  ;;  %v1282_v36 = vpop.f32.mrb[75].mxu1 }
 0x432   : > { %v1234_v13 = vpop.f32.mrb[16].mxu0 }
 0x433   : > { %v1236_v55 = vpop.f32.mrb[17].mxu0 }
 0x434   : > { %v1238_v60 = vpop.f32.mrb[18].mxu0 }
 0x435   : > { %v1670_v38 = vpop.eup %1669  ;;  %v1240_v15 = vpop.f32.mrb[19].mxu0 }
 0x436   : > { %v1672_v33 = vpop.eup %1671  ;;  %v1288_v14 = vmul.f32 %v1670_v38, %v1287_v48 }
 0x437   : > { %v1289_v27 = vmul.f32 %v1672_v33, %v1287_v48 }
 0x438   : > { %v1293_v30 = vrot.slane %v1288_v14, %v2554_v58 }
 0x439   : > { %v1297_v19 = vrot.slane %v1289_v27, %v2554_v58 }
 0x43a   : > { %v1298_v5 = vmul.f32 %v1293_v30, %v1224_v63  ;;  %v1300_v9 = vmul.f32 %v1293_v30, %v1228_v50  ;;  %v1302_v0 = vmul.f32 %v1293_v30, %v1234_v13  ;;  %v1304_v1 = vmul.f32 %v1293_v30, %v1238_v60 }
 0x43b   : > { %v1299_v3 = vmul.f32 %v1297_v19, %v1226_v8  ;;  %v1301_v16 = vmul.f32 %v1297_v19, %v1230_v56  ;;  %v1303_v11 = vmul.f32 %v1297_v19, %v1236_v55  ;;  %v1305_v17 = vmul.f32 %v1297_v19, %v1240_v15 }
 0x43c   : > { %v1306_v34 = vadd.f32 %v1673_v21, %v1298_v5  ;;  %v1308_v49 = vadd.f32 %v1674_v47, %v1300_v9  ;;  %v1310_v51 = vadd.f32 %v1675_v4, %v1302_v0  ;;  %v1312_v20 = vadd.f32 %v1676_v53, %v1304_v1 }
 0x43d   : > { %v1307_v25 = vadd.f32 %v1677_v23, %v1299_v3  ;;  %v1309_v28 = vadd.f32 %v1678_v32, %v1301_v16  ;;  %v1311_v2 = vadd.f32 %v1679_v42, %v1303_v11  ;;  %v1313_v52 = vadd.f32 %v1680_v45, %v1305_v17 }
 0x43e   : > { %1314 = vst [vmem:[%s2401_s18] sm:$0xff] %v1306_v34  ;;  %1316 = vst [vmem:[%s2401_s18 + $0x10] sm:$0xff] %v1308_v49 }
 0x43f   : > { %1318 = vst [vmem:[%s2401_s18 + $0x20] sm:$0xff] %v1310_v51  ;;  %1320 = vst [vmem:[%s2401_s18 + $0x30] sm:$0xff] %v1312_v20 }
 0x440   : > { %1315 = vst [vmem:[%s2401_s18 + $0x8] sm:$0xff] %v1307_v25  ;;  %1317 = vst [vmem:[%s2401_s18 + $0x18] sm:$0xff] %v1309_v28 }
 0x441   : > { %1319 = vst [vmem:[%s2401_s18 + $0x28] sm:$0xff] %v1311_v2  ;;  %1321 = vst [vmem:[%s2401_s18 + $0x38] sm:$0xff] %v1313_v52 }
 0x442   : > { %1724 = shalt.err (!%p1721_p5)
}
 0x443   : > { %s1725_s22 = scalar_lea.hbm %s2419_s7, 1024  ;;  %s1729_s17 = scalar_lea.hbm %s2482_s6, 2048 }
 0x444   : > { %p1726_p4 = scmp.ne.s32.totalorder %s2419_s7, %s1725_s22  ;;  %p1730_p12 = scmp.lt.u32.totalorder %s2419_s7, %s2482_s6 }
 0x445   : > { %p1731_p1 = scmp.lt.u32.totalorder %s1729_s17, %s1725_s22  ;;  %p1733_p8 = scmp.lt.u32.totalorder %s1725_s22, %s2419_s7 }
 0x446   : > { %p1727_p7 = pnand %p1726_p4, %p2555_p9 }
 0x447   : > { %p1732_p3 = por %p1731_p1, %p1730_p12 }
 0x448   : > { %p1728_p10 = pneg %p1727_p7 }
 0x449   : > { %p1734_p11 = por %p1733_p8, %p1732_p3 }
 0x44b   : > { %p1735_p0 = pnand %p1734_p11, %p1728_p10 }
 0x44d   : > { %1738 = shalt.err (!%p1735_p0)
}
 0x44e   : > { %s1802_s26 = smov 256   ;;  %s1803_s8 = smov 16  }
 0x44f   : > { %1468 = dma.vmem_to_hbm [thread:$0]  (%p2555_p9), %s2406_s20, 1024, %s2419_s7, %s1323_s15, %s1802_s26, %s1802_s26, %s1803_s8  }
 0x450 PF: > { %s1353_s10 = sand.u32 1, %s1773_s23   ;;  %p2556_p6 = scmp.ne.s32.totalorder %s2504_s13, 0 }
 0x451   : > { %p2557_p13 = scmp.ge.s32.totalorder %s1793_s28, 2  ;;  %s1354_s16 = scalar_lea.sflag [#allocation8], %s1353_s10 }
 0x453   : > { %p1475_p2 = pnand %p2557_p13, %p2556_p6 }
 0x455   : > { %1768 = dma.done.wait (!%p1475_p2), %s1354_s16, 1024  }
 0x456   : > { %1770 = vsyncadd (!%p1475_p2), %s1354_s16, 4294966272  ;;  %s23_s28 = sadd.s32 1, %s1793_s28   ;;  %s2558_s23 = smov %s1777_s24 }
 0x457   : > { %p20_p5 = scmp.ge.s32.totalorder %s23_s28, 4   ;;  %s2559_s24 = smov %s1781_s25 }
 0x458   : > { %s2560_s25 = smov %s1898_s12  ;;  %s2561_s26 = smov %s1789_s27 }
 0x459   : > { %s2562_s27 = smov %s2564_s30  ;;  %22 = sbr.rel (!%p20_p5) target bundleno = 8 (0x8), region = 94 }
 0x460   :  { %1359 = vsyncpa [#allocation7], 1 }
 0x461   :  { %1361 = vsyncpa [#allocation7 + $0x1], 1 }
 0x462   :  { %1362 = vsyncpa [#allocation8], 1 }
 0x463   :  { %1364 = vsyncpa [#allocation8 + $0x1], 1 }

// kernel: tpu_custom_call.1
= control target key start
LH: loop header
LB: loop body
LE: loop exit
PB: predicated region body
PF: predicated region fallthrough
CT: control target
= control target key end

     0   :  { %s2476_s0 = inlined_call_operand.<no memory space> [shape: f32[1,1], index: 0, kind: input, shape index: {}]   ;;  %s2477_s1 = inlined_call_operand.hbm [shape: f32[2,32,256], index: 1, kind: input, shape index: {}]   ;;  %s2478_s2 = inlined_call_operand.vmem [shape: bf16[32,32], index: 2, kind: input, shape index: {}]   ;;  %s2479_s3 = inlined_call_operand.vmem [shape: bf16[1,32], index: 3, kind: input, shape index: {}]   ;;  %s2480_s4 = inlined_call_operand.vmem [shape: bf16[32,32], index: 4, kind: input, shape index: {}]   ;;  %s2481_s5 = inlined_call_operand.vmem [shape: f32[32,1], index: 5, kind: input, shape index: {}]   ;;  %s2482_s6 = inlined_call_operand.hbm [shape: f32[2,32,256], index: 6, kind: output, shape index: {}]  }
   0x1   :  { %11 = sst [smem:[#allocation5]] %s2476_s0 }
   0x2   :  { %12 = vsyncpa [#allocation7], 0 }
   0x3   :  { %14 = vsyncpa [#allocation7 + $0x1], 0 }
   0x4   :  { %15 = vsyncpa [#allocation8], 0 }
   0x5   :  { %17 = vsyncpa [#allocation8 + $0x1], 0  ;;  %s1842_s23 = smov 0   ;;  %s1844_s24 = smov 0  }
   0x6   :  { %s1846_s25 = smov 0   ;;  %s1848_s26 = smov 0  }
   0x7   :  { %s1850_s27 = smov 0   ;;  %s1852_s28 = smov 0  }
   0x8 LB: > { %s1424_s0 = sadd.s32 4294967295, %s1793_s28   ;;  %s1425_s29 = sadd.s32 4294967294, %s1793_s28   ;;  %s1793_s28 = sphi %s1852_s28, %s23_s28   ;;  %s1789_s27 = sphi %s1850_s27, %s2562_s27   ;;  %s1785_s26 = sphi %s1848_s26, %s2561_s26   ;;  %s1781_s25 = sphi %s1846_s25, %s2560_s25   ;;  %s1777_s24 = sphi %s1844_s24, %s2559_s24   ;;  %s1773_s23 = sphi %s1842_s23, %s2558_s23  }
   0x9   : > { %s35_s30 = sadd.s32 1, %s1789_s27  ;;  %s63_s7 = sadd.s32 1, %s1781_s25 }
   0xa   : > { %p37_p0 = scmp.ge.s32.totalorder %s35_s30, 2  ;;  %p70_p1 = scmp.ne.s32.totalorder %s1781_s25, %s1777_s24 }
   0xb   : > { %p71_p2 = scmp.eq.s32.totalorder %s1793_s28, 0  ;;  %p76_p3 = scmp.ne.s32.totalorder %s1777_s24, %s1773_s23 }
   0xc   : > { %s2564_s30 = smov (%p37_p0, %s35_s30), 0  ;;  %p77_p5 = scmp.eq.s32.totalorder %s1424_s0, 0 }
   0xd   : > { %p1883_p4 = por %p71_p2, %p70_p1  ;;  %s60_s9 = ssub.s32 %s1789_s27, %s2564_s30 }
   0xe   : > { %p186_p6 = scmp.eq.s32.totalorder %s1424_s0, 1  ;;  %p61_p7 = scmp.eq.s32.totalorder %s60_s9, 0 }
   0xf   : > { %p1889_p8 = por %p77_p5, %p76_p3  ;;  %p192_p10 = scmp.eq.s32.totalorder %s1425_s29, 1 }
  0x10   : > { %p1893_p9 = por %p186_p6, %p70_p1  ;;  %p1478_p13 = scmp.lt.s32.totalorder %s1793_s28, 2 }
  0x11   : > { %s1898_s12 = scalar_select %p61_p7, %s1781_s25, %s63_s7  }
  0x12   : > { %s2503_s11 = scalar_select %p1893_p9, 1, 0 }
  0x13   : > { %p1900_p11 = por %p192_p10, %p76_p3  ;;  %s227_s14 = sand.u32 1, %s1781_s25  }
  0x14   : > { %s1428_s15 = sshll.u32 %s227_s14, 6  ;;  %s1464_s16 = sshll.u32 %s1789_s27, 10 }
  0x15   : > { %s2504_s13 = scalar_select %p1900_p11, 1, 0 }
  0x16   : > { %s1911_s19 = scalar_lea.hbm %s2477_s1, %s1464_s16  ;;  %s231_s20 = scalar_lea.vmem [#allocation6], %s1428_s15 }
  0x17   : > { %s238_s21 = sshll.u32 %s231_s20, 4  ;;  %p1917_p0 = pnand %p1478_p13, %p1883_p4  ;;  %s1913_s21 = int_to_ptr.vmem [resolvable:$true] %s238_s21 }
  0x18   : > { %s1922_s0 = scalar_lea.sflag [#allocation7], %s227_s14  ;;  %s1681_s29 = scalar_lea.hbm %s1911_s19, 1024 }
  0x19   : > { %p1682_p2 = scmp.ne.s32.totalorder %s1911_s19, %s1681_s29  ;;  %p1683_p3 = pneg %p1917_p0 }
  0x1a   : > { %s1686_s8 = scalar_lea.hbm %s2477_s1, 2048  ;;  %p1687_p4 = scmp.lt.u32.totalorder %s1911_s19, %s2477_s1 }
  0x1b   : > { %p1684_p5 = pnand %p1683_p3, %p1682_p2  ;;  %p1688_p7 = scmp.lt.u32.totalorder %s1686_s8, %s1681_s29 }
  0x1c   : > { %p1690_p13 = scmp.lt.u32.totalorder %s1681_s29, %s1911_s19 }
  0x1d   : > { %p1685_p6 = pneg %p1684_p5  ;;  %p1689_p10 = por %p1688_p7, %p1687_p4 }
  0x1f   : > { %p1691_p12 = por %p1690_p13, %p1689_p10 }
  0x21   : > { %p1692_p1 = pnand %p1691_p12, %p1685_p6 }
  0x23   : > { %1695 = shalt.err (!%p1692_p1)
}
  0x24   : > { %s1696_s14 = scalar_lea.vmem %s1913_s21, 1024  ;;  %s1795_s17 = smov [#allocation6]  }
  0x25   : > { %p1697_p2 = scmp.ne.s32.totalorder %s1913_s21, %s1696_s14  ;;  %s1701_s18 = sshll.u32 %s1795_s17, 4  ;;  %s1702_s18 = int_to_ptr.vmem [resolvable:$false] %s1701_s18 }
  0x26   : > { %s1703_s20 = scalar_lea.vmem %s1702_s18, 2048  ;;  %p1704_p9 = scmp.lt.s32.totalorder %s1913_s21, %s1702_s18 }
  0x27   : > { %p1699_p5 = pnand %p1697_p2, %p1683_p3  ;;  %p1705_p4 = scmp.lt.s32.totalorder %s1703_s20, %s1696_s14 }
  0x29   : > { %p1700_p11 = pneg %p1699_p5  ;;  %p1706_p7 = por %p1705_p4, %p1704_p9 }
  0x2b   : > { %p1707_p10 = pnand %p1706_p7, %p1700_p11 }
  0x2d   : > { %1710 = shalt.err (!%p1707_p10)
}
  0x2e   : > { %s1796_s29 = smov 256   ;;  %s1797_s7 = smov 16  }
  0x2f   : > { %1473 = dma.hbm_to_vmem [thread:$0]  (!%p1917_p0), %s1911_s19, 1024, %s1913_s21, %s1922_s0, %s1796_s29, %s1796_s29, %s1797_s7  }
  0x30   : > { %p246_p12 = scmp.lt.s32.totalorder %s1793_s28, 3  ;;  %p2506_p1 = scmp.ge.s32.totalorder %s1793_s28, 1 }
  0x32   : > { %p247_p3 = pnand %p2506_p1, %p246_p12 }
  0x34   : > { %250 = sbr.rel (%p247_p3) target bundleno = 1104 (0x450), region = 44 }
  0x3b   : > { %s1954_s9 = sand.u32 1, %s1777_s24  }
  0x3c   : > { %s1432_s8 = sshll.u32 %s1954_s9, 6  ;;  %s253_s15 = scalar_lea.sflag [#allocation7], %s1954_s9 }
  0x3d   : > { %s1960_s16 = scalar_lea.vmem [#allocation6], %s1432_s8 }
  0x3e   : > { %1764 = dma.done.wait (%p1889_p8), %s253_s15, 1024  }
  0x3f   : > { %1766 = vsyncadd (%p1889_p8), %s253_s15, 4294966272  ;;  %v1798_v0 = vmov 0   ;;  %v293_v1 = vld [vmem:[%s1960_s16 + $0x8] sm:$0xff]  ;;  %v295_v2 = vld [vmem:[%s1960_s16 + $0x18] sm:$0xff]  ;;  %vm342_vm0 = vcmask 261120   ;;  %v542_v48 = vlaneseq  ;;  %s1284_s17 = sld [smem:[#allocation5]] }
  0x40   : > { %462 = vmatprep.mubr.bf16.mxu1 %v1798_v0  ;;  %381 = vmatprep.mubr.bf16.mxu0 %v1798_v0  ;;  %v292_v3 = vld [vmem:[%s1960_s16] sm:$0xff]  ;;  %v301_v4 = vpack.c.bf16 %v295_v2, %v293_v1  ;;  %v294_v5 = vld [vmem:[%s1960_s16 + $0x10] sm:$0xff]  ;;  %v297_v6 = vld [vmem:[%s1960_s16 + $0x28] sm:$0xff]  ;;  %v1799_v46 = vmov 1966171168   ;;  %s2401_s18 = scalar_lea.vmem [#allocation9], %s1432_s8 }
  0x41   : > { %v299_v7 = vld [vmem:[%s1960_s16 + $0x38] sm:$0xff]  ;;  %v300_v8 = vpack.c.bf16 %v294_v5, %v292_v3  ;;  %v296_v10 = vld [vmem:[%s1960_s16 + $0x20] sm:$0xff]  ;;  %v298_v11 = vld [vmem:[%s1960_s16 + $0x30] sm:$0xff]  ;;  %v540_v47 = vunpack.c.l.s4 %v1799_v46  ;;  %v543_v51 = vshrl.u32 %v542_v48, 7  ;;  %vm556_vm1 = vcmp.lt.s32.totalorder %v542_v48, 256  ;;  %s1338_s20 = sshll.u32 %s2401_s18, 4  ;;  %s2406_s20 = int_to_ptr.vmem [resolvable:$true] %s1338_s20 }
  0x42   : > { %v303_v9 = vpack.c.bf16 %v299_v7, %v297_v6  ;;  %430 = vmatprep.subr.bf16.mxu1 %v301_v4  ;;  %349 = vmatprep.subr.bf16.mxu0 %v301_v4  ;;  %v302_v12 = vpack.c.bf16 %v298_v11, %v296_v10  ;;  %v1537_v13 = vld [vmem:[%s2478_s2] sm:$0xff]   ;;  %v1538_v15 = vld [vmem:[%s2478_s2 + $0x8] sm:$0xff]   ;;  %s1465_s29 = sshll.u32 %s1785_s26, 10  ;;  %s1323_s15 = scalar_lea.sflag [#allocation8], %s1954_s9 }
  0x43   : > { %431 = vmatpush1.bf16.msra.mxu1 %v300_v8  ;;  %592 = vxpose.xlu0.c.b16.start [1/2] (short) %v300_v8, 128  ;;  %v1539_v14 = vld [vmem:[%s2480_s4] sm:$0xff]   ;;  %v1540_v16 = vld [vmem:[%s2480_s4 + $0x8] sm:$0xff]   ;;  %v541_v50 = vunpack.c.0.s8 %v540_v47  ;;  %v588_v6 = vsub.s32 1, %v543_v51  ;;  %s2419_s7 = scalar_lea.hbm %s2482_s6, %s1465_s29  ;;  %s1711_s10 = scalar_lea.vmem %s2406_s20, 1024 }
  0x44   : > { %432 = vmatprep.subr.bf16.mxu1 %v303_v9  ;;  %608 = vxpose.xlu1.c.b16.start [1/2] (short) %v301_v4, 128  ;;  %v491_v17 = vld [vmem:[%s2479_s3] sm:$0x1]  ;;  %p1712_p8 = scmp.ne.s32.totalorder %s2406_s20, %s1711_s10  ;;  %p2555_p9 = scmp.ne.s32.totalorder %s2503_s11, 0 }
  0x45   : > { %350 = vmatpush1.bf16.msra.mxu0 %v300_v8  ;;  %v544_v53 = vsub.s32 %v541_v50, %v543_v51 }
  0x46   : > { %351 = vmatprep.subr.bf16.mxu0 %v303_v9  ;;  %p1713_p11 = pnand %p1712_p8, %p2555_p9 }
  0x47   : > { %433 = vmatpush1.bf16.msra.mxu1 %v302_v12  ;;  %593 = vxpose.xlu0.c.b16.end [2/2] (short) %v302_v12, 128 }
  0x48   : > { %609 = vxpose.xlu1.c.b16.end [2/2] (short) %v303_v9, 128  ;;  %p1714_p0 = pneg %p1713_p11 }
  0x49   : > { %352 = vmatpush1.bf16.msra.mxu0 %v302_v12 }
  0x4a   : > { %1440 = vmatmul.mubr.msk.bf16.vlgmr.msra.gmra.mrb[0].mxu1 %vm342_vm0, %v1537_v13  ;;  %495 = vmatprep.subr.bf16.mxu0 %v301_v4  ;;  %v2049_v4 = vsub.s32 0, %v543_v51 }
  0x4b   : > { %472 = vmatprep.mubr.bf16.mxu1 %v1798_v0 }
  0x4c   : > { %1436 = vmatmul.mubr.msk.bf16.vlgmr.msra.gmra.mrb[0].mxu0 %vm342_vm0, %v1539_v14  ;;  %1536 = vset.pattern.permute.xlu1 %v1798_v0  ;;  %2515 = vst [vmem:[#allocation20_spill] sm:$0xff] %v2049_v4 }
  0x4d   : > { %391 = vmatprep.mubr.bf16.mxu0 %v1798_v0  ;;  %496 = vmatpush1.bf16.msra.mxu0 %v300_v8 }
  0x4e   : > { %497 = vmatprep.subr.bf16.mxu0 %v303_v9 }
  0x50   : > { %1535 = vset.pattern.permute.xlu0 %v1798_v0 }
  0x51   : > { %498 = vmatpush1.bf16.msra.mxu0 %v302_v12 }
  0x52   : > { %1441 = vmatmul.mubr.msk.bf16.gmra.mrb[4].mxu1 %vm342_vm0, %v1538_v15 }
  0x53   : > { %705 = vmatprep.mubr.bf16.mxu1 %v1798_v0 }
  0x54   : > { %1437 = vmatmul.mubr.msk.bf16.gmra.mrb[4].mxu0 %vm342_vm0, %v1540_v16 }
  0x55   : > { %527 = vmatprep.mubr.bf16.mxu0 %v1798_v0 }
  0x5c   : > { %1442 = vmatmul.mubr.msk.bf16.vlgmr.msra.gmra.mrb[8].mxu0 %vm342_vm0, %v491_v17 }
  0xa9   : > { %v600_v35 = vpop.trf.xlu0 }
  0xaa   : > { %v616_v49 = vpop.trf.xlu1 }
  0xad   : > { %v601_v39 = vpop.trf.xlu0 }
  0xae   : > { %v617_v57 = vpop.trf.xlu1 }
  0xb1   : > { %v602_v40 = vpop.trf.xlu0 }
  0xb2   : > { %v618_v61 = vpop.trf.xlu1 }
  0xb5   : > { %v603_v41 = vpop.trf.xlu0 }
  0xb6   : > { %v619_v62 = vpop.trf.xlu1 }
  0xb9   : > { %v604_v42 = vpop.trf.xlu0 }
  0xba   : > { %v620_v63 = vpop.trf.xlu1 }
  0xbd   : > { %v605_v43 = vpop.trf.xlu0 }
  0xbe   : > { %v621_v1 = vpop.trf.xlu1 }
  0xc1   : > { %v606_v44 = vpop.trf.xlu0 }
  0xc2   : > { %v622_v2 = vpop.trf.xlu1 }
  0xc5   : > { %v607_v45 = vpop.trf.xlu0 }
  0xc6   : > { %v623_v3 = vpop.trf.xlu1 }
 0x11d   : > { %v464_v18 = vpop.f32.mrb[0].mxu1 }
 0x11e   : > { %v466_v19 = vpop.f32.mrb[1].mxu1 }
 0x11f   : > { %v468_v20 = vpop.f32.mrb[2].mxu1  ;;  %v2002_v27 = vpop.f32.mrb[0].mxu0 }
 0x120   : > { %v483_v21 = vpack.c.bf16 %v468_v20, %v464_v18  ;;  %v470_v22 = vpop.f32.mrb[3].mxu1  ;;  %2507 = vst [vmem:[#allocation12_spill] sm:$0xff] %v2002_v27  ;;  %v2004_v30 = vpop.f32.mrb[1].mxu0 }
 0x121   : > { %v484_v23 = vpack.c.bf16 %v470_v22, %v466_v19  ;;  %2508 = vst [vmem:[#allocation13_spill] sm:$0xff] %v2004_v30  ;;  %v2006_v32 = vpop.f32.mrb[2].mxu0 }
 0x122   : > { %2509 = vst [vmem:[#allocation14_spill] sm:$0xff] %v2006_v32  ;;  %v2008_v33 = vpop.f32.mrb[3].mxu0 }
 0x123   : > { %673 = vmatprep.subr.bf16.mxu1 %v484_v23  ;;  %2510 = vst [vmem:[#allocation15_spill] sm:$0xff] %v2008_v33 }
 0x124   : > { %674 = vmatpush1.bf16.msra.mxu1 %v483_v21 }
 0x125   : > { %v474_v24 = vpop.f32.mrb[4].mxu1 }
 0x126   : > { %v476_v25 = vpop.f32.mrb[5].mxu1 }
 0x127   : > { %v478_v26 = vpop.f32.mrb[6].mxu1  ;;  %v2010_v34 = vpop.f32.mrb[4].mxu0 }
 0x128   : > { %v485_v28 = vpack.c.bf16 %v478_v26, %v474_v24  ;;  %v480_v29 = vpop.f32.mrb[7].mxu1  ;;  %2511 = vst [vmem:[#allocation16_spill] sm:$0xff] %v2010_v34  ;;  %v2012_v36 = vpop.f32.mrb[5].mxu0 }
 0x129   : > { %v486_v31 = vpack.c.bf16 %v480_v29, %v476_v25  ;;  %2512 = vst [vmem:[#allocation17_spill] sm:$0xff] %v2012_v36  ;;  %v2014_v37 = vpop.f32.mrb[6].mxu0 }
 0x12a   : > { %2513 = vst [vmem:[#allocation18_spill] sm:$0xff] %v2014_v37  ;;  %v2016_v38 = vpop.f32.mrb[7].mxu0 }
 0x12b   : > { %675 = vmatprep.subr.bf16.mxu1 %v486_v31  ;;  %2514 = vst [vmem:[#allocation19_spill] sm:$0xff] %v2016_v38 }
 0x12c   : > { %676 = vmatpush1.bf16.msra.mxu1 %v485_v28 }
 0x12f   : > { %1443 = vmatmul.mubr.msk.bf16.vlgmr.msra.gmra.mrb[8].mxu1 %vm342_vm0, %v600_v35  ;;  %v529_v52 = vpop.f32.mrb[8].mxu0 }
 0x130   : > { %715 = vmatprep.mubr.bf16.mxu1 %v1798_v0  ;;  %v531_v54 = vpop.f32.mrb[9].mxu0 }
 0x131   : > { %v538_v55 = vcombine.low %v529_v52, %v531_v54  ;;  %v533_v56 = vpop.f32.mrb[10].mxu0 }
 0x132   : > { %v534_v58 = vpop.f32.mrb[11].mxu0 }
 0x133   : > { %v545_v59 = vrot.slane %v538_v55, %v544_v53 }
 0x135   : > { %v552_v60 = vrot.slane %v545_v59, %v544_v53 }
 0x137   : > { %1444 = vmatmul.mubr.msk.bf16.gmra.mrb[12].mxu1 %vm342_vm0, %v601_v39  ;;  %558 = vst.msk [vmem:[#allocation4] sm:$0x3] %vm556_vm1, %v552_v60 }
 0x138   : > { %725 = vmatprep.mubr.bf16.mxu1 %v1798_v0 }
 0x13e   : > { %v580_v5 = vld [vmem:[#allocation4] sm:$0x3] }
 0x13f   : > { %1445 = vmatmul.mubr.msk.bf16.gmra.mrb[16].mxu1 %vm342_vm0, %v602_v40  ;;  %v2052_v7 = vrot.slane %v580_v5, %v2049_v4  ;;  %v2054_v8 = vrot.slane %v580_v5, %v588_v6 }
 0x140   : > { %735 = vmatprep.mubr.bf16.mxu1 %v1798_v0 }
 0x147   : > { %1446 = vmatmul.mubr.msk.bf16.gmra.mrb[20].mxu1 %vm342_vm0, %v603_v41 }
 0x148   : > { %745 = vmatprep.mubr.bf16.mxu1 %v1798_v0 }
 0x14f   : > { %1447 = vmatmul.mubr.msk.bf16.gmra.mrb[24].mxu1 %vm342_vm0, %v604_v42 }
 0x150   : > { %755 = vmatprep.mubr.bf16.mxu1 %v1798_v0 }
 0x157   : > { %1448 = vmatmul.mubr.msk.bf16.gmra.mrb[28].mxu1 %vm342_vm0, %v605_v43 }
 0x158   : > { %765 = vmatprep.mubr.bf16.mxu1 %v1798_v0 }
 0x15f   : > { %1449 = vmatmul.mubr.msk.bf16.gmra.mrb[32].mxu1 %vm342_vm0, %v606_v44 }
 0x160   : > { %775 = vmatprep.mubr.bf16.mxu1 %v1798_v0 }
 0x167   : > { %1450 = vmatmul.mubr.msk.bf16.gmra.mrb[36].mxu1 %vm342_vm0, %v607_v45 }
 0x168   : > { %785 = vmatprep.mubr.bf16.mxu1 %v1798_v0 }
 0x16f   : > { %1451 = vmatmul.mubr.msk.bf16.gmra.mrb[40].mxu1 %vm342_vm0, %v616_v49 }
 0x170   : > { %795 = vmatprep.mubr.bf16.mxu1 %v1798_v0 }
 0x177   : > { %1452 = vmatmul.mubr.msk.bf16.gmra.mrb[44].mxu1 %vm342_vm0, %v617_v57 }
 0x178   : > { %805 = vmatprep.mubr.bf16.mxu1 %v1798_v0 }
 0x17f   : > { %1453 = vmatmul.mubr.msk.bf16.gmra.mrb[48].mxu1 %vm342_vm0, %v618_v61 }
 0x180   : > { %815 = vmatprep.mubr.bf16.mxu1 %v1798_v0 }
 0x187   : > { %1454 = vmatmul.mubr.msk.bf16.gmra.mrb[52].mxu1 %vm342_vm0, %v619_v62 }
 0x188   : > { %825 = vmatprep.mubr.bf16.mxu1 %v1798_v0 }
 0x18f   : > { %1455 = vmatmul.mubr.msk.bf16.gmra.mrb[56].mxu1 %vm342_vm0, %v620_v63 }
 0x190   : > { %835 = vmatprep.mubr.bf16.mxu1 %v1798_v0 }
 0x197   : > { %1456 = vmatmul.mubr.msk.bf16.gmra.mrb[60].mxu1 %vm342_vm0, %v621_v1 }
 0x198   : > { %845 = vmatprep.mubr.bf16.mxu1 %v1798_v0 }
 0x19f   : > { %1457 = vmatmul.mubr.msk.bf16.gmra.mrb[64].mxu1 %vm342_vm0, %v622_v2 }
 0x1a0   : > { %855 = vmatprep.mubr.bf16.mxu1 %v1798_v0 }
 0x1a7   : > { %1458 = vmatmul.mubr.msk.bf16.gmra.mrb[68].mxu1 %vm342_vm0, %v623_v3 }
 0x202   : > { %v707_v9 = vpop.f32.mrb[8].mxu1 }
 0x203   : > { %v2057_v10 = vadd.f32 %v707_v9, %v2052_v7  ;;  %v709_v11 = vpop.f32.mrb[9].mxu1 }
 0x204   : > { %v2060_v12 = vadd.f32 %v709_v11, %v2054_v8  ;;  %v711_v0 = vpop.f32.mrb[10].mxu1 }
 0x205   : > { %v2063_v13 = vadd.f32 %v711_v0, %v2052_v7  ;;  %v713_v14 = vpop.f32.mrb[11].mxu1 }
 0x206   : > { %v2066_v15 = vadd.f32 %v713_v14, %v2054_v8  ;;  %v866_v16 = vmax.f32 %v2057_v10, %v2060_v12 }
 0x208   : > { %867 = vmax.xlane.f32.xlu0 %v866_v16  ;;  %v869_v17 = vmax.f32 %v2063_v13, %v2066_v15 }
 0x20a   : > { %v717_v18 = vpop.f32.mrb[12].mxu1  ;;  %870 = vmax.xlane.f32.xlu1 %v869_v17 }
 0x20b   : > { %v2073_v19 = vadd.f32 %v717_v18, %v2052_v7  ;;  %v719_v20 = vpop.f32.mrb[13].mxu1 }
 0x20c   : > { %v2076_v21 = vadd.f32 %v719_v20, %v2054_v8  ;;  %v721_v22 = vpop.f32.mrb[14].mxu1 }
 0x20d   : > { %v2079_v23 = vadd.f32 %v721_v22, %v2052_v7  ;;  %v723_v24 = vpop.f32.mrb[15].mxu1 }
 0x20e   : > { %v2082_v25 = vadd.f32 %v723_v24, %v2054_v8  ;;  %v872_v26 = vmax.f32 %v2073_v19, %v2076_v21 }
 0x210   : > { %873 = vmax.xlane.f32.xlu0 %v872_v26  ;;  %v875_v28 = vmax.f32 %v2079_v23, %v2082_v25 }
 0x212   : > { %v727_v29 = vpop.f32.mrb[16].mxu1  ;;  %876 = vmax.xlane.f32.xlu1 %v875_v28 }
 0x213   : > { %v2089_v31 = vadd.f32 %v727_v29, %v2052_v7  ;;  %v729_v35 = vpop.f32.mrb[17].mxu1 }
 0x214   : > { %v2092_v39 = vadd.f32 %v729_v35, %v2054_v8  ;;  %v731_v40 = vpop.f32.mrb[18].mxu1 }
 0x215   : > { %v2095_v41 = vadd.f32 %v731_v40, %v2052_v7  ;;  %v733_v42 = vpop.f32.mrb[19].mxu1 }
 0x216   : > { %v2098_v43 = vadd.f32 %v733_v42, %v2054_v8  ;;  %v878_v44 = vmax.f32 %v2089_v31, %v2092_v39 }
 0x218   : > { %879 = vmax.xlane.f32.xlu0 %v878_v44  ;;  %v881_v45 = vmax.f32 %v2095_v41, %v2098_v43 }
 0x21a   : > { %v737_v46 = vpop.f32.mrb[20].mxu1  ;;  %882 = vmax.xlane.f32.xlu1 %v881_v45 }
 0x21b   : > { %v2105_v47 = vadd.f32 %v737_v46, %v2052_v7  ;;  %v739_v48 = vpop.f32.mrb[21].mxu1 }
 0x21c   : > { %v2108_v49 = vadd.f32 %v739_v48, %v2054_v8  ;;  %v741_v50 = vpop.f32.mrb[22].mxu1 }
 0x21d   : > { %v2111_v51 = vadd.f32 %v741_v50, %v2052_v7  ;;  %v743_v52 = vpop.f32.mrb[23].mxu1 }
 0x21e   : > { %v2114_v53 = vadd.f32 %v743_v52, %v2054_v8  ;;  %v884_v54 = vmax.f32 %v2105_v47, %v2108_v49 }
 0x220   : > { %885 = vmax.xlane.f32.xlu0 %v884_v54  ;;  %v887_v55 = vmax.f32 %v2111_v51, %v2114_v53 }
 0x222   : > { %v747_v56 = vpop.f32.mrb[24].mxu1  ;;  %888 = vmax.xlane.f32.xlu1 %v887_v55 }
 0x223   : > { %v2121_v57 = vadd.f32 %v747_v56, %v2052_v7  ;;  %v749_v58 = vpop.f32.mrb[25].mxu1 }
 0x224   : > { %v2124_v59 = vadd.f32 %v749_v58, %v2054_v8  ;;  %v751_v60 = vpop.f32.mrb[26].mxu1 }
 0x225   : > { %v2127_v61 = vadd.f32 %v751_v60, %v2052_v7  ;;  %v753_v62 = vpop.f32.mrb[27].mxu1 }
 0x226   : > { %v2130_v63 = vadd.f32 %v753_v62, %v2054_v8  ;;  %v890_v1 = vmax.f32 %v2121_v57, %v2124_v59 }
 0x228   : > { %891 = vmax.xlane.f32.xlu0 %v890_v1  ;;  %v893_v2 = vmax.f32 %v2127_v61, %v2130_v63 }
 0x22a   : > { %v757_v3 = vpop.f32.mrb[28].mxu1  ;;  %894 = vmax.xlane.f32.xlu1 %v893_v2 }
 0x22b   : > { %v2137_v5 = vadd.f32 %v757_v3, %v2052_v7  ;;  %v759_v6 = vpop.f32.mrb[29].mxu1 }
 0x22c   : > { %v2140_v9 = vadd.f32 %v759_v6, %v2054_v8  ;;  %v761_v11 = vpop.f32.mrb[30].mxu1 }
 0x22d   : > { %v2143_v0 = vadd.f32 %v761_v11, %v2052_v7  ;;  %v763_v14 = vpop.f32.mrb[31].mxu1 }
 0x22e   : > { %v2146_v16 = vadd.f32 %v763_v14, %v2054_v8  ;;  %v896_v17 = vmax.f32 %v2137_v5, %v2140_v9 }
 0x230   : > { %897 = vmax.xlane.f32.xlu0 %v896_v17  ;;  %v899_v18 = vmax.f32 %v2143_v0, %v2146_v16 }
 0x232   : > { %v767_v20 = vpop.f32.mrb[32].mxu1  ;;  %900 = vmax.xlane.f32.xlu1 %v899_v18 }
 0x233   : > { %v2153_v22 = vadd.f32 %v767_v20, %v2052_v7  ;;  %v769_v24 = vpop.f32.mrb[33].mxu1 }
 0x234   : > { %v2156_v26 = vadd.f32 %v769_v24, %v2054_v8  ;;  %v771_v28 = vpop.f32.mrb[34].mxu1 }
 0x235   : > { %v2159_v29 = vadd.f32 %v771_v28, %v2052_v7  ;;  %v773_v35 = vpop.f32.mrb[35].mxu1 }
 0x236   : > { %v2162_v40 = vadd.f32 %v773_v35, %v2054_v8  ;;  %v902_v42 = vmax.f32 %v2153_v22, %v2156_v26 }
 0x238   : > { %903 = vmax.xlane.f32.xlu0 %v902_v42  ;;  %v905_v44 = vmax.f32 %v2159_v29, %v2162_v40 }
 0x23a   : > { %v777_v45 = vpop.f32.mrb[36].mxu1  ;;  %906 = vmax.xlane.f32.xlu1 %v905_v44 }
 0x23b   : > { %v2169_v46 = vadd.f32 %v777_v45, %v2052_v7  ;;  %v779_v48 = vpop.f32.mrb[37].mxu1 }
 0x23c   : > { %v2172_v50 = vadd.f32 %v779_v48, %v2054_v8  ;;  %v781_v52 = vpop.f32.mrb[38].mxu1 }
 0x23d   : > { %v2175_v54 = vadd.f32 %v781_v52, %v2052_v7  ;;  %v783_v55 = vpop.f32.mrb[39].mxu1 }
 0x23e   : > { %v2178_v56 = vadd.f32 %v783_v55, %v2054_v8  ;;  %v908_v58 = vmax.f32 %v2169_v46, %v2172_v50 }
 0x240   : > { %909 = vmax.xlane.f32.xlu0 %v908_v58  ;;  %v911_v60 = vmax.f32 %v2175_v54, %v2178_v56 }
 0x242   : > { %v787_v62 = vpop.f32.mrb[40].mxu1  ;;  %912 = vmax.xlane.f32.xlu1 %v911_v60 }
 0x243   : > { %v2185_v1 = vadd.f32 %v787_v62, %v2052_v7  ;;  %v789_v2 = vpop.f32.mrb[41].mxu1 }
 0x244   : > { %v2188_v3 = vadd.f32 %v789_v2, %v2054_v8  ;;  %v791_v6 = vpop.f32.mrb[42].mxu1 }
 0x245   : > { %v2191_v11 = vadd.f32 %v791_v6, %v2052_v7  ;;  %v793_v14 = vpop.f32.mrb[43].mxu1 }
 0x246   : > { %v2194_v17 = vadd.f32 %v793_v14, %v2054_v8  ;;  %v914_v18 = vmax.f32 %v2185_v1, %v2188_v3 }
 0x248   : > { %915 = vmax.xlane.f32.xlu0 %v914_v18  ;;  %v917_v20 = vmax.f32 %v2191_v11, %v2194_v17 }
 0x24a   : > { %v797_v24 = vpop.f32.mrb[44].mxu1  ;;  %918 = vmax.xlane.f32.xlu1 %v917_v20 }
 0x24b   : > { %v2201_v28 = vadd.f32 %v797_v24, %v2052_v7  ;;  %v799_v35 = vpop.f32.mrb[45].mxu1 }
 0x24c   : > { %v2204_v42 = vadd.f32 %v799_v35, %v2054_v8  ;;  %v801_v44 = vpop.f32.mrb[46].mxu1 }
 0x24d   : > { %v2207_v45 = vadd.f32 %v801_v44, %v2052_v7  ;;  %v803_v48 = vpop.f32.mrb[47].mxu1 }
 0x24e   : > { %v2210_v52 = vadd.f32 %v803_v48, %v2054_v8  ;;  %v920_v55 = vmax.f32 %v2201_v28, %v2204_v42 }
 0x250   : > { %921 = vmax.xlane.f32.xlu0 %v920_v55  ;;  %v923_v58 = vmax.f32 %v2207_v45, %v2210_v52 }
 0x252   : > { %v807_v60 = vpop.f32.mrb[48].mxu1  ;;  %924 = vmax.xlane.f32.xlu1 %v923_v58 }
 0x253   : > { %v2217_v62 = vadd.f32 %v807_v60, %v2052_v7  ;;  %v809_v2 = vpop.f32.mrb[49].mxu1 }
 0x254   : > { %v2220_v6 = vadd.f32 %v809_v2, %v2054_v8  ;;  %v811_v14 = vpop.f32.mrb[50].mxu1 }
 0x255   : > { %v2223_v18 = vadd.f32 %v811_v14, %v2052_v7  ;;  %v813_v20 = vpop.f32.mrb[51].mxu1 }
 0x256   : > { %v2226_v24 = vadd.f32 %v813_v20, %v2054_v8  ;;  %v926_v35 = vmax.f32 %v2217_v62, %v2220_v6 }
 0x258   : > { %927 = vmax.xlane.f32.xlu0 %v926_v35  ;;  %v929_v44 = vmax.f32 %v2223_v18, %v2226_v24 }
 0x25a   : > { %v817_v48 = vpop.f32.mrb[52].mxu1  ;;  %930 = vmax.xlane.f32.xlu1 %v929_v44 }
 0x25b   : > { %v2233_v55 = vadd.f32 %v817_v48, %v2052_v7  ;;  %v819_v58 = vpop.f32.mrb[53].mxu1 }
 0x25c   : > { %v2236_v60 = vadd.f32 %v819_v58, %v2054_v8  ;;  %v821_v2 = vpop.f32.mrb[54].mxu1 }
 0x25d   : > { %v2239_v14 = vadd.f32 %v821_v2, %v2052_v7  ;;  %v823_v20 = vpop.f32.mrb[55].mxu1 }
 0x25e   : > { %v2242_v4 = vadd.f32 %v823_v20, %v2054_v8  ;;  %v932_v35 = vmax.f32 %v2233_v55, %v2236_v60 }
 0x260   : > { %2516 = vst [vmem:[#allocation21_spill] sm:$0xff] %v2242_v4  ;;  %933 = vmax.xlane.f32.xlu0 %v932_v35  ;;  %v935_v44 = vmax.f32 %v2239_v14, %v2242_v4 }
 0x262   : > { %v827_v48 = vpop.f32.mrb[56].mxu1  ;;  %936 = vmax.xlane.f32.xlu1 %v935_v44 }
 0x263   : > { %v2249_v58 = vadd.f32 %v827_v48, %v2052_v7  ;;  %v829_v38 = vpop.f32.mrb[57].mxu1 }
 0x264   : > { %v2252_v2 = vadd.f32 %v829_v38, %v2054_v8  ;;  %v831_v37 = vpop.f32.mrb[58].mxu1 }
 0x265   : > { %2517 = vst [vmem:[#allocation22_spill] sm:$0xff] %v2249_v58  ;;  %v2255_v20 = vadd.f32 %v831_v37, %v2052_v7  ;;  %v833_v36 = vpop.f32.mrb[59].mxu1 }
 0x266   : > { %2518 = vst [vmem:[#allocation23_spill] sm:$0xff] %v2252_v2  ;;  %v2258_v34 = vadd.f32 %v833_v36, %v2054_v8  ;;  %v938_v35 = vmax.f32 %v2249_v58, %v2252_v2 }
 0x267   : > { %2519 = vst [vmem:[#allocation24_spill] sm:$0xff] %v2255_v20 }
 0x268   : > { %2520 = vst [vmem:[#allocation25_spill] sm:$0xff] %v2258_v34  ;;  %939 = vmax.xlane.f32.xlu0 %v938_v35  ;;  %v941_v44 = vmax.f32 %v2255_v20, %v2258_v34 }
 0x26a   : > { %v837_v48 = vpop.f32.mrb[60].mxu1  ;;  %942 = vmax.xlane.f32.xlu1 %v941_v44 }
 0x26b   : > { %v2265_v38 = vadd.f32 %v837_v48, %v2052_v7  ;;  %v839_v30 = vpop.f32.mrb[61].mxu1 }
 0x26c   : > { %v2268_v37 = vadd.f32 %v839_v30, %v2054_v8  ;;  %v841_v27 = vpop.f32.mrb[62].mxu1 }
 0x26d   : > { %2521 = vst [vmem:[#allocation26_spill] sm:$0xff] %v2265_v38  ;;  %v2271_v36 = vadd.f32 %v841_v27, %v2052_v7  ;;  %v843_v33 = vpop.f32.mrb[63].mxu1 }
 0x26e   : > { %2522 = vst [vmem:[#allocation27_spill] sm:$0xff] %v2268_v37  ;;  %v2274_v32 = vadd.f32 %v843_v33, %v2054_v8  ;;  %v944_v35 = vmax.f32 %v2265_v38, %v2268_v37 }
 0x26f   : > { %2523 = vst [vmem:[#allocation28_spill] sm:$0xff] %v2271_v36 }
 0x270   : > { %2524 = vst [vmem:[#allocation29_spill] sm:$0xff] %v2274_v32  ;;  %945 = vmax.xlane.f32.xlu0 %v944_v35  ;;  %v947_v44 = vmax.f32 %v2271_v36, %v2274_v32 }
 0x272   : > { %v847_v48 = vpop.f32.mrb[64].mxu1  ;;  %948 = vmax.xlane.f32.xlu1 %v947_v44 }
 0x273   : > { %v2281_v30 = vadd.f32 %v847_v48, %v2052_v7  ;;  %v849_v34 = vpop.f32.mrb[65].mxu1 }
 0x274   : > { %v2284_v27 = vadd.f32 %v849_v34, %v2054_v8  ;;  %v851_v20 = vpop.f32.mrb[66].mxu1 }
 0x275   : > { %2525 = vst [vmem:[#allocation30_spill] sm:$0xff] %v2281_v30  ;;  %v2287_v33 = vadd.f32 %v851_v20, %v2052_v7  ;;  %v853_v2 = vpop.f32.mrb[67].mxu1 }
 0x276   : > { %2526 = vst [vmem:[#allocation31_spill] sm:$0xff] %v2284_v27  ;;  %v2290_v37 = vadd.f32 %v853_v2, %v2054_v8  ;;  %v950_v35 = vmax.f32 %v2281_v30, %v2284_v27 }
 0x277   : > { %2527 = vst [vmem:[#allocation32_spill] sm:$0xff] %v2287_v33 }
 0x278   : > { %2528 = vst [vmem:[#allocation33_spill] sm:$0xff] %v2290_v37  ;;  %951 = vmax.xlane.f32.xlu0 %v950_v35  ;;  %v953_v44 = vmax.f32 %v2287_v33, %v2290_v37  ;;  %v309_v35 = vld [vmem:[%s2481_s5 + $0x8] sm:$0xff] }
 0x27a   : > { %v857_v48 = vpop.f32.mrb[68].mxu1  ;;  %954 = vmax.xlane.f32.xlu1 %v953_v44  ;;  %v308_v44 = vld [vmem:[%s2481_s5] sm:$0xff] }
 0x27b   : > { %v2297_v34 = vadd.f32 %v857_v48, %v2052_v7  ;;  %v859_v32 = vpop.f32.mrb[69].mxu1 }
 0x27c   : > { %v2300_v20 = vadd.f32 %v859_v32, %v2054_v8  ;;  %v861_v36 = vpop.f32.mrb[70].mxu1 }
 0x27d   : > { %2529 = vst [vmem:[#allocation34_spill] sm:$0xff] %v2297_v34  ;;  %v863_v38 = vpop.f32.mrb[71].mxu1 }
 0x27e   : > { %2530 = vst [vmem:[#allocation35_spill] sm:$0xff] %v2300_v20  ;;  %v956_v2 = vmax.f32 %v2297_v34, %v2300_v20 }
 0x280   : > { %957 = vmax.xlane.f32.xlu0 %v956_v2 }
 0x28b   : > { %319 = vperm.xlu1 %1536, %v309_v35  }
 0x295   : > { %v868_v48 = vpop.xlane.xlu0 %867 }
 0x296   : > { %v962_v37 = vsub.f32 %v2057_v10, %v868_v48  ;;  %v963_v32 = vsub.f32 %v2060_v12, %v868_v48  ;;  %314 = vperm.xlu0 %1535, %v308_v44  }
 0x297   : > { %v871_v33 = vpop.xlane.xlu1 %870 }
 0x298   : > { %v1026_v27 = vmul.f32 1.442695, %v962_v37  ;;  %v964_v20 = vsub.f32 %v2063_v13, %v871_v33  ;;  %v965_v2 = vsub.f32 %v2066_v15, %v871_v33  ;;  %v1028_v34 = vmul.f32 1.442695, %v963_v32 }
 0x29a   : > { %v1030_v30 = vmul.f32 1.442695, %v964_v20  ;;  %v1032_v58 = vmul.f32 1.442695, %v965_v2  ;;  %1541 = vpow2.f32 %v1026_v27 }
 0x29c   : > { %1543 = vpow2.f32 %v1030_v30 }
 0x29d   : > { %1545 = vpow2.f32 %v1032_v58  ;;  %v874_v35 = vpop.xlane.xlu0 %873 }
 0x29e   : > { %1547 = vpow2.f32 %v1028_v34  ;;  %v966_v4 = vsub.f32 %v2073_v19, %v874_v35  ;;  %v967_v10 = vsub.f32 %v2076_v21, %v874_v35  ;;  %v2323_v35 = vadd.f32 %v861_v36, %v2052_v7 }
 0x29f   : > { %v877_v12 = vpop.xlane.xlu1 %876 }
 0x2a0   : > { %v1034_v44 = vmul.f32 1.442695, %v966_v4  ;;  %v968_v37 = vsub.f32 %v2079_v23, %v877_v12  ;;  %v969_v13 = vsub.f32 %v2082_v25, %v877_v12  ;;  %v1036_v48 = vmul.f32 1.442695, %v967_v10 }
 0x2a1   : > { %v2326_v10 = vadd.f32 %v863_v38, %v2054_v8 }
 0x2a2   : > { %v1038_v15 = vmul.f32 1.442695, %v968_v37  ;;  %v1040_v33 = vmul.f32 1.442695, %v969_v13  ;;  %1549 = vpow2.f32 %v1034_v44 }
 0x2a3   : > { %v959_v7 = vmax.f32 %v2323_v35, %v2326_v10 }
 0x2a4   : > { %1551 = vpow2.f32 %v1038_v15  ;;  %v1542_v27 = vpop.eup %1541 }
 0x2a5   : > { %1553 = vpow2.f32 %v1040_v33  ;;  %v880_v58 = vpop.xlane.xlu0 %879 }
 0x2a6   : > { %v1544_v30 = vpop.eup %1543  ;;  %1555 = vpow2.f32 %v1036_v48  ;;  %v970_v19 = vsub.f32 %v2089_v31, %v880_v58  ;;  %v971_v21 = vsub.f32 %v2092_v39, %v880_v58 }
 0x2a7   : > { %v1546_v34 = vpop.eup %1545  ;;  %v883_v4 = vpop.xlane.xlu1 %882  ;;  %v1154_v2 = vpack.c.bf16 %v1544_v30, %v1542_v27 }
 0x2a8   : > { %v1548_v20 = vpop.eup %1547  ;;  %v1042_v23 = vmul.f32 1.442695, %v970_v19  ;;  %v972_v25 = vsub.f32 %v2095_v41, %v883_v4  ;;  %v973_v32 = vsub.f32 %v2098_v43, %v883_v4  ;;  %v1044_v44 = vmul.f32 1.442695, %v971_v21 }
 0x2a9   : > { %v1155_v12 = vpack.c.bf16 %v1546_v34, %v1548_v20 }
 0x2aa   : > { %v1046_v31 = vmul.f32 1.442695, %v972_v25  ;;  %v1048_v37 = vmul.f32 1.442695, %v973_v32  ;;  %1557 = vpow2.f32 %v1042_v23 }
 0x2ab   : > { %1190 = vmatprep.subr.bf16.mxu0 %v1155_v12  ;;  %1243 = vmatprep.subr.bf16.mxu1 %v1155_v12 }
 0x2ac   : > { %1559 = vpow2.f32 %v1046_v31  ;;  %1191 = vmatpush1.bf16.xpose.msra.mxu0 %v1154_v2  ;;  %1244 = vmatpush1.bf16.xpose.msra.mxu1 %v1154_v2  ;;  %v1550_v39 = vpop.eup %1549 }
 0x2ad   : > { %1561 = vpow2.f32 %v1048_v37  ;;  %v886_v41 = vpop.xlane.xlu0 %885 }
 0x2ae   : > { %v1552_v43 = vpop.eup %1551  ;;  %1563 = vpow2.f32 %v1044_v44  ;;  %v974_v8 = vsub.f32 %v2105_v47, %v886_v41  ;;  %v975_v38 = vsub.f32 %v2108_v49, %v886_v41 }
 0x2af   : > { %v1554_v36 = vpop.eup %1553  ;;  %960 = vmax.xlane.f32.xlu1 %v959_v7  ;;  %v889_v13 = vpop.xlane.xlu1 %888  ;;  %v1156_v58 = vpack.c.bf16 %v1552_v43, %v1550_v39 }
 0x2b0   : > { %v1556_v48 = vpop.eup %1555  ;;  %v1050_v15 = vmul.f32 1.442695, %v974_v8  ;;  %v976_v33 = vsub.f32 %v2111_v51, %v889_v13  ;;  %v977_v27 = vsub.f32 %v2114_v53, %v889_v13  ;;  %v1052_v19 = vmul.f32 1.442695, %v975_v38 }
 0x2b1   : > { %v1157_v30 = vpack.c.bf16 %v1554_v36, %v1556_v48 }
 0x2b2   : > { %v1054_v21 = vmul.f32 1.442695, %v976_v33  ;;  %v1056_v34 = vmul.f32 1.442695, %v977_v27  ;;  %1565 = vpow2.f32 %v1050_v15 }
 0x2b3   : > { %1192 = vmatprep.subr.bf16.mxu0 %v1157_v30  ;;  %1245 = vmatprep.subr.bf16.mxu1 %v1157_v30 }
 0x2b4   : > { %1567 = vpow2.f32 %v1054_v21  ;;  %1193 = vmatpush1.bf16.xpose.msra.mxu0 %v1156_v58  ;;  %1246 = vmatpush1.bf16.xpose.msra.mxu1 %v1156_v58  ;;  %v1558_v47 = vpop.eup %1557  ;;  %v311_v58 = vld [vmem:[%s2481_s5 + $0x18] sm:$0xff] }
 0x2b5   : > { %1569 = vpow2.f32 %v1056_v34  ;;  %v892_v49 = vpop.xlane.xlu0 %891 }
 0x2b6   : > { %v1560_v4 = vpop.eup %1559  ;;  %1571 = vpow2.f32 %v1052_v19  ;;  %v978_v51 = vsub.f32 %v2121_v57, %v892_v49  ;;  %v979_v53 = vsub.f32 %v2124_v59, %v892_v49 }
 0x2b7   : > { %v1562_v20 = vpop.eup %1561  ;;  %v895_v23 = vpop.xlane.xlu1 %894  ;;  %v1158_v44 = vpack.c.bf16 %v1560_v4, %v1558_v47 }
 0x2b8   : > { %v1564_v25 = vpop.eup %1563  ;;  %v1058_v32 = vmul.f32 1.442695, %v978_v51  ;;  %v980_v2 = vsub.f32 %v2127_v61, %v895_v23  ;;  %v981_v12 = vsub.f32 %v2130_v63, %v895_v23  ;;  %v1060_v37 = vmul.f32 1.442695, %v979_v53  ;;  %v310_v61 = vld [vmem:[%s2481_s5 + $0x10] sm:$0xff] }
 0x2b9   : > { %v1159_v31 = vpack.c.bf16 %v1562_v20, %v1564_v25 }
 0x2ba   : > { %v1062_v39 = vmul.f32 1.442695, %v980_v2  ;;  %v1064_v41 = vmul.f32 1.442695, %v981_v12  ;;  %1573 = vpow2.f32 %v1058_v32 }
 0x2bb   : > { %1194 = vmatprep.subr.bf16.mxu0 %v1159_v31  ;;  %1247 = vmatprep.subr.bf16.mxu1 %v1159_v31 }
 0x2bc   : > { %1575 = vpow2.f32 %v1062_v39  ;;  %1195 = vmatpush1.bf16.xpose.msra.mxu0 %v1158_v44  ;;  %1248 = vmatpush1.bf16.xpose.msra.mxu1 %v1158_v44  ;;  %v1566_v57 = vpop.eup %1565 }
 0x2bd   : > { %1577 = vpow2.f32 %v1064_v41  ;;  %v898_v59 = vpop.xlane.xlu0 %897 }
 0x2be   : > { %v1568_v7 = vpop.eup %1567  ;;  %1579 = vpow2.f32 %v1060_v37  ;;  %v982_v63 = vsub.f32 %v2137_v5, %v898_v59  ;;  %v983_v43 = vsub.f32 %v2140_v9, %v898_v59 }
 0x2bf   : > { %v1570_v8 = vpop.eup %1569  ;;  %v901_v38 = vpop.xlane.xlu1 %900  ;;  %v1160_v33 = vpack.c.bf16 %v1568_v7, %v1566_v57 }
 0x2c0   : > { %v1572_v36 = vpop.eup %1571  ;;  %v1066_v13 = vmul.f32 1.442695, %v982_v63  ;;  %v984_v48 = vsub.f32 %v2143_v0, %v901_v38  ;;  %v985_v15 = vsub.f32 %v2146_v16, %v901_v38  ;;  %324 = vperm.xlu1 %1536, %v310_v61   ;;  %v1068_v30 = vmul.f32 1.442695, %v983_v43 }
 0x2c1   : > { %v1161_v27 = vpack.c.bf16 %v1570_v8, %v1572_v36  ;;  %v1800_v38 = vmov 1065369472  }
 0x2c2   : > { %v1070_v19 = vmul.f32 1.442695, %v984_v48  ;;  %v1072_v5 = vmul.f32 1.442695, %v985_v15  ;;  %1581 = vpow2.f32 %v1066_v13  ;;  %1275 = vmatprep.mubr.bf16.mxu1 %v1800_v38 }
 0x2c3   : > { %1196 = vmatprep.subr.bf16.mxu0 %v1161_v27  ;;  %1249 = vmatprep.subr.bf16.mxu1 %v1161_v27 }
 0x2c4   : > { %1583 = vpow2.f32 %v1070_v19  ;;  %1197 = vmatpush1.bf16.xpose.msra.mxu0 %v1160_v33  ;;  %1250 = vmatpush1.bf16.xpose.msra.mxu1 %v1160_v33  ;;  %v1574_v9 = vpop.eup %1573 }
 0x2c5   : > { %1585 = vpow2.f32 %v1072_v5  ;;  %329 = vperm.xlu1 %1536, %v311_v58   ;;  %v904_v0 = vpop.xlane.xlu0 %903 }
 0x2c6   : > { %v1576_v16 = vpop.eup %1575  ;;  %1587 = vpow2.f32 %v1068_v30  ;;  %v986_v21 = vsub.f32 %v2153_v22, %v904_v0  ;;  %v987_v34 = vsub.f32 %v2156_v26, %v904_v0 }
 0x2c7   : > { %v1578_v47 = vpop.eup %1577  ;;  %v907_v49 = vpop.xlane.xlu1 %906  ;;  %v1162_v23 = vpack.c.bf16 %v1576_v16, %v1574_v9 }
 0x2c8   : > { %v1580_v4 = vpop.eup %1579  ;;  %v1074_v51 = vmul.f32 1.442695, %v986_v21  ;;  %v988_v53 = vsub.f32 %v2159_v29, %v907_v49  ;;  %v989_v20 = vsub.f32 %v2162_v40, %v907_v49  ;;  %v1076_v32 = vmul.f32 1.442695, %v987_v34 }
 0x2c9   : > { %v1163_v25 = vpack.c.bf16 %v1578_v47, %v1580_v4 }
 0x2ca   : > { %v1078_v2 = vmul.f32 1.442695, %v988_v53  ;;  %v1080_v12 = vmul.f32 1.442695, %v989_v20  ;;  %1589 = vpow2.f32 %v1074_v51 }
 0x2cb   : > { %1198 = vmatprep.subr.bf16.mxu0 %v1163_v25  ;;  %1251 = vmatprep.subr.bf16.mxu1 %v1163_v25 }
 0x2cc   : > { %1591 = vpow2.f32 %v1078_v2  ;;  %1199 = vmatpush1.bf16.xpose.msra.mxu0 %v1162_v23  ;;  %1252 = vmatpush1.bf16.xpose.msra.mxu1 %v1162_v23  ;;  %v1582_v22 = vpop.eup %1581 }
 0x2cd   : > { %1593 = vpow2.f32 %v1080_v12  ;;  %v910_v26 = vpop.xlane.xlu0 %909 }
 0x2ce   : > { %v1584_v44 = vpop.eup %1583  ;;  %1595 = vpow2.f32 %v1076_v32  ;;  %v990_v29 = vsub.f32 %v2169_v46, %v910_v26  ;;  %v991_v40 = vsub.f32 %v2172_v50, %v910_v26 }
 0x2cf   : > { %v1586_v31 = vpop.eup %1585  ;;  %v913_v37 = vpop.xlane.xlu1 %912  ;;  %v1164_v61 = vpack.c.bf16 %v1584_v44, %v1582_v22 }
 0x2d0   : > { %v1588_v39 = vpop.eup %1587  ;;  %v1082_v41 = vmul.f32 1.442695, %v990_v29  ;;  %v992_v57 = vsub.f32 %v2175_v54, %v913_v37  ;;  %v993_v59 = vsub.f32 %v2178_v56, %v913_v37  ;;  %v1084_v63 = vmul.f32 1.442695, %v991_v40 }
 0x2d1   : > { %v1165_v7 = vpack.c.bf16 %v1586_v31, %v1588_v39 }
 0x2d2   : > { %v1086_v43 = vmul.f32 1.442695, %v992_v57  ;;  %v1088_v8 = vmul.f32 1.442695, %v993_v59  ;;  %1597 = vpow2.f32 %v1082_v41 }
 0x2d3   : > { %1200 = vmatprep.subr.bf16.mxu0 %v1165_v7  ;;  %1253 = vmatprep.subr.bf16.mxu1 %v1165_v7 }
 0x2d4   : > { %1599 = vpow2.f32 %v1086_v43  ;;  %1201 = vmatpush1.bf16.xpose.msra.mxu0 %v1164_v61  ;;  %1254 = vmatpush1.bf16.xpose.msra.mxu1 %v1164_v61  ;;  %v1590_v46 = vpop.eup %1589 }
 0x2d5   : > { %1601 = vpow2.f32 %v1088_v8  ;;  %v916_v50 = vpop.xlane.xlu0 %915 }
 0x2d6   : > { %v1592_v54 = vpop.eup %1591  ;;  %1603 = vpow2.f32 %v1084_v63  ;;  %v994_v56 = vsub.f32 %v2185_v1, %v916_v50  ;;  %v995_v36 = vsub.f32 %v2188_v3, %v916_v50 }
 0x2d7   : > { %v1594_v13 = vpop.eup %1593  ;;  %v919_v48 = vpop.xlane.xlu1 %918  ;;  %v1166_v30 = vpack.c.bf16 %v1592_v54, %v1590_v46  ;;  %v2531_v46 = vld [vmem:[#allocation21_spill] sm:$0xff] }
 0x2d8   : > { %v1596_v15 = vpop.eup %1595  ;;  %v1090_v33 = vmul.f32 1.442695, %v994_v56  ;;  %v996_v27 = vsub.f32 %v2191_v11, %v919_v48  ;;  %v997_v58 = vsub.f32 %v2194_v17, %v919_v48  ;;  %v1092_v5 = vmul.f32 1.442695, %v995_v36 }
 0x2d9   : > { %v1167_v19 = vpack.c.bf16 %v1594_v13, %v1596_v15 }
 0x2da   : > { %v1094_v9 = vmul.f32 1.442695, %v996_v27  ;;  %v1096_v0 = vmul.f32 1.442695, %v997_v58  ;;  %1605 = vpow2.f32 %v1090_v33  ;;  %v2532_v33 = vld [vmem:[#allocation22_spill] sm:$0xff]  ;;  %v2533_v27 = vld [vmem:[#allocation23_spill] sm:$0xff] }
 0x2db   : > { %1202 = vmatprep.subr.bf16.mxu0 %v1167_v19  ;;  %1255 = vmatprep.subr.bf16.mxu1 %v1167_v19 }
 0x2dc   : > { %1607 = vpow2.f32 %v1094_v9  ;;  %1203 = vmatpush1.bf16.xpose.msra.mxu0 %v1166_v30  ;;  %1256 = vmatpush1.bf16.xpose.msra.mxu1 %v1166_v30  ;;  %v1598_v1 = vpop.eup %1597 }
 0x2dd   : > { %1609 = vpow2.f32 %v1096_v0  ;;  %v922_v3 = vpop.xlane.xlu0 %921  ;;  %v2534_v0 = vld [vmem:[#allocation24_spill] sm:$0xff] }
 0x2de   : > { %v1600_v16 = vpop.eup %1599  ;;  %1611 = vpow2.f32 %v1092_v5  ;;  %v998_v11 = vsub.f32 %v2201_v28, %v922_v3  ;;  %v999_v17 = vsub.f32 %v2204_v42, %v922_v3  ;;  %v2535_v3 = vld [vmem:[#allocation25_spill] sm:$0xff] }
 0x2df   : > { %v1602_v21 = vpop.eup %1601  ;;  %v925_v34 = vpop.xlane.xlu1 %924  ;;  %v1168_v53 = vpack.c.bf16 %v1600_v16, %v1598_v1 }
 0x2e0   : > { %v1604_v47 = vpop.eup %1603  ;;  %v1098_v49 = vmul.f32 1.442695, %v998_v11  ;;  %v1000_v4 = vsub.f32 %v2207_v45, %v925_v34  ;;  %v1001_v51 = vsub.f32 %v2210_v52, %v925_v34  ;;  %v1100_v23 = vmul.f32 1.442695, %v999_v17 }
 0x2e1   : > { %v1169_v20 = vpack.c.bf16 %v1602_v21, %v1604_v47 }
 0x2e2   : > { %v1102_v25 = vmul.f32 1.442695, %v1000_v4  ;;  %v1104_v32 = vmul.f32 1.442695, %v1001_v51  ;;  %1613 = vpow2.f32 %v1098_v49 }
 0x2e3   : > { %1204 = vmatprep.subr.bf16.mxu0 %v1169_v20  ;;  %1257 = vmatprep.subr.bf16.mxu1 %v1169_v20 }
 0x2e4   : > { %1615 = vpow2.f32 %v1102_v25  ;;  %1205 = vmatpush1.bf16.xpose.msra.mxu0 %v1168_v53  ;;  %1258 = vmatpush1.bf16.xpose.msra.mxu1 %v1168_v53  ;;  %v1606_v28 = vpop.eup %1605  ;;  %v2536_v53 = vld [vmem:[#allocation26_spill] sm:$0xff] }
 0x2e5   : > { %1617 = vpow2.f32 %v1104_v32  ;;  %v928_v42 = vpop.xlane.xlu0 %927 }
 0x2e6   : > { %v1608_v2 = vpop.eup %1607  ;;  %1619 = vpow2.f32 %v1100_v23  ;;  %v1002_v45 = vsub.f32 %v2217_v62, %v928_v42  ;;  %v1003_v52 = vsub.f32 %v2220_v6, %v928_v42  ;;  %v2537_v23 = vld [vmem:[#allocation27_spill] sm:$0xff] }
 0x2e7   : > { %v1610_v12 = vpop.eup %1609  ;;  %v931_v22 = vpop.xlane.xlu1 %930  ;;  %v1170_v31 = vpack.c.bf16 %v1608_v2, %v1606_v28 }
 0x2e8   : > { %v1612_v26 = vpop.eup %1611  ;;  %v1106_v44 = vmul.f32 1.442695, %v1002_v45  ;;  %v1004_v29 = vsub.f32 %v2223_v18, %v931_v22  ;;  %v1005_v40 = vsub.f32 %v2226_v24, %v931_v22  ;;  %v1108_v39 = vmul.f32 1.442695, %v1003_v52 }
 0x2e9   : > { %v1171_v37 = vpack.c.bf16 %v1610_v12, %v1612_v26  ;;  %v2538_v12 = vld [vmem:[#allocation28_spill] sm:$0xff]  ;;  %v2539_v26 = vld [vmem:[#allocation29_spill] sm:$0xff] }
 0x2ea   : > { %v1110_v41 = vmul.f32 1.442695, %v1004_v29  ;;  %v1112_v57 = vmul.f32 1.442695, %v1005_v40  ;;  %1621 = vpow2.f32 %v1106_v44 }
 0x2eb   : > { %1206 = vmatprep.subr.bf16.mxu0 %v1171_v37  ;;  %1259 = vmatprep.subr.bf16.mxu1 %v1171_v37 }
 0x2ec   : > { %1623 = vpow2.f32 %v1110_v41  ;;  %1207 = vmatpush1.bf16.xpose.msra.mxu0 %v1170_v31  ;;  %1260 = vmatpush1.bf16.xpose.msra.mxu1 %v1170_v31  ;;  %v1614_v62 = vpop.eup %1613 }
 0x2ed   : > { %1625 = vpow2.f32 %v1112_v57  ;;  %v934_v6 = vpop.xlane.xlu0 %933  ;;  %v2540_v57 = vld [vmem:[#allocation30_spill] sm:$0xff] }
 0x2ee   : > { %v1616_v59 = vpop.eup %1615  ;;  %1627 = vpow2.f32 %v1108_v39  ;;  %v1006_v18 = vsub.f32 %v2233_v55, %v934_v6  ;;  %v1007_v24 = vsub.f32 %v2236_v60, %v934_v6  ;;  %v2541_v6 = vld [vmem:[#allocation31_spill] sm:$0xff] }
 0x2ef   : > { %v1618_v61 = vpop.eup %1617  ;;  %v937_v7 = vpop.xlane.xlu1 %936  ;;  %v1172_v54 = vpack.c.bf16 %v1616_v59, %v1614_v62 }
 0x2f0   : > { %v1620_v63 = vpop.eup %1619  ;;  %v1114_v43 = vmul.f32 1.442695, %v1006_v18  ;;  %v1008_v8 = vsub.f32 %v2239_v14, %v937_v7  ;;  %v1009_v50 = vsub.f32 %v2531_v46, %v937_v7  ;;  %v1116_v36 = vmul.f32 1.442695, %v1007_v24 }
 0x2f1   : > { %v1173_v56 = vpack.c.bf16 %v1618_v61, %v1620_v63 }
 0x2f2   : > { %v1118_v13 = vmul.f32 1.442695, %v1008_v8  ;;  %v1120_v48 = vmul.f32 1.442695, %v1009_v50  ;;  %1629 = vpow2.f32 %v1114_v43  ;;  %v2542_v8 = vld [vmem:[#allocation32_spill] sm:$0xff]  ;;  %v2543_v50 = vld [vmem:[#allocation33_spill] sm:$0xff] }
 0x2f3   : > { %1208 = vmatprep.subr.bf16.mxu0 %v1173_v56  ;;  %1261 = vmatprep.subr.bf16.mxu1 %v1173_v56 }
 0x2f4   : > { %1631 = vpow2.f32 %v1118_v13  ;;  %1209 = vmatpush1.bf16.xpose.msra.mxu0 %v1172_v54  ;;  %1262 = vmatpush1.bf16.xpose.msra.mxu1 %v1172_v54  ;;  %v1622_v55 = vpop.eup %1621 }
 0x2f5   : > { %1633 = vpow2.f32 %v1120_v48  ;;  %v940_v60 = vpop.xlane.xlu0 %939 }
 0x2f6   : > { %v1624_v15 = vpop.eup %1623  ;;  %1635 = vpow2.f32 %v1116_v36  ;;  %v1010_v14 = vsub.f32 %v2532_v33, %v940_v60  ;;  %v1011_v58 = vsub.f32 %v2533_v27, %v940_v60 }
 0x2f7   : > { %v1626_v30 = vpop.eup %1625  ;;  %v943_v19 = vpop.xlane.xlu1 %942  ;;  %v1174_v11 = vpack.c.bf16 %v1624_v15, %v1622_v55 }
 0x2f8   : > { %v1628_v5 = vpop.eup %1627  ;;  %v1122_v9 = vmul.f32 1.442695, %v1010_v14  ;;  %v1012_v1 = vsub.f32 %v2534_v0, %v943_v19  ;;  %v1013_v16 = vsub.f32 %v2535_v3, %v943_v19  ;;  %v1124_v21 = vmul.f32 1.442695, %v1011_v58  ;;  %v2544_v0 = vld [vmem:[#allocation14_spill] sm:$0xff]  ;;  %v2545_v3 = vld [vmem:[#allocation15_spill] sm:$0xff] }
 0x2f9   : > { %v1175_v17 = vpack.c.bf16 %v1626_v30, %v1628_v5 }
 0x2fa   : > { %v1126_v34 = vmul.f32 1.442695, %v1012_v1  ;;  %v1128_v47 = vmul.f32 1.442695, %v1013_v16  ;;  %1637 = vpow2.f32 %v1122_v9 }
 0x2fb   : > { %1210 = vmatprep.subr.bf16.mxu0 %v1175_v17  ;;  %1263 = vmatprep.subr.bf16.mxu1 %v1175_v17 }
 0x2fc   : > { %1639 = vpow2.f32 %v1126_v34  ;;  %1211 = vmatpush1.bf16.xpose.msra.mxu0 %v1174_v11  ;;  %1264 = vmatpush1.bf16.xpose.msra.mxu1 %v1174_v11  ;;  %v1630_v49 = vpop.eup %1629  ;;  %v2546_v11 = vld [vmem:[#allocation12_spill] sm:$0xff] }
 0x2fd   : > { %1641 = vpow2.f32 %v1128_v47  ;;  %v946_v4 = vpop.xlane.xlu0 %945 }
 0x2fe   : > { %v1632_v51 = vpop.eup %1631  ;;  %1643 = vpow2.f32 %v1124_v21  ;;  %v1014_v20 = vsub.f32 %v2536_v53, %v946_v4  ;;  %v1015_v25 = vsub.f32 %v2537_v23, %v946_v4  ;;  %v2547_v21 = vld [vmem:[#allocation13_spill] sm:$0xff] }
 0x2ff   : > { %v1634_v32 = vpop.eup %1633  ;;  %v949_v28 = vpop.xlane.xlu1 %948  ;;  %v1176_v42 = vpack.c.bf16 %v1632_v51, %v1630_v49 }
 0x300   : > { %v1636_v2 = vpop.eup %1635  ;;  %v1130_v45 = vmul.f32 1.442695, %v1014_v20  ;;  %v1132_v52 = vmul.f32 1.442695, %v1015_v25  ;;  %v1016_v22 = vsub.f32 %v2538_v12, %v949_v28  ;;  %v1017_v44 = vsub.f32 %v2539_v26, %v949_v28  ;;  %v2548_v20 = vld [vmem:[#allocation34_spill] sm:$0xff]  ;;  %v2549_v25 = vld [vmem:[#allocation35_spill] sm:$0xff] }
 0x301   : > { %v1177_v29 = vpack.c.bf16 %v1634_v32, %v1636_v2 }
 0x302   : > { %1645 = vpow2.f32 %v1130_v45  ;;  %v1134_v40 = vmul.f32 1.442695, %v1016_v22  ;;  %v1136_v31 = vmul.f32 1.442695, %v1017_v44 }
 0x303   : > { %1647 = vpow2.f32 %v1132_v52  ;;  %1212 = vmatprep.subr.bf16.mxu0 %v1177_v29  ;;  %1265 = vmatprep.subr.bf16.mxu1 %v1177_v29  ;;  %v2550_v29 = vld [vmem:[#allocation16_spill] sm:$0xff] }
 0x304   : > { %1649 = vpow2.f32 %v1134_v40  ;;  %1213 = vmatpush1.bf16.xpose.msra.mxu0 %v1176_v42  ;;  %1266 = vmatpush1.bf16.xpose.msra.mxu1 %v1176_v42  ;;  %v1638_v37 = vpop.eup %1637 }
 0x305   : > { %1651 = vpow2.f32 %v1136_v31  ;;  %v952_v39 = vpop.xlane.xlu0 %951  ;;  %v2551_v31 = vld [vmem:[#allocation17_spill] sm:$0xff] }
 0x306   : > { %v1640_v41 = vpop.eup %1639  ;;  %v1018_v62 = vsub.f32 %v2540_v57, %v952_v39  ;;  %v1019_v59 = vsub.f32 %v2541_v6, %v952_v39  ;;  %v2552_v39 = vld [vmem:[#allocation18_spill] sm:$0xff]  ;;  %v2553_v57 = vld [vmem:[#allocation19_spill] sm:$0xff] }
 0x307   : > { %v1642_v18 = vpop.eup %1641  ;;  %v955_v24 = vpop.xlane.xlu1 %954  ;;  %v1178_v61 = vpack.c.bf16 %v1640_v41, %v1638_v37 }
 0x308   : > { %v1644_v7 = vpop.eup %1643  ;;  %v1138_v63 = vmul.f32 1.442695, %v1018_v62  ;;  %v1140_v43 = vmul.f32 1.442695, %v1019_v59  ;;  %v1020_v46 = vsub.f32 %v2542_v8, %v955_v24  ;;  %v1021_v54 = vsub.f32 %v2543_v50, %v955_v24 }
 0x309   : > { %v1179_v56 = vpack.c.bf16 %v1642_v18, %v1644_v7 }
 0x30a   : > { %1653 = vpow2.f32 %v1138_v63  ;;  %v1142_v36 = vmul.f32 1.442695, %v1020_v46  ;;  %v1144_v13 = vmul.f32 1.442695, %v1021_v54 }
 0x30b   : > { %1655 = vpow2.f32 %v1140_v43  ;;  %1214 = vmatprep.subr.bf16.mxu0 %v1179_v56  ;;  %1267 = vmatprep.subr.bf16.mxu1 %v1179_v56  ;;  %v320_v58 = vpop.permute.xlu1 %319 }
 0x30c   : > { %v1646_v48 = vpop.eup %1645  ;;  %1657 = vpow2.f32 %v1142_v36  ;;  %1215 = vmatpush1.bf16.xpose.msra.mxu0 %v1178_v61  ;;  %1268 = vmatpush1.bf16.xpose.msra.mxu1 %v1178_v61  ;;  %v388_v1 = vadd.f32 %v2544_v0, %v320_v58  ;;  %v390_v16 = vadd.f32 %v2545_v3, %v320_v58  ;;  %v2554_v58 = vld [vmem:[#allocation20_spill] sm:$0xff] }
 0x30d   : > { %v1648_v55 = vpop.eup %1647  ;;  %1659 = vpow2.f32 %v1144_v13  ;;  %v958_v27 = vpop.xlane.xlu0 %957 }
 0x30e   : > { %v1650_v60 = vpop.eup %1649  ;;  %v1022_v23 = vsub.f32 %v2548_v20, %v958_v27  ;;  %v1023_v32 = vsub.f32 %v2549_v25, %v958_v27 }
 0x30f   : > { %v1652_v15 = vpop.eup %1651  ;;  %v1180_v14 = vpack.c.bf16 %v1650_v60, %v1646_v48  ;;  %v1287_v48 = vstv %s1284_s17 }
 0x310   : > { %v1181_v33 = vpack.c.bf16 %v1652_v15, %v1648_v55  ;;  %v1146_v28 = vmul.f32 1.442695, %v1022_v23  ;;  %v1148_v42 = vmul.f32 1.442695, %v1023_v32  ;;  %v1677_v23 = vld [vmem:[%s1960_s16 + $0x8] sm:$0xff]  ;;  %v1678_v32 = vld [vmem:[%s1960_s16 + $0x18] sm:$0xff] }
 0x312   : > { %1216 = vmatprep.subr.bf16.mxu0 %v1181_v33  ;;  %1269 = vmatprep.subr.bf16.mxu1 %v1181_v33  ;;  %1661 = vpow2.f32 %v1146_v28 }
 0x313   : > { %1663 = vpow2.f32 %v1148_v42  ;;  %v1679_v42 = vld [vmem:[%s1960_s16 + $0x28] sm:$0xff] }
 0x314   : > { %v1654_v30 = vpop.eup %1653  ;;  %1217 = vmatpush1.bf16.xpose.msra.mxu0 %v1180_v14  ;;  %1270 = vmatpush1.bf16.xpose.msra.mxu1 %v1180_v14 }
 0x315   : > { %v1656_v19 = vpop.eup %1655  ;;  %v315_v5 = vpop.permute.xlu0 %314 }
 0x316   : > { %v1658_v9 = vpop.eup %1657  ;;  %v384_v17 = vadd.f32 %v2546_v11, %v315_v5  ;;  %v386_v34 = vadd.f32 %v2547_v21, %v315_v5  ;;  %v1673_v21 = vld [vmem:[%s1960_s16] sm:$0xff] }
 0x317   : > { %v1660_v47 = vpop.eup %1659  ;;  %v1182_v53 = vpack.c.bf16 %v1658_v9, %v1654_v30 }
 0x318   : > { %v402_v49 = vpack.c.bf16 %v388_v1, %v384_v17  ;;  %v403_v4 = vpack.c.bf16 %v390_v16, %v386_v34  ;;  %v1183_v51 = vpack.c.bf16 %v1660_v47, %v1656_v19  ;;  %v1674_v47 = vld [vmem:[%s1960_s16 + $0x10] sm:$0xff] }
 0x31a   : > { %1218 = vmatprep.subr.bf16.mxu0 %v1183_v51  ;;  %1271 = vmatprep.subr.bf16.mxu1 %v1183_v51 }
 0x31b   : > { %1222 = vmatprep.mubr.bf16.mxu0 %v403_v4  ;;  %v1675_v4 = vld [vmem:[%s1960_s16 + $0x20] sm:$0xff] }
 0x31c   : > { %1219 = vmatpush1.bf16.xpose.msra.mxu0 %v1182_v53  ;;  %1272 = vmatpush1.bf16.xpose.msra.mxu1 %v1182_v53  ;;  %v1662_v59 = vpop.eup %1661  ;;  %v1676_v53 = vld [vmem:[%s1960_s16 + $0x30] sm:$0xff] }
 0x33c   : > { %v961_v2 = vpop.xlane.xlu1 %960 }
 0x33d   : > { %v1024_v45 = vsub.f32 %v2323_v35, %v961_v2  ;;  %v1025_v52 = vsub.f32 %v2326_v10, %v961_v2  ;;  %v1664_v10 = vpop.eup %1663 }
 0x33f   : > { %v1150_v12 = vmul.f32 1.442695, %v1024_v45  ;;  %v1152_v22 = vmul.f32 1.442695, %v1025_v52  ;;  %v1680_v45 = vld [vmem:[%s1960_s16 + $0x38] sm:$0xff]  ;;  %s1801_s16 = smov [#allocation9]  }
 0x340   : > { %v325_v26 = vpop.permute.xlu1 %324  ;;  %s1715_s19 = sshll.u32 %s1801_s16, 4  ;;  %s1716_s19 = int_to_ptr.vmem [resolvable:$false] %s1715_s19 }
 0x341   : > { %1665 = vpow2.f32 %v1150_v12  ;;  %v394_v40 = vadd.f32 %v2550_v29, %v325_v26  ;;  %v396_v37 = vadd.f32 %v2551_v31, %v325_v26  ;;  %s1717_s21 = scalar_lea.vmem %s1716_s19, 2048  ;;  %p1718_p6 = scmp.lt.s32.totalorder %s2406_s20, %s1716_s19 }
 0x342   : > { %1667 = vpow2.f32 %v1152_v22  ;;  %p1719_p13 = scmp.lt.s32.totalorder %s1717_s21, %s1711_s10 }
 0x344   : > { %v330_v44 = vpop.permute.xlu1 %329  ;;  %p1720_p2 = por %p1719_p13, %p1718_p6 }
 0x345   : > { %v398_v41 = vadd.f32 %v2552_v39, %v330_v44  ;;  %v400_v62 = vadd.f32 %v2553_v57, %v330_v44 }
 0x346   : > { %p1721_p5 = pnand %p1720_p2, %p1714_p0 }
 0x347   : > { %v404_v6 = vpack.c.bf16 %v398_v41, %v394_v40  ;;  %v405_v35 = vpack.c.bf16 %v400_v62, %v396_v37 }
 0x34b   : > { %v1666_v18 = vpop.eup %1665 }
 0x34c   : > { %v1668_v24 = vpop.eup %1667  ;;  %v1184_v61 = vpack.c.bf16 %v1666_v18, %v1662_v59 }
 0x34d   : > { %v1185_v7 = vpack.c.bf16 %v1668_v24, %v1664_v10 }
 0x34f   : > { %1220 = vmatprep.subr.bf16.mxu0 %v1185_v7  ;;  %1273 = vmatprep.subr.bf16.mxu1 %v1185_v7 }
 0x350   : > { %1221 = vmatpush1.bf16.xpose.msra.mxu0 %v1184_v61  ;;  %1274 = vmatpush1.bf16.xpose.msra.mxu1 %v1184_v61 }
 0x357   : > { %1223 = vmatmul.mubr.bf16.vlgmr.msra.gmra.mrb[12].mxu0 %v402_v49  ;;  %1276 = vmatmul.mubr.bf16.vlgmr.msra.gmra.mrb[72].mxu1 %v1800_v38 }
 0x358   : > { %1232 = vmatprep.mubr.bf16.mxu0 %v405_v35 }
 0x35f   : > { %1233 = vmatmul.mubr.bf16.gmra.mrb[16].mxu0 %v404_v6 }
 0x42a   : > { %v1224_v63 = vpop.f32.mrb[12].mxu0  ;;  %v1277_v43 = vpop.f32.mrb[72].mxu1 }
 0x42b   : > { %1669 = vrcp.f32 %v1277_v43  ;;  %v1226_v8 = vpop.f32.mrb[13].mxu0  ;;  %v1279_v46 = vpop.f32.mrb[73].mxu1 }
 0x42c   : > { %1671 = vrcp.f32 %v1279_v46  ;;  %v1228_v50 = vpop.f32.mrb[14].mxu0  ;;  %v1281_v54 = vpop.f32.mrb[74].mxu1 }
 0x42d   : > { %v1230_v56 = vpop.f32.mrb[15].mxu0  ;;  %v1282_v36 = vpop.f32.mrb[75].mxu1 }
 0x432   : > { %v1234_v13 = vpop.f32.mrb[16].mxu0 }
 0x433   : > { %v1236_v55 = vpop.f32.mrb[17].mxu0 }
 0x434   : > { %v1238_v60 = vpop.f32.mrb[18].mxu0 }
 0x435   : > { %v1670_v38 = vpop.eup %1669  ;;  %v1240_v15 = vpop.f32.mrb[19].mxu0 }
 0x436   : > { %v1672_v33 = vpop.eup %1671  ;;  %v1288_v14 = vmul.f32 %v1670_v38, %v1287_v48 }
 0x437   : > { %v1289_v27 = vmul.f32 %v1672_v33, %v1287_v48 }
 0x438   : > { %v1293_v30 = vrot.slane %v1288_v14, %v2554_v58 }
 0x439   : > { %v1297_v19 = vrot.slane %v1289_v27, %v2554_v58 }
 0x43a   : > { %v1298_v5 = vmul.f32 %v1293_v30, %v1224_v63  ;;  %v1300_v9 = vmul.f32 %v1293_v30, %v1228_v50  ;;  %v1302_v0 = vmul.f32 %v1293_v30, %v1234_v13  ;;  %v1304_v1 = vmul.f32 %v1293_v30, %v1238_v60 }
 0x43b   : > { %v1299_v3 = vmul.f32 %v1297_v19, %v1226_v8  ;;  %v1301_v16 = vmul.f32 %v1297_v19, %v1230_v56  ;;  %v1303_v11 = vmul.f32 %v1297_v19, %v1236_v55  ;;  %v1305_v17 = vmul.f32 %v1297_v19, %v1240_v15 }
 0x43c   : > { %v1306_v34 = vadd.f32 %v1673_v21, %v1298_v5  ;;  %v1308_v49 = vadd.f32 %v1674_v47, %v1300_v9  ;;  %v1310_v51 = vadd.f32 %v1675_v4, %v1302_v0  ;;  %v1312_v20 = vadd.f32 %v1676_v53, %v1304_v1 }
 0x43d   : > { %v1307_v25 = vadd.f32 %v1677_v23, %v1299_v3  ;;  %v1309_v28 = vadd.f32 %v1678_v32, %v1301_v16  ;;  %v1311_v2 = vadd.f32 %v1679_v42, %v1303_v11  ;;  %v1313_v52 = vadd.f32 %v1680_v45, %v1305_v17 }
 0x43e   : > { %1314 = vst [vmem:[%s2401_s18] sm:$0xff] %v1306_v34  ;;  %1316 = vst [vmem:[%s2401_s18 + $0x10] sm:$0xff] %v1308_v49 }
 0x43f   : > { %1318 = vst [vmem:[%s2401_s18 + $0x20] sm:$0xff] %v1310_v51  ;;  %1320 = vst [vmem:[%s2401_s18 + $0x30] sm:$0xff] %v1312_v20 }
 0x440   : > { %1315 = vst [vmem:[%s2401_s18 + $0x8] sm:$0xff] %v1307_v25  ;;  %1317 = vst [vmem:[%s2401_s18 + $0x18] sm:$0xff] %v1309_v28 }
 0x441   : > { %1319 = vst [vmem:[%s2401_s18 + $0x28] sm:$0xff] %v1311_v2  ;;  %1321 = vst [vmem:[%s2401_s18 + $0x38] sm:$0xff] %v1313_v52 }
 0x442   : > { %1724 = shalt.err (!%p1721_p5)
}
 0x443   : > { %s1725_s22 = scalar_lea.hbm %s2419_s7, 1024  ;;  %s1729_s17 = scalar_lea.hbm %s2482_s6, 2048 }
 0x444   : > { %p1726_p4 = scmp.ne.s32.totalorder %s2419_s7, %s1725_s22  ;;  %p1730_p12 = scmp.lt.u32.totalorder %s2419_s7, %s2482_s6 }
 0x445   : > { %p1731_p1 = scmp.lt.u32.totalorder %s1729_s17, %s1725_s22  ;;  %p1733_p8 = scmp.lt.u32.totalorder %s1725_s22, %s2419_s7 }
 0x446   : > { %p1727_p7 = pnand %p1726_p4, %p2555_p9 }
 0x447   : > { %p1732_p3 = por %p1731_p1, %p1730_p12 }
 0x448   : > { %p1728_p10 = pneg %p1727_p7 }
 0x449   : > { %p1734_p11 = por %p1733_p8, %p1732_p3 }
 0x44b   : > { %p1735_p0 = pnand %p1734_p11, %p1728_p10 }
 0x44d   : > { %1738 = shalt.err (!%p1735_p0)
}
 0x44e   : > { %s1802_s26 = smov 256   ;;  %s1803_s8 = smov 16  }
 0x44f   : > { %1468 = dma.vmem_to_hbm [thread:$0]  (%p2555_p9), %s2406_s20, 1024, %s2419_s7, %s1323_s15, %s1802_s26, %s1802_s26, %s1803_s8  }
 0x450 PF: > { %s1353_s10 = sand.u32 1, %s1773_s23   ;;  %p2556_p6 = scmp.ne.s32.totalorder %s2504_s13, 0 }
 0x451   : > { %p2557_p13 = scmp.ge.s32.totalorder %s1793_s28, 2  ;;  %s1354_s16 = scalar_lea.sflag [#allocation8], %s1353_s10 }
 0x453   : > { %p1475_p2 = pnand %p2557_p13, %p2556_p6 }
 0x455   : > { %1768 = dma.done.wait (!%p1475_p2), %s1354_s16, 1024  }
 0x456   : > { %1770 = vsyncadd (!%p1475_p2), %s1354_s16, 4294966272  ;;  %s23_s28 = sadd.s32 1, %s1793_s28   ;;  %s2558_s23 = smov %s1777_s24 }
 0x457   : > { %p20_p5 = scmp.ge.s32.totalorder %s23_s28, 4   ;;  %s2559_s24 = smov %s1781_s25 }
 0x458   : > { %s2560_s25 = smov %s1898_s12  ;;  %s2561_s26 = smov %s1789_s27 }
 0x459   : > { %s2562_s27 = smov %s2564_s30  ;;  %22 = sbr.rel (!%p20_p5) target bundleno = 8 (0x8), region = 94 }
 0x460   :  { %1359 = vsyncpa [#allocation7], 1 }
 0x461   :  { %1361 = vsyncpa [#allocation7 + $0x1], 1 }
 0x462   :  { %1362 = vsyncpa [#allocation8], 1 }
 0x463   :  { %1364 = vsyncpa [#allocation8 + $0x1], 1 }

</bundles_post_ra>
